<compile_context>
chip_gen: v7x
topology: tpu7x:2x2x1
jax: 0.10.0
libtpu: 0.0.40
codegen_flags: <defaults>
</compile_context>

<pallas_src>
import functools

import numpy as np
import jax
import jax.numpy as jnp
from jax.experimental import pallas as pl
from jax.experimental.pallas import tpu as pltpu


# =============================================================================
# Kernel 1: all PPM branches fused in one call.
#   y[b] = relu((pooled[b] @ W[b]) * scale[b] + bias[b])
# =============================================================================
def _ppm_kernel(x_ref, w_ref, s_ref, b_ref, o_ref):
    acc = jnp.dot(x_ref[...], w_ref[...], preferred_element_type=jnp.float32)
    o_ref[...] = jnp.maximum(acc * s_ref[...] + b_ref[...], 0.0)


def ppm_branches(pooled_stack, w_stack, scale_stack, bias_stack):
    B, RP, Cin = pooled_stack.shape
    CH = w_stack.shape[-1]
    return pl.pallas_call(
        _ppm_kernel,
        out_shape=jax.ShapeDtypeStruct((B, RP, CH), jnp.float32),
        grid=(B,),
        in_specs=[
            pl.BlockSpec((None, RP, Cin), lambda b: (b, 0, 0)),
            pl.BlockSpec((None, Cin, CH), lambda b: (b, 0, 0)),
            pl.BlockSpec((None, 1, CH), lambda b: (b, 0, 0)),
            pl.BlockSpec((None, 1, CH), lambda b: (b, 0, 0)),
        ],
        out_specs=pl.BlockSpec((None, RP, CH), lambda b: (b, 0, 0)),
        compiler_params=pltpu.CompilerParams(
            dimension_semantics=("parallel",)),
    )(pooled_stack, w_stack, scale_stack, bias_stack)


# =============================================================================
# Kernel 2: fused 3x3 conv (+folded BN, ReLU) + 1x1 cls conv (+bias).
#
# Input `xf` is the spatially-padded NHWC concat, flattened to rows
# (N, (H+3)*(W+2), Ccat).  For tap (kh, kw) the contribution to output flat
# row r is xf[r + kh*Wp + kw, :] @ Wtap -- 9 statically shifted matmuls,
# no im2col.  Grid = (batch "parallel", channel-chunk "arbitrary"); the f32
# accumulator lives in VMEM scratch, the conv weight is streamed per chunk.
# The cls matmul is the epilogue; its output is lane-dense (classes padded
# to 128).
# =============================================================================
def _bottleneck_cls_kernel(xf_ref, w_ref, s_ref, b_ref, wc_ref, bc_ref,
                           o_ref, acc_ref, *, wp, rows_out):
    c = pl.program_id(1)

    @pl.when(c == 0)
    def _init():
        acc_ref[...] = jnp.zeros_like(acc_ref)

    acc = acc_ref[...]
    for kh in range(3):
        for kw in range(3):
            off = kh * wp + kw                        # static shift
            xs = xf_ref[off:off + rows_out, :]        # (rows_out, tk) bf16
            acc = acc + jnp.dot(xs, w_ref[kh * 3 + kw],
                                preferred_element_type=jnp.float32)
    acc_ref[...] = acc

    @pl.when(c == pl.num_programs(1) - 1)
    def _epilogue():
        feat = jnp.maximum(acc_ref[...] * s_ref[...] + b_ref[...], 0.0)
        logits = jnp.dot(feat.astype(wc_ref.dtype), wc_ref[...],
                         preferred_element_type=jnp.float32) + bc_ref[...]
        o_ref[...] = logits.astype(o_ref.dtype)


def bottleneck_cls(cat_flat, w_taps, bn_scale, bn_bias, w_cls_p, b_cls_p,
                   *, wp, rows_out, tk):
    N, Rflat, Ccat = cat_flat.shape
    CH = w_taps.shape[-1]
    CPAD = w_cls_p.shape[-1]
    n_k = Ccat // tk
    return pl.pallas_call(
        functools.partial(_bottleneck_cls_kernel, wp=wp, rows_out=rows_out),
        out_shape=jax.ShapeDtypeStruct((N, rows_out, CPAD), jnp.float32),
        grid=(N, n_k),
        in_specs=[
            pl.BlockSpec((None, Rflat, tk), lambda n, c: (n, 0, c)),  # activ.
            pl.BlockSpec((9, tk, CH), lambda n, c: (0, c, 0)),        # conv W
            pl.BlockSpec((1, CH), lambda n, c: (0, 0)),               # BN scale
            pl.BlockSpec((1, CH), lambda n, c: (0, 0)),               # BN bias
            pl.BlockSpec((CH, CPAD), lambda n, c: (0, 0)),            # cls W
            pl.BlockSpec((1, CPAD), lambda n, c: (0, 0)),             # cls bias
        ],
        out_specs=pl.BlockSpec((None, rows_out, CPAD), lambda n, c: (n, 0, 0)),
        scratch_shapes=[pltpu.VMEM((rows_out, CH), jnp.float32)],
        compiler_params=pltpu.CompilerParams(
            dimension_semantics=("parallel", "arbitrary"),
            # fits comfortably within v5e/v6e/v7x scoped-VMEM budgets
            vmem_limit_bytes=32 * 1024 * 1024),
    )(cat_flat, w_taps, bn_scale, bn_bias, w_cls_p, b_cls_p)


# =============================================================================
# Glue: adaptive-avg-pool / bilinear-upsample as small matrices
# (matches torch.nn.AdaptiveAvgPool2d and F.interpolate(bilinear)).
# =============================================================================
def adaptive_pool_matrix(in_size, out_size):
    P = np.zeros((out_size, in_size), dtype=np.float32)
    for i in range(out_size):
        start = (i * in_size) // out_size
        end = -((-(i + 1) * in_size) // out_size)
        P[i, start:end] = 1.0 / (end - start)
    return jnp.asarray(P)


def upsample_matrix(in_size, out_size, align_corners=False):
    U = np.zeros((out_size, in_size), dtype=np.float32)
    for i in range(out_size):
        if align_corners and out_size > 1:
            src = i * (in_size - 1) / (out_size - 1)
        else:
            src = (i + 0.5) * in_size / out_size - 0.5
            src = max(src, 0.0)
        i0 = min(int(np.floor(src)), in_size - 1)
        i1 = min(i0 + 1, in_size - 1)
        lam = src - i0
        U[i, i0] += 1.0 - lam
        U[i, i1] += lam
    return jnp.asarray(U)


def fold_bn(gamma, beta, mean, var, eps=1e-5):
    scale = gamma / jnp.sqrt(var + eps)
    bias = beta - mean * scale
    return scale, bias


# =============================================================================
# Parameters (deterministic synthetic init).
# =============================================================================
def init_params(key, in_channels, channels, pool_scales, num_classes):
    keys = iter(jax.random.split(key, 40))

    def nrm(shape, std=0.05):
        return std * jax.random.normal(next(keys), shape, jnp.float32)

    def bn_params(c):
        return dict(
            gamma=1.0 + 0.1 * jax.random.normal(next(keys), (c,), jnp.float32),
            beta=0.1 * jax.random.normal(next(keys), (c,), jnp.float32),
            mean=0.1 * jax.random.normal(next(keys), (c,), jnp.float32),
            var=jnp.abs(1.0 + 0.1 * jax.random.normal(next(keys), (c,),
                                                      jnp.float32)),
        )

    params = {"ppm": []}
    for _ in pool_scales:
        params["ppm"].append(dict(
            w=nrm((channels, in_channels)),          # 1x1 conv (Cout, Cin)
            bn=bn_params(channels),
        ))
    cat_ch = in_channels + len(pool_scales) * channels
    params["bott_w"] = nrm((channels, cat_ch, 3, 3))  # 3x3 conv (Cout,Cin,3,3)
    params["bott_bn"] = bn_params(channels)
    params["cls_w"] = nrm((num_classes, channels))    # 1x1 conv (Cout, Cin)
    params["cls_b"] = nrm((num_classes,))
    return params


# =============================================================================
# PSPHead forward (Pallas path).
# =============================================================================
def psp_head_forward(x_nchw, params, pool_scales=(1, 2, 3, 6),
                     align_corners=False):
    N, Cin, H, W = x_nchw.shape
    x = jnp.transpose(x_nchw, (0, 2, 3, 1)).astype(jnp.float32)   # NHWC
    CH = params["ppm"][0]["w"].shape[0]
    num_classes = params["cls_w"].shape[0]
    nb = len(pool_scales)

    # ---- PPM: adaptive pool -> fused (1x1 conv + BN + ReLU) -> upsample ----
    pooled, rows = [], []
    for s in pool_scales:
        Pr, Pc = adaptive_pool_matrix(H, s), adaptive_pool_matrix(W, s)
        p = jnp.einsum("ih,jw,nhwc->nijc", Pr, Pc, x)
        pooled.append(p.reshape(N * s * s, Cin))
        rows.append(N * s * s)
    RP = ((max(rows) + 15) // 16) * 16       # bf16 sublane-friendly row pad
    pooled_stack = jnp.stack(
        [jnp.pad(p, ((0, RP - r), (0, 0))) for p, r in zip(pooled, rows)]
    ).astype(jnp.bfloat16)
    w_stack = jnp.stack([p["w"].T for p in params["ppm"]]).astype(jnp.bfloat16)
    scs, bis = zip(*(fold_bn(**p["bn"]) for p in params["ppm"]))
    scale_stack = jnp.stack(scs).reshape(nb, 1, CH)
    bias_stack = jnp.stack(bis).reshape(nb, 1, CH)
    ppm_out = ppm_branches(pooled_stack, w_stack, scale_stack, bias_stack)

    # ---- concat [x] + upsampled branches, with the 3x3 halo pad folded in --
    Wp = W + 2
    pad_spec = ((0, 0), (1, 2), (1, 1), (0, 0))   # top 1 / bottom 2, left/right 1
    branches = [jnp.pad(x, pad_spec).astype(jnp.bfloat16)]
    for b_idx, (s, r) in enumerate(zip(pool_scales, rows)):
        y = ppm_out[b_idx, :r].reshape(N, s, s, CH)
        Ur = upsample_matrix(s, H, align_corners)
        Uc = upsample_matrix(s, W, align_corners)
        up = jnp.einsum("hi,wj,nijc->nhwc", Ur, Uc, y)
        branches.append(jnp.pad(up, pad_spec).astype(jnp.bfloat16))
    catp = jnp.concatenate(branches, axis=-1)          # (N, H+3, W+2, Ccat)
    Ccat = catp.shape[-1]
    cat_flat = catp.reshape(N, (H + 3) * Wp, Ccat)     # flat padded rows

    # ---- bottleneck 3x3 conv + BN + ReLU + cls 1x1 conv, one fused kernel --
    rows_out = H * Wp
    w_taps = jnp.transpose(params["bott_w"], (2, 3, 1, 0)).reshape(
        9, Ccat, CH).astype(jnp.bfloat16)              # tap = kh*3 + kw
    b_scale, b_bias = fold_bn(**params["bott_bn"])

    CPAD = max(128, ((num_classes + 127) // 128) * 128)  # lane-dense store
    w_cls = jnp.zeros((CH, CPAD), jnp.float32).at[:, :num_classes].set(
        params["cls_w"].T).astype(jnp.bfloat16)
    b_cls = jnp.zeros((1, CPAD), jnp.float32).at[:, :num_classes].set(
        params["cls_b"])

    # reduction-axis chunk over input channels (weights streamed per chunk)
    if Ccat % 256 == 0 and Ccat > 256:
        tk = 256
    elif Ccat % 128 == 0:
        tk = 128
    else:
        tk = Ccat

    out = bottleneck_cls(cat_flat, w_taps,
                         b_scale.reshape(1, CH), b_bias.reshape(1, CH),
                         w_cls, b_cls, wp=Wp, rows_out=rows_out, tk=tk)
    logits = out.reshape(N, H, Wp, CPAD)[:, :, :W, :num_classes]
    return jnp.transpose(logits, (0, 3, 1, 2))         # NHWC -> NCHW


# =============================================================================
# Pure-jnp f32 reference (same math, no Pallas) for a sanity check.
# =============================================================================
def psp_head_reference(x_nchw, params, pool_scales=(1, 2, 3, 6),
                       align_corners=False):
    N, Cin, H, W = x_nchw.shape
    x = jnp.transpose(x_nchw, (0, 2, 3, 1)).astype(jnp.float32)
    outs = [x]
    for s, p in zip(pool_scales, params["ppm"]):
        Pr, Pc = adaptive_pool_matrix(H, s), adaptive_pool_matrix(W, s)
        pooled = jnp.einsum("ih,jw,nhwc->nijc", Pr, Pc, x)
        scale, bias = fold_bn(**p["bn"])
        y = jnp.maximum(
            jnp.einsum("nijc,dc->nijd", pooled, p["w"]) * scale + bias, 0.0)
        Ur = upsample_matrix(s, H, align_corners)
        Uc = upsample_matrix(s, W, align_corners)
        outs.append(jnp.einsum("hi,wj,nijc->nhwc", Ur, Uc, y))
    cat = jnp.concatenate(outs, -1)
    xp = jnp.pad(cat, ((0, 0), (1, 1), (1, 1), (0, 0)))
    w = params["bott_w"]
    conv = jnp.zeros((N, H, W, w.shape[0]), jnp.float32)
    for kh in range(3):
        for kw in range(3):
            conv = conv + jnp.einsum("nhwc,dc->nhwd",
                                     xp[:, kh:kh + H, kw:kw + W, :],
                                     w[:, :, kh, kw])
    scale, bias = fold_bn(**params["bott_bn"])
    feat = jnp.maximum(conv * scale + bias, 0.0)
    logits = jnp.einsum("nhwc,dc->nhwd", feat, params["cls_w"]) + params["cls_b"]
    return jnp.transpose(logits, (0, 3, 1, 2))


if __name__ == "__main__":
    # small shapes consistent with the module's forward (scaled-down PSPHead)
    N, IN_CH, CH, H, W = 2, 128, 32, 16, 16
    POOL_SCALES = (1, 2, 3, 6)
    NUM_CLASSES = 14

    key = jax.random.PRNGKey(0)
    k_x, k_p = jax.random.split(key)
    x = jax.random.normal(k_x, (N, IN_CH, H, W), jnp.float32)
    params = init_params(k_p, IN_CH, CH, POOL_SCALES, NUM_CLASSES)

    fwd = jax.jit(functools.partial(psp_head_forward,
                                    pool_scales=POOL_SCALES,
                                    align_corners=False))
    out = jax.block_until_ready(fwd(x, params))
    assert out.shape == (N, NUM_CLASSES, H, W), out.shape
    assert bool(jnp.all(jnp.isfinite(out)))

    # loose tolerance: Pallas path uses bf16 matmul operands with f32 accum
    ref = jax.block_until_ready(
        psp_head_reference(x, params, POOL_SCALES, False))
    assert bool(jnp.allclose(out, ref, rtol=5e-2, atol=5e-2)), (
        float(jnp.max(jnp.abs(out - ref))))
    print("KERNEL_OK")
</pallas_src>

<mosaic_0001>
module attributes {stable_mosaic.version = 11 : i64} {
  func.func @_ppm_kernel(%arg0: i32, %arg1: memref<1x80x128xbf16, #tpu.memory_space<vmem>>, %arg2: memref<1x128x32xbf16, #tpu.memory_space<vmem>>, %arg3: memref<1x1x32xf32, #tpu.memory_space<vmem>>, %arg4: memref<1x1x32xf32, #tpu.memory_space<vmem>>, %arg5: memref<1x80x32xf32, #tpu.memory_space<vmem>>) attributes {dimension_semantics = [#tpu.dimension_semantics<parallel>], iteration_bounds = array<i64: 4>, scalar_prefetch = 0 : i64, scratch_operands = 0 : i64, tpu.core_type = #tpu.core_type<tc>, window_params = [{transform_indices = @transform_0, window_bounds = array<i64: 1, 80, 128>}, {transform_indices = @transform_1, window_bounds = array<i64: 1, 128, 32>}, {transform_indices = @transform_2, window_bounds = array<i64: 1, 1, 32>}, {transform_indices = @transform_3, window_bounds = array<i64: 1, 1, 32>}, {transform_indices = @transform_4, window_bounds = array<i64: 1, 80, 32>}]} {
    %c0 = arith.constant 0 : index
    %c0_0 = arith.constant 0 : index
    %c0_1 = arith.constant 0 : index
    %0 = vector.load %arg1[%c0, %c0_0, %c0_1] : memref<1x80x128xbf16, #tpu.memory_space<vmem>>, vector<1x80x128xbf16>
    %1 = vector.shape_cast %0 : vector<1x80x128xbf16> to vector<80x128xbf16>
    %c0_2 = arith.constant 0 : index
    %c0_3 = arith.constant 0 : index
    %c0_4 = arith.constant 0 : index
    %2 = vector.load %arg2[%c0_2, %c0_3, %c0_4] : memref<1x128x32xbf16, #tpu.memory_space<vmem>>, vector<1x128x32xbf16>
    %3 = vector.shape_cast %2 : vector<1x128x32xbf16> to vector<128x32xbf16>
    %cst = arith.constant dense<0.000000e+00> : vector<80x32xf32>
    %4 = tpu.matmul %1, %3, %cst {dimension_numbers = #tpu.dot_dimension_numbers<[1], [0], [0], [1], [0, 0, 1, 1], [], []>} : vector<80x128xbf16>, vector<128x32xbf16>, vector<80x32xf32> -> vector<80x32xf32>
    %c0_5 = arith.constant 0 : index
    %c0_6 = arith.constant 0 : index
    %c0_7 = arith.constant 0 : index
    %5 = vector.load %arg3[%c0_5, %c0_6, %c0_7] : memref<1x1x32xf32, #tpu.memory_space<vmem>>, vector<1x1x32xf32>
    %6 = vector.shape_cast %5 : vector<1x1x32xf32> to vector<1x32xf32>
    %7 = vector.broadcast %6 : vector<1x32xf32> to vector<80x32xf32>
    %8 = arith.mulf %4, %7 : vector<80x32xf32>
    %c0_8 = arith.constant 0 : index
    %c0_9 = arith.constant 0 : index
    %c0_10 = arith.constant 0 : index
    %9 = vector.load %arg4[%c0_8, %c0_9, %c0_10] : memref<1x1x32xf32, #tpu.memory_space<vmem>>, vector<1x1x32xf32>
    %10 = vector.shape_cast %9 : vector<1x1x32xf32> to vector<1x32xf32>
    %11 = vector.broadcast %10 : vector<1x32xf32> to vector<80x32xf32>
    %12 = arith.addf %8, %11 : vector<80x32xf32>
    %cst_11 = arith.constant 0.000000e+00 : f32
    %13 = vector.broadcast %cst_11 : f32 to vector<80x32xf32>
    %14 = arith.maximumf %12, %13 : vector<80x32xf32>
    %c0_12 = arith.constant 0 : index
    %c0_13 = arith.constant 0 : index
    %c0_14 = arith.constant 0 : index
    %15 = vector.load %arg5[%c0_12, %c0_13, %c0_14] : memref<1x80x32xf32, #tpu.memory_space<vmem>>, vector<1x80x32xf32>
    %16 = vector.shape_cast %15 : vector<1x80x32xf32> to vector<80x32xf32>
    %17 = vector.shape_cast %14 : vector<80x32xf32> to vector<1x80x32xf32>
    tpu.vector_store %arg5[%c0_12, %c0_13, %c0_14], %17 {strides = array<i32>} : memref<1x80x32xf32, #tpu.memory_space<vmem>>, vector<1x80x32xf32>,
    return
  }
  func.func @transform_0(%arg0: i32) -> (i32, i32, i32) {
    %c0_i32 = arith.constant 0 : i32
    %c0_i32_0 = arith.constant 0 : i32
    %c0_i32_1 = arith.constant 0 : i32
    return %arg0, %c0_i32, %c0_i32_0 : i32, i32, i32
  }
  func.func @transform_1(%arg0: i32) -> (i32, i32, i32) {
    %c0_i32 = arith.constant 0 : i32
    %c0_i32_0 = arith.constant 0 : i32
    %c0_i32_1 = arith.constant 0 : i32
    return %arg0, %c0_i32, %c0_i32_0 : i32, i32, i32
  }
  func.func @transform_2(%arg0: i32) -> (i32, i32, i32) {
    %c0_i32 = arith.constant 0 : i32
    %c0_i32_0 = arith.constant 0 : i32
    %c0_i32_1 = arith.constant 0 : i32
    return %arg0, %c0_i32, %c0_i32_0 : i32, i32, i32
  }
  func.func @transform_3(%arg0: i32) -> (i32, i32, i32) {
    %c0_i32 = arith.constant 0 : i32
    %c0_i32_0 = arith.constant 0 : i32
    %c0_i32_1 = arith.constant 0 : i32
    return %arg0, %c0_i32, %c0_i32_0 : i32, i32, i32
  }
  func.func @transform_4(%arg0: i32) -> (i32, i32, i32) {
    %c0_i32 = arith.constant 0 : i32
    %c0_i32_0 = arith.constant 0 : i32
    %c0_i32_1 = arith.constant 0 : i32
    return %arg0, %c0_i32, %c0_i32_0 : i32, i32, i32
  }
}

module attributes {stable_mosaic.version = 11 : i64} {
  func.func @_bottleneck_cls_kernel(%arg0: i32, %arg1: i32, %arg2: memref<1x342x128xbf16, #tpu.memory_space<vmem>>, %arg3: memref<9x128x32xbf16, #tpu.memory_space<vmem>>, %arg4: memref<1x32xf32, #tpu.memory_space<vmem>>, %arg5: memref<1x32xf32, #tpu.memory_space<vmem>>, %arg6: memref<32x128xbf16, #tpu.memory_space<vmem>>, %arg7: memref<1x128xf32, #tpu.memory_space<vmem>>, %arg8: memref<1x288x128xf32, #tpu.memory_space<vmem>>, %arg9: memref<288x32xf32, #tpu.memory_space<vmem>>) attributes {dimension_semantics = [#tpu.dimension_semantics<parallel>, #tpu.dimension_semantics<arbitrary>], iteration_bounds = array<i64: 2, 2>, scalar_prefetch = 0 : i64, scratch_operands = 1 : i64, tpu.core_type = #tpu.core_type<tc>, window_params = [{transform_indices = @transform_0, window_bounds = array<i64: 1, 342, 128>}, {transform_indices = @transform_1, window_bounds = array<i64: 9, 128, 32>}, {pipeline_mode = #tpu.pipeline_mode<synchronous>, transform_indices = @transform_2, window_bounds = array<i64: 1, 32>}, {pipeline_mode = #tpu.pipeline_mode<synchronous>, transform_indices = @transform_3, window_bounds = array<i64: 1, 32>}, {pipeline_mode = #tpu.pipeline_mode<synchronous>, transform_indices = @transform_4, window_bounds = array<i64: 32, 128>}, {pipeline_mode = #tpu.pipeline_mode<synchronous>, transform_indices = @transform_5, window_bounds = array<i64: 1, 128>}, {transform_indices = @transform_6, window_bounds = array<i64: 1, 288, 128>}]} {
    %c0_i32 = arith.constant 0 : i32
    %0 = arith.cmpi eq, %arg1, %c0_i32 : i32
    %1 = arith.extui %0 : i1 to i32
    %c0_i32_0 = arith.constant 0 : i32
    %2 = arith.cmpi ne, %1, %c0_i32_0 : i32
    scf.if %2 {
      %cst_53 = arith.constant 0.000000e+00 : f32
      %62 = vector.broadcast %cst_53 : f32 to vector<288x32xf32>
      %c0_54 = arith.constant 0 : index
      %c0_55 = arith.constant 0 : index
      %63 = vector.load %arg9[%c0_54, %c0_55] : memref<288x32xf32, #tpu.memory_space<vmem>>, vector<288x32xf32>
      tpu.vector_store %arg9[%c0_54, %c0_55], %62 {strides = array<i32>} : memref<288x32xf32, #tpu.memory_space<vmem>>, vector<288x32xf32>,
    } else {
    }
    %c0 = arith.constant 0 : index
    %c0_1 = arith.constant 0 : index
    %3 = vector.load %arg9[%c0, %c0_1] : memref<288x32xf32, #tpu.memory_space<vmem>>, vector<288x32xf32>
    %c0_2 = arith.constant 0 : index
    %c0_3 = arith.constant 0 : index
    %c0_4 = arith.constant 0 : index
    %4 = vector.load %arg2[%c0_2, %c0_3, %c0_4] : memref<1x342x128xbf16, #tpu.memory_space<vmem>>, vector<1x288x128xbf16>
    %5 = vector.shape_cast %4 : vector<1x288x128xbf16> to vector<288x128xbf16>
    %c0_5 = arith.constant 0 : index
    %c0_6 = arith.constant 0 : index
    %c0_7 = arith.constant 0 : index
    %6 = vector.load %arg3[%c0_5, %c0_6, %c0_7] : memref<9x128x32xbf16, #tpu.memory_space<vmem>>, vector<1x128x32xbf16>
    %7 = vector.shape_cast %6 : vector<1x128x32xbf16> to vector<128x32xbf16>
    %cst = arith.constant dense<0.000000e+00> : vector<288x32xf32>
    %8 = tpu.matmul %5, %7, %cst {dimension_numbers = #tpu.dot_dimension_numbers<[1], [0], [0], [1], [0, 0, 1, 1], [], []>} : vector<288x128xbf16>, vector<128x32xbf16>, vector<288x32xf32> -> vector<288x32xf32>
    %9 = arith.addf %3, %8 : vector<288x32xf32>
    %c0_8 = arith.constant 0 : index
    %c1 = arith.constant 1 : index
    %c0_9 = arith.constant 0 : index
    %10 = vector.load %arg2[%c0_8, %c1, %c0_9] : memref<1x342x128xbf16, #tpu.memory_space<vmem>>, vector<1x288x128xbf16>
    %11 = vector.shape_cast %10 : vector<1x288x128xbf16> to vector<288x128xbf16>
    %c1_10 = arith.constant 1 : index
    %c0_11 = arith.constant 0 : index
    %c0_12 = arith.constant 0 : index
    %12 = vector.load %arg3[%c1_10, %c0_11, %c0_12] : memref<9x128x32xbf16, #tpu.memory_space<vmem>>, vector<1x128x32xbf16>
    %13 = vector.shape_cast %12 : vector<1x128x32xbf16> to vector<128x32xbf16>
    %cst_13 = arith.constant dense<0.000000e+00> : vector<288x32xf32>
    %14 = tpu.matmul %11, %13, %cst_13 {dimension_numbers = #tpu.dot_dimension_numbers<[1], [0], [0], [1], [0, 0, 1, 1], [], []>} : vector<288x128xbf16>, vector<128x32xbf16>, vector<288x32xf32> -> vector<288x32xf32>
    %15 = arith.addf %9, %14 : vector<288x32xf32>
    %c0_14 = arith.constant 0 : index
    %c2 = arith.constant 2 : index
    %c0_15 = arith.constant 0 : index
    %16 = vector.load %arg2[%c0_14, %c2, %c0_15] : memref<1x342x128xbf16, #tpu.memory_space<vmem>>, vector<1x288x128xbf16>
    %17 = vector.shape_cast %16 : vector<1x288x128xbf16> to vector<288x128xbf16>
    %c2_16 = arith.constant 2 : index
    %c0_17 = arith.constant 0 : index
    %c0_18 = arith.constant 0 : index
    %18 = vector.load %arg3[%c2_16, %c0_17, %c0_18] : memref<9x128x32xbf16, #tpu.memory_space<vmem>>, vector<1x128x32xbf16>
    %19 = vector.shape_cast %18 : vector<1x128x32xbf16> to vector<128x32xbf16>
    %cst_19 = arith.constant dense<0.000000e+00> : vector<288x32xf32>
    %20 = tpu.matmul %17, %19, %cst_19 {dimension_numbers = #tpu.dot_dimension_numbers<[1], [0], [0], [1], [0, 0, 1, 1], [], []>} : vector<288x128xbf16>, vector<128x32xbf16>, vector<288x32xf32> -> vector<288x32xf32>
    %21 = arith.addf %15, %20 : vector<288x32xf32>
    %c0_20 = arith.constant 0 : index
    %c18 = arith.constant 18 : index
    %c0_21 = arith.constant 0 : index
    %22 = vector.load %arg2[%c0_20, %c18, %c0_21] : memref<1x342x128xbf16, #tpu.memory_space<vmem>>, vector<1x288x128xbf16>
    %23 = vector.shape_cast %22 : vector<1x288x128xbf16> to vector<288x128xbf16>
    %c3 = arith.constant 3 : index
    %c0_22 = arith.constant 0 : index
    %c0_23 = arith.constant 0 : index
    %24 = vector.load %arg3[%c3, %c0_22, %c0_23] : memref<9x128x32xbf16, #tpu.memory_space<vmem>>, vector<1x128x32xbf16>
    %25 = vector.shape_cast %24 : vector<1x128x32xbf16> to vector<128x32xbf16>
    %cst_24 = arith.constant dense<0.000000e+00> : vector<288x32xf32>
    %26 = tpu.matmul %23, %25, %cst_24 {dimension_numbers = #tpu.dot_dimension_numbers<[1], [0], [0], [1], [0, 0, 1, 1], [], []>} : vector<288x128xbf16>, vector<128x32xbf16>, vector<288x32xf32> -> vector<288x32xf32>
    %27 = arith.addf %21, %26 : vector<288x32xf32>
    %c0_25 = arith.constant 0 : index
    %c19 = arith.constant 19 : index
    %c0_26 = arith.constant 0 : index
    %28 = vector.load %arg2[%c0_25, %c19, %c0_26] : memref<1x342x128xbf16, #tpu.memory_space<vmem>>, vector<1x288x128xbf16>
    %29 = vector.shape_cast %28 : vector<1x288x128xbf16> to vector<288x128xbf16>
    %c4 = arith.constant 4 : index
    %c0_27 = arith.constant 0 : index
    %c0_28 = arith.constant 0 : index
    %30 = vector.load %arg3[%c4, %c0_27, %c0_28] : memref<9x128x32xbf16, #tpu.memory_space<vmem>>, vector<1x128x32xbf16>
    %31 = vector.shape_cast %30 : vector<1x128x32xbf16> to vector<128x32xbf16>
    %cst_29 = arith.constant dense<0.000000e+00> : vector<288x32xf32>
    %32 = tpu.matmul %29, %31, %cst_29 {dimension_numbers = #tpu.dot_dimension_numbers<[1], [0], [0], [1], [0, 0, 1, 1], [], []>} : vector<288x128xbf16>, vector<128x32xbf16>, vector<288x32xf32> -> vector<288x32xf32>
    %33 = arith.addf %27, %32 : vector<288x32xf32>
    %c0_30 = arith.constant 0 : index
    %c20 = arith.constant 20 : index
    %c0_31 = arith.constant 0 : index
    %34 = vector.load %arg2[%c0_30, %c20, %c0_31] : memref<1x342x128xbf16, #tpu.memory_space<vmem>>, vector<1x288x128xbf16>
    %35 = vector.shape_cast %34 : vector<1x288x128xbf16> to vector<288x128xbf16>
    %c5 = arith.constant 5 : index
    %c0_32 = arith.constant 0 : index
    %c0_33 = arith.constant 0 : index
    %36 = vector.load %arg3[%c5, %c0_32, %c0_33] : memref<9x128x32xbf16, #tpu.memory_space<vmem>>, vector<1x128x32xbf16>
    %37 = vector.shape_cast %36 : vector<1x128x32xbf16> to vector<128x32xbf16>
    %cst_34 = arith.constant dense<0.000000e+00> : vector<288x32xf32>
    %38 = tpu.matmul %35, %37, %cst_34 {dimension_numbers = #tpu.dot_dimension_numbers<[1], [0], [0], [1], [0, 0, 1, 1], [], []>} : vector<288x128xbf16>, vector<128x32xbf16>, vector<288x32xf32> -> vector<288x32xf32>
    %39 = arith.addf %33, %38 : vector<288x32xf32>
    %c0_35 = arith.constant 0 : index
    %c36 = arith.constant 36 : index
    %c0_36 = arith.constant 0 : index
    %40 = vector.load %arg2[%c0_35, %c36, %c0_36] : memref<1x342x128xbf16, #tpu.memory_space<vmem>>, vector<1x288x128xbf16>
    %41 = vector.shape_cast %40 : vector<1x288x128xbf16> to vector<288x128xbf16>
    %c6 = arith.constant 6 : index
    %c0_37 = arith.constant 0 : index
    %c0_38 = arith.constant 0 : index
    %42 = vector.load %arg3[%c6, %c0_37, %c0_38] : memref<9x128x32xbf16, #tpu.memory_space<vmem>>, vector<1x128x32xbf16>
    %43 = vector.shape_cast %42 : vector<1x128x32xbf16> to vector<128x32xbf16>
    %cst_39 = arith.constant dense<0.000000e+00> : vector<288x32xf32>
    %44 = tpu.matmul %41, %43, %cst_39 {dimension_numbers = #tpu.dot_dimension_numbers<[1], [0], [0], [1], [0, 0, 1, 1], [], []>} : vector<288x128xbf16>, vector<128x32xbf16>, vector<288x32xf32> -> vector<288x32xf32>
    %45 = arith.addf %39, %44 : vector<288x32xf32>
    %c0_40 = arith.constant 0 : index
    %c37 = arith.constant 37 : index
    %c0_41 = arith.constant 0 : index
    %46 = vector.load %arg2[%c0_40, %c37, %c0_41] : memref<1x342x128xbf16, #tpu.memory_space<vmem>>, vector<1x288x128xbf16>
    %47 = vector.shape_cast %46 : vector<1x288x128xbf16> to vector<288x128xbf16>
    %c7 = arith.constant 7 : index
    %c0_42 = arith.constant 0 : index
    %c0_43 = arith.constant 0 : index
    %48 = vector.load %arg3[%c7, %c0_42, %c0_43] : memref<9x128x32xbf16, #tpu.memory_space<vmem>>, vector<1x128x32xbf16>
    %49 = vector.shape_cast %48 : vector<1x128x32xbf16> to vector<128x32xbf16>
    %cst_44 = arith.constant dense<0.000000e+00> : vector<288x32xf32>
    %50 = tpu.matmul %47, %49, %cst_44 {dimension_numbers = #tpu.dot_dimension_numbers<[1], [0], [0], [1], [0, 0, 1, 1], [], []>} : vector<288x128xbf16>, vector<128x32xbf16>, vector<288x32xf32> -> vector<288x32xf32>
    %51 = arith.addf %45, %50 : vector<288x32xf32>
    %c0_45 = arith.constant 0 : index
    %c38 = arith.constant 38 : index
    %c0_46 = arith.constant 0 : index
    %52 = vector.load %arg2[%c0_45, %c38, %c0_46] : memref<1x342x128xbf16, #tpu.memory_space<vmem>>, vector<1x288x128xbf16>
    %53 = vector.shape_cast %52 : vector<1x288x128xbf16> to vector<288x128xbf16>
    %c8 = arith.constant 8 : index
    %c0_47 = arith.constant 0 : index
    %c0_48 = arith.constant 0 : index
    %54 = vector.load %arg3[%c8, %c0_47, %c0_48] : memref<9x128x32xbf16, #tpu.memory_space<vmem>>, vector<1x128x32xbf16>
    %55 = vector.shape_cast %54 : vector<1x128x32xbf16> to vector<128x32xbf16>
    %cst_49 = arith.constant dense<0.000000e+00> : vector<288x32xf32>
    %56 = tpu.matmul %53, %55, %cst_49 {dimension_numbers = #tpu.dot_dimension_numbers<[1], [0], [0], [1], [0, 0, 1, 1], [], []>} : vector<288x128xbf16>, vector<128x32xbf16>, vector<288x32xf32> -> vector<288x32xf32>
    %57 = arith.addf %51, %56 : vector<288x32xf32>
    %c0_50 = arith.constant 0 : index
    %c0_51 = arith.constant 0 : index
    %58 = vector.load %arg9[%c0_50, %c0_51] : memref<288x32xf32, #tpu.memory_space<vmem>>, vector<288x32xf32>
    tpu.vector_store %arg9[%c0_50, %c0_51], %57 {strides = array<i32>} : memref<288x32xf32, #tpu.memory_space<vmem>>, vector<288x32xf32>,
    %c1_i32 = arith.constant 1 : i32
    %59 = arith.cmpi eq, %arg1, %c1_i32 : i32
    %60 = arith.extui %59 : i1 to i32
    %c0_i32_52 = arith.constant 0 : i32
    %61 = arith.cmpi ne, %60, %c0_i32_52 : i32
    scf.if %61 {
      %c0_53 = arith.constant 0 : index
      %c0_54 = arith.constant 0 : index
      %62 = vector.load %arg9[%c0_53, %c0_54] : memref<288x32xf32, #tpu.memory_space<vmem>>, vector<288x32xf32>
      %c0_55 = arith.constant 0 : index
      %c0_56 = arith.constant 0 : index
      %63 = vector.load %arg4[%c0_55, %c0_56] : memref<1x32xf32, #tpu.memory_space<vmem>>, vector<1x32xf32>
      %64 = vector.broadcast %63 : vector<1x32xf32> to vector<288x32xf32>
      %65 = arith.mulf %62, %64 : vector<288x32xf32>
      %c0_57 = arith.constant 0 : index
      %c0_58 = arith.constant 0 : index
      %66 = vector.load %arg5[%c0_57, %c0_58] : memref<1x32xf32, #tpu.memory_space<vmem>>, vector<1x32xf32>
      %67 = vector.broadcast %66 : vector<1x32xf32> to vector<288x32xf32>
      %68 = arith.addf %65, %67 : vector<288x32xf32>
      %cst_59 = arith.constant 0.000000e+00 : f32
      %69 = vector.broadcast %cst_59 : f32 to vector<288x32xf32>
      %70 = arith.maximumf %68, %69 : vector<288x32xf32>
      %71 = arith.truncf %70 : vector<288x32xf32> to vector<288x32xbf16>
      %c0_60 = arith.constant 0 : index
      %c0_61 = arith.constant 0 : index
      %72 = vector.load %arg6[%c0_60, %c0_61] : memref<32x128xbf16, #tpu.memory_space<vmem>>, vector<32x128xbf16>
      %cst_62 = arith.constant dense<0.000000e+00> : vector<288x128xf32>
      %73 = tpu.matmul %71, %72, %cst_62 {dimension_numbers = #tpu.dot_dimension_numbers<[1], [0], [0], [1], [0, 0, 1, 1], [], []>} : vector<288x32xbf16>, vector<32x128xbf16>, vector<288x128xf32> -> vector<288x128xf32>
      %c0_63 = arith.constant 0 : index
      %c0_64 = arith.constant 0 : index
      %74 = vector.load %arg7[%c0_63, %c0_64] : memref<1x128xf32, #tpu.memory_space<vmem>>, vector<1x128xf32>
      %75 = vector.broadcast %74 : vector<1x128xf32> to vector<288x128xf32>
      %76 = arith.addf %73, %75 : vector<288x128xf32>
      %c0_65 = arith.constant 0 : index
      %c0_66 = arith.constant 0 : index
      %c0_67 = arith.constant 0 : index
      %77 = vector.load %arg8[%c0_65, %c0_66, %c0_67] : memref<1x288x128xf32, #tpu.memory_space<vmem>>, vector<1x288x128xf32>
      %78 = vector.shape_cast %77 : vector<1x288x128xf32> to vector<288x128xf32>
      %79 = vector.shape_cast %76 : vector<288x128xf32> to vector<1x288x128xf32>
      tpu.vector_store %arg8[%c0_65, %c0_66, %c0_67], %79 {strides = array<i32>} : memref<1x288x128xf32, #tpu.memory_space<vmem>>, vector<1x288x128xf32>,
    } else {
    }
    return
  }
  func.func @transform_0(%arg0: i32, %arg1: i32) -> (i32, i32, i32) {
    %c0_i32 = arith.constant 0 : i32
    %c0_i32_0 = arith.constant 0 : i32
    return %arg0, %c0_i32, %arg1 : i32, i32, i32
  }
  func.func @transform_1(%arg0: i32, %arg1: i32) -> (i32, i32, i32) {
    %c0_i32 = arith.constant 0 : i32
    %c0_i32_0 = arith.constant 0 : i32
    %c0_i32_1 = arith.constant 0 : i32
    return %c0_i32, %arg1, %c0_i32_0 : i32, i32, i32
  }
  func.func @transform_2(%arg0: i32, %arg1: i32) -> (i32, i32) {
    %c0_i32 = arith.constant 0 : i32
    %c0_i32_0 = arith.constant 0 : i32
    %c0_i32_1 = arith.constant 0 : i32
    return %c0_i32, %c0_i32_0 : i32, i32
  }
  func.func @transform_3(%arg0: i32, %arg1: i32) -> (i32, i32) {
    %c0_i32 = arith.constant 0 : i32
    %c0_i32_0 = arith.constant 0 : i32
    %c0_i32_1 = arith.constant 0 : i32
    return %c0_i32, %c0_i32_0 : i32, i32
  }
  func.func @transform_4(%arg0: i32, %arg1: i32) -> (i32, i32) {
    %c0_i32 = arith.constant 0 : i32
    %c0_i32_0 = arith.constant 0 : i32
    %c0_i32_1 = arith.constant 0 : i32
    return %c0_i32, %c0_i32_0 : i32, i32
  }
  func.func @transform_5(%arg0: i32, %arg1: i32) -> (i32, i32) {
    %c0_i32 = arith.constant 0 : i32
    %c0_i32_0 = arith.constant 0 : i32
    %c0_i32_1 = arith.constant 0 : i32
    return %c0_i32, %c0_i32_0 : i32, i32
  }
  func.func @transform_6(%arg0: i32, %arg1: i32) -> (i32, i32, i32) {
    %c0_i32 = arith.constant 0 : i32
    %c0_i32_0 = arith.constant 0 : i32
    %c0_i32_1 = arith.constant 0 : i32
    return %arg0, %c0_i32, %c0_i32_0 : i32, i32, i32
  }
}

</mosaic_0001>

<bundles_post_ra>
// kernel: squeeze.7
= control target key start
LH: loop header
LB: loop body
LE: loop exit
PB: predicated region body
PF: predicated region fallthrough
CT: control target
= control target key end

     0   :  { %vm146_vm0 = vcmask 261120   ;;  %s441_s0 = inlined_call_operand.vmem [shape: bf16[1,72,32], index: 0, kind: input, shape index: {}]   ;;  %s442_s1 = inlined_call_operand.vmem [shape: bf16[2,6,6,32], index: 1, kind: output, shape index: {}]  }
   0x1   :  { %v307_v0 = vld [vmem:[%s441_s0 + $0x20] sm:$0xf]  ;;  %v372_v1 = vld [vmem:[%s441_s0 + $0x18] sm:$0xff]   ;;  %v373_v2 = vld [vmem:[%s441_s0 + $0x10] sm:$0xff]  }
   0x2   :  { %v17_v3 = vunpack.c.l.bf16 %v307_v0  ;;  %v328_v4 = vunpack.c.l.bf16 %v372_v1  ;;  %v329_v5 = vunpack.c.h.bf16 %v372_v1  ;;  %v332_v6 = vunpack.c.l.bf16 %v373_v2  ;;  %v374_v7 = vld [vmem:[%s441_s0 + $0x8] sm:$0xff]   ;;  %v339_v8 = vld [vmem:[%s441_s0] sm:$0xff]  }
   0x3   :  { %v333_v9 = vunpack.c.h.bf16 %v373_v2  ;;  %v336_v10 = vunpack.c.l.bf16 %v374_v7  ;;  %v337_v11 = vunpack.c.h.bf16 %v374_v7  ;;  %v340_v12 = vunpack.c.l.bf16 %v339_v8 }
   0x4   :  { %v341_v13 = vunpack.c.h.bf16 %v339_v8  ;;  %175 = vst.msk [vmem:[#allocation0 + $0x2a] sm:$0xf] %vm146_vm0, %v332_v6   ;;  %177 = vst.msk [vmem:[#allocation0 + $0x2c] sm:$0xf0] %vm146_vm0, %v332_v6  }
   0x5   :  { %189 = vst.msk [vmem:[#allocation0 + $0x40] sm:$0x3f] %vm146_vm0, %v328_v4   ;;  %191 = vst.msk [vmem:[#allocation0 + $0x42] sm:$0xc0] %vm146_vm0, %v328_v4  }
   0x6   :  { %196 = vst.msk [vmem:[#allocation0 + $0x4a] sm:$0xf] %vm146_vm0, %v329_v5   ;;  %198 = vst.msk [vmem:[#allocation0 + $0x4c] sm:$0xf0] %vm146_vm0, %v329_v5  }
   0x7   :  { %203 = vst.msk [vmem:[#allocation0 + $0x54] sm:$0x3] %vm146_vm0, %v17_v3   ;;  %205 = vst.msk [vmem:[#allocation0 + $0x56] sm:$0xfc] %vm146_vm0, %v17_v3  }
   0x8   :  { %147 = vst.msk [vmem:[#allocation0] sm:$0x3f] %vm146_vm0, %v340_v12   ;;  %149 = vst.msk [vmem:[#allocation0 + $0x2] sm:$0xc0] %vm146_vm0, %v340_v12  }
   0x9   :  { %161 = vst.msk [vmem:[#allocation0 + $0x14] sm:$0x3] %vm146_vm0, %v336_v10   ;;  %163 = vst.msk [vmem:[#allocation0 + $0x16] sm:$0xfc] %vm146_vm0, %v336_v10  }
   0xa   :  { %168 = vst.msk [vmem:[#allocation0 + $0x20] sm:$0x3f] %vm146_vm0, %v337_v11   ;;  %170 = vst.msk [vmem:[#allocation0 + $0x22] sm:$0xc0] %vm146_vm0, %v337_v11  }
   0xb   :  { %182 = vst.msk [vmem:[#allocation0 + $0x34] sm:$0x3] %vm146_vm0, %v333_v9   ;;  %184 = vst.msk [vmem:[#allocation0 + $0x36] sm:$0xfc] %vm146_vm0, %v333_v9  }
   0xc   :  { %154 = vst.msk [vmem:[#allocation0 + $0xa] sm:$0xf] %vm146_vm0, %v341_v13   ;;  %156 = vst.msk [vmem:[#allocation0 + $0xc] sm:$0xf0] %vm146_vm0, %v341_v13   ;;  %v263_v14 = vld [vmem:[#allocation0 + $0x40] sm:$0xff] }
   0xd   :  { %v270_v15 = vld [vmem:[#allocation0 + $0x48] sm:$0xff] }
   0xe   :  { %v277_v16 = vld [vmem:[#allocation0 + $0x50] sm:$0xff]  ;;  %v365_v20 = vpack.c.bf16 %v270_v15, %v263_v14  ;;  %v284_v29 = vld [vmem:[#allocation0 + $0x58] sm:$0xff] }
   0xf   :  { %v210_v17 = vld [vmem:[#allocation0] sm:$0xff]  ;;  %v370_v31 = vpack.c.bf16 %v284_v29, %v277_v16 }
  0x10   :  { %v228_v18 = vld [vmem:[#allocation0 + $0x18] sm:$0xff]  ;;  %378 = vst [vmem:[%s442_s1 + $0x20] sm:$0xff] %v365_v20  }
  0x11   :  { %v235_v19 = vld [vmem:[#allocation0 + $0x20] sm:$0xff]  ;;  %v242_v23 = vld [vmem:[#allocation0 + $0x28] sm:$0xff]  ;;  %379 = vst [vmem:[%s442_s1 + $0x28] sm:$0xff] %v370_v31  }
  0x12   :  { %v355_v26 = vpack.c.bf16 %v242_v23, %v235_v19  ;;  %v249_v27 = vld [vmem:[#allocation0 + $0x30] sm:$0xff]  ;;  %v256_v28 = vld [vmem:[#allocation0 + $0x38] sm:$0xff] }
  0x13   :  { %v215_v21 = vld [vmem:[#allocation0 + $0x8] sm:$0xff]  ;;  %v221_v22 = vld [vmem:[#allocation0 + $0x10] sm:$0xff]  ;;  %v360_v30 = vpack.c.bf16 %v256_v28, %v249_v27 }
  0x14   :  { %v345_v24 = vpack.c.bf16 %v215_v21, %v210_v17  ;;  %v350_v25 = vpack.c.bf16 %v228_v18, %v221_v22  ;;  %376 = vst [vmem:[%s442_s1 + $0x10] sm:$0xff] %v355_v26  }
  0x15   :  { %377 = vst [vmem:[%s442_s1 + $0x18] sm:$0xff] %v360_v30  }
  0x16   :  { %346 = vst [vmem:[%s442_s1] sm:$0xff] %v345_v24   ;;  %375 = vst [vmem:[%s442_s1 + $0x8] sm:$0xff] %v350_v25  }

// kernel: squeeze.6
= control target key start
LH: loop header
LB: loop body
LE: loop exit
PB: predicated region body
PF: predicated region fallthrough
CT: control target
= control target key end

     0   :  { %vm50_vm0 = vcmask 261120   ;;  %v131_v8 = vmov 0.0   ;;  %s166_s0 = inlined_call_operand.vmem [shape: bf16[1,18,32], index: 0, kind: input, shape index: {}]   ;;  %s167_s1 = inlined_call_operand.vmem [shape: bf16[2,3,3,32], index: 1, kind: output, shape index: {}]  }
   0x1   :  { %v119_v0 = vld [vmem:[%s166_s0 + $0x8] sm:$0xf]  ;;  %v127_v1 = vld [vmem:[%s166_s0] sm:$0xff]  }
   0x2   :  { %v17_v2 = vunpack.c.l.bf16 %v119_v0  ;;  %v128_v3 = vunpack.c.l.bf16 %v127_v1  ;;  %v129_v4 = vunpack.c.h.bf16 %v127_v1 }
   0x4   :  { %20 = vst [vmem:[#allocation1 + $0x10] sm:$0xff] %v17_v2  ;;  %51 = vst.msk [vmem:[#allocation0] sm:$0x7] %vm50_vm0, %v128_v3  }
   0x5   :  { %53 = vst.msk [vmem:[#allocation0 + $0x5] sm:$0x38] %vm50_vm0, %v128_v3   ;;  %55 = vst.msk [vmem:[#allocation0 + $0xa] sm:$0xc0] %vm50_vm0, %v128_v3  }
   0x6   :  { %60 = vst.msk [vmem:[#allocation0 + $0x12] ss:$6 sm:$0x3] %vm50_vm0, %v129_v4   ;;  %62 = vst.msk [vmem:[#allocation0 + $0x17] sm:$0xc] %vm50_vm0, %v129_v4  }
   0x7   :  { %64 = vst.msk [vmem:[#allocation0 + $0x1c] sm:$0x70] %vm50_vm0, %v129_v4   ;;  %66 = vst.msk [vmem:[#allocation0 + $0x21] sm:$0x80] %vm50_vm0, %v129_v4  }
   0xb   :  { %v68_v5 = vld [vmem:[#allocation1 + $0x10] sm:$0x3]  }
   0xc   :  { %v76_v6 = vld [vmem:[#allocation0] sm:$0xf]  ;;  %v81_v7 = vld [vmem:[#allocation0 + $0x8] sm:$0xf]  ;;  %71 = vst.msk [vmem:[#allocation0 + $0x29] sm:$0x3] %vm50_vm0, %v68_v5  }
   0xd   :  { %v77_v9 = vpack.c.bf16 %v131_v8, %v76_v6  ;;  %v82_v10 = vpack.c.bf16 %v131_v8, %v81_v7  ;;  %v87_v11 = vld [vmem:[#allocation0 + $0x10] sm:$0xf]  ;;  %v94_v12 = vld [vmem:[#allocation0 + $0x18] sm:$0xf] }
   0xe   :  { %v101_v13 = vld [vmem:[#allocation0 + $0x20] sm:$0xf]  ;;  %v88_v14 = vpack.c.bf16 %v131_v8, %v87_v11  ;;  %v95_v15 = vpack.c.bf16 %v131_v8, %v94_v12 }
   0xf   :  { %v102_v16 = vpack.c.bf16 %v131_v8, %v101_v13  ;;  %79 = vst [vmem:[%s167_s1] sm:$0x3] %v77_v9  ;;  %121 = vst [vmem:[%s167_s1 + $0x2] sm:$0x3] %v82_v10 }
  0x10   :  { %122 = vst [vmem:[%s167_s1 + $0x4] sm:$0x3] %v88_v14  ;;  %123 = vst [vmem:[%s167_s1 + $0x6] sm:$0x3] %v95_v15 }
  0x11   :  { %124 = vst [vmem:[%s167_s1 + $0x8] sm:$0x3] %v102_v16 }
  0x13   :  { %v108_v17 = vld [vmem:[#allocation0 + $0x28] sm:$0xf] }
  0x14   :  { %v109_v18 = vpack.c.bf16 %v131_v8, %v108_v17 }
  0x16   :  { %125 = vst [vmem:[%s167_s1 + $0xa] sm:$0x3] %v109_v18 }

// kernel: psp_head_forward.2
= control target key start
LH: loop header
LB: loop body
LE: loop exit
PB: predicated region body
PF: predicated region fallthrough
CT: control target
= control target key end

     0   :  { %s716_s15 = smov 0   ;;  %s793_s0 = inlined_call_operand.vmem [shape: bf16[4,80,128], index: 0, kind: input, shape index: {}]   ;;  %s794_s1 = inlined_call_operand.vmem [shape: bf16[4,128,32], index: 1, kind: input, shape index: {}]   ;;  %s795_s2 = inlined_call_operand.vmem [shape: f32[4,1,32], index: 2, kind: input, shape index: {}]   ;;  %s796_s3 = inlined_call_operand.vmem [shape: f32[4,1,32], index: 3, kind: input, shape index: {}]   ;;  %s797_s4 = inlined_call_operand.vmem [shape: f32[4,80,32], index: 4, kind: output, shape index: {}]  }
   0x1 LB: > { %s564_s16 = sadd.s32 4294967295, %s687_s15   ;;  %p568_p0 = scmp.ge.s32.totalorder %s687_s15, 1  ;;  %s687_s15 = sphi %s716_s15, %s14_s15  }
   0x2   : > { %p188_p1 = scmp.lt.s32.totalorder %s687_s15, 5 }
   0x4   : > { %p189_p2 = pnand %p568_p0, %p188_p1 }
   0x5   : > { %p225_p3 = scmp.lt.s32.totalorder (!%p189_p2), %s564_s16, 3  ;;  %v689_v0 = vmov (!%p189_p2), 0.0   ;;  %vm690_vm0 = vmmov (!%p189_p2), 0   ;;  %vm468_vm1 = vcmask (!%p189_p2), 261120  }
   0x6   : > { %192 = sbr.rel (%p189_p2) target bundleno = 285 (0x11d), region = 36  ;;  %604 = vmatprep.subr.bf16.mxu0 (!%p189_p2), %v689_v0  ;;  %640 = vmatprep.subr.bf16.mxu1 (!%p189_p2), %v689_v0 }
   0x7   : > { %620 = vmatprep.mubr.msk.bf16.mxu0 (!%p189_p2), %vm690_vm0, %v689_v0  ;;  %632 = vmatprep.mubr.msk.bf16.mxu1 (!%p189_p2), %vm690_vm0, %v689_v0 }
   0xd   : > { %s799_s16 = smov (!%p225_p3, %s564_s16), 3 }
   0xe   : > { %s590_s17 = sshll.u32 %s799_s16, 6  ;;  %s656_s21 = smul.u32 40, %s799_s16 }
   0xf   : > { %s732_s20 = scalar_lea.vmem %s794_s1, %s590_s17  ;;  %s237_s27 = scalar_lea.vmem %s795_s2, %s799_s16 }
  0x10   : > { %v668_v1 = vld [vmem:[%s732_s20] sm:$0xff]   ;;  %v669_v2 = vld [vmem:[%s732_s20 + $0x8] sm:$0xff]   ;;  %v670_v3 = vld [vmem:[%s732_s20 + $0x10] sm:$0xff]   ;;  %s741_s24 = scalar_lea.vmem %s793_s0, %s656_s21  ;;  %s240_s30 = scalar_lea.vmem %s796_s3, %s799_s16 }
  0x11   : > { %605 = vmatpush3.bf16.msra.mxu0 %v668_v1  ;;  %648 = vmatpush3.bf16.msra.mxu1 %v668_v1  ;;  %v671_v4 = vld [vmem:[%s732_s20 + $0x18] sm:$0xff]   ;;  %v672_v5 = vld [vmem:[%s732_s20 + $0x20] sm:$0xff]   ;;  %v673_v6 = vld [vmem:[%s732_s20 + $0x28] sm:$0xff]   ;;  %s657_s5 = smul.u32 80, %s799_s16 }
  0x12   : > { %606 = vmatprep.subr.bf16.mxu0 %v689_v0  ;;  %641 = vmatprep.subr.bf16.mxu1 %v689_v0  ;;  %v674_v7 = vld [vmem:[%s732_s20 + $0x30] sm:$0xff]   ;;  %v675_v8 = vld [vmem:[%s732_s20 + $0x38] sm:$0xff]   ;;  %v676_v9 = vld [vmem:[%s741_s24] sm:$0xff]  }
  0x13   : > { %v677_v10 = vld [vmem:[%s741_s24 + $0x18] sm:$0xff]   ;;  %v678_v11 = vld [vmem:[%s741_s24 + $0x8] sm:$0xff]   ;;  %v679_v12 = vld [vmem:[%s741_s24 + $0x20] sm:$0xff]   ;;  %s768_s8 = scalar_lea.vmem %s797_s4, %s657_s5 }
  0x14   : > { %v680_v13 = vld [vmem:[%s741_s24 + $0x10] sm:$0xff]   ;;  %v586_v14 = vld [vmem:[%s237_s27] ss:$0 sm:$0xff] }
  0x15   : > { %607 = vmatpush3.bf16.msra.mxu0 %v669_v2  ;;  %649 = vmatpush3.bf16.msra.mxu1 %v669_v2  ;;  %v587_v16 = vld [vmem:[%s240_s30] ss:$0 sm:$0xff] }
  0x16   : > { %608 = vmatprep.subr.bf16.mxu0 %v689_v0  ;;  %642 = vmatprep.subr.bf16.mxu1 %v689_v0 }
  0x19   : > { %609 = vmatpush3.bf16.msra.mxu0 %v670_v3  ;;  %650 = vmatpush3.bf16.msra.mxu1 %v670_v3 }
  0x1a   : > { %610 = vmatprep.subr.bf16.mxu0 %v689_v0  ;;  %643 = vmatprep.subr.bf16.mxu1 %v689_v0 }
  0x1d   : > { %611 = vmatpush3.bf16.msra.mxu0 %v671_v4  ;;  %651 = vmatpush3.bf16.msra.mxu1 %v671_v4 }
  0x1e   : > { %612 = vmatprep.subr.bf16.mxu0 %v689_v0  ;;  %644 = vmatprep.subr.bf16.mxu1 %v689_v0 }
  0x21   : > { %613 = vmatpush3.bf16.msra.mxu0 %v672_v5  ;;  %652 = vmatpush3.bf16.msra.mxu1 %v672_v5 }
  0x22   : > { %614 = vmatprep.subr.bf16.mxu0 %v689_v0  ;;  %645 = vmatprep.subr.bf16.mxu1 %v689_v0 }
  0x25   : > { %615 = vmatpush3.bf16.msra.mxu0 %v673_v6  ;;  %653 = vmatpush3.bf16.msra.mxu1 %v673_v6 }
  0x26   : > { %616 = vmatprep.subr.bf16.mxu0 %v689_v0  ;;  %646 = vmatprep.subr.bf16.mxu1 %v689_v0 }
  0x29   : > { %617 = vmatpush3.bf16.msra.mxu0 %v674_v7  ;;  %654 = vmatpush3.bf16.msra.mxu1 %v674_v7 }
  0x2a   : > { %618 = vmatprep.subr.bf16.mxu0 %v689_v0  ;;  %647 = vmatprep.subr.bf16.mxu1 %v689_v0 }
  0x2d   : > { %619 = vmatpush3.bf16.msra.mxu0 %v675_v8  ;;  %655 = vmatpush3.bf16.msra.mxu1 %v675_v8 }
  0x30   : > { %621 = vmatmul.mubr.bf16.vlgmr.msra.gmra.mrb[0].mxu0 %v676_v9  ;;  %633 = vmatmul.mubr.bf16.vlgmr.msra.gmra.mrb[0].mxu1 %v677_v10 }
  0x31   : > { %624 = vmatprep.mubr.msk.bf16.mxu0 %vm690_vm0, %v689_v0  ;;  %636 = vmatprep.mubr.msk.bf16.mxu1 %vm690_vm0, %v689_v0 }
  0x38   : > { %625 = vmatmul.mubr.bf16.gmra.mrb[4].mxu0 %v678_v11  ;;  %637 = vmatmul.mubr.bf16.gmra.mrb[4].mxu1 %v679_v12 }
  0x39   : > { %628 = vmatprep.mubr.msk.bf16.mxu0 %vm690_vm0, %v689_v0 }
  0x40   : > { %629 = vmatmul.mubr.bf16.gmra.mrb[8].mxu0 %v680_v13 }
 0x103   : > { %v385_v15 = vpop.f32.mrb[0].mxu0  ;;  %v409_v17 = vpop.f32.mrb[0].mxu1 }
 0x104   : > { %v431_v18 = vmul.f32 %v586_v14, %v385_v15  ;;  %v622_v19 = vpop.f32.mrb[1].mxu0  ;;  %v437_v20 = vmul.f32 %v586_v14, %v409_v17  ;;  %v634_v21 = vpop.f32.mrb[1].mxu1 }
 0x105   : > { %v388_v22 = vpop.f32.mrb[2].mxu0  ;;  %v412_v23 = vpop.f32.mrb[2].mxu1 }
 0x106   : > { %v448_v24 = vadd.f32 %v587_v16, %v431_v18  ;;  %v432_v25 = vmul.f32 %v586_v14, %v388_v22  ;;  %v623_v26 = vpop.f32.mrb[3].mxu0  ;;  %v454_v27 = vadd.f32 %v587_v16, %v437_v20  ;;  %v438_v28 = vmul.f32 %v586_v14, %v412_v23  ;;  %v635_v29 = vpop.f32.mrb[3].mxu1 }
 0x108   : > { %v458_v30 = vmax.f32 %v448_v24, 0.0  ;;  %v449_v31 = vadd.f32 %v587_v16, %v432_v25  ;;  %v464_v32 = vmax.f32 %v454_v27, 0.0  ;;  %v455_v33 = vadd.f32 %v587_v16, %v438_v28 }
 0x10a   : > { %469 = vst.msk [vmem:[%s768_s8] sm:$0xff] %vm468_vm1, %v458_v30  ;;  %v459_v34 = vmax.f32 %v449_v31, 0.0  ;;  %475 = vst.msk [vmem:[%s768_s8 + $0x30] sm:$0xff] %vm468_vm1, %v464_v32  ;;  %v465_v35 = vmax.f32 %v455_v33, 0.0 }
 0x10b   : > { %v393_v36 = vpop.f32.mrb[4].mxu0  ;;  %v417_v37 = vpop.f32.mrb[4].mxu1 }
 0x10c   : > { %470 = vst.msk [vmem:[%s768_s8 + $0x8] sm:$0xff] %vm468_vm1, %v459_v34  ;;  %476 = vst.msk [vmem:[%s768_s8 + $0x38] sm:$0xff] %vm468_vm1, %v465_v35  ;;  %v433_v38 = vmul.f32 %v586_v14, %v393_v36  ;;  %v626_v39 = vpop.f32.mrb[5].mxu0  ;;  %v439_v40 = vmul.f32 %v586_v14, %v417_v37  ;;  %v638_v41 = vpop.f32.mrb[5].mxu1 }
 0x10d   : > { %v396_v42 = vpop.f32.mrb[6].mxu0  ;;  %v420_v43 = vpop.f32.mrb[6].mxu1 }
 0x10e   : > { %v450_v44 = vadd.f32 %v587_v16, %v433_v38  ;;  %v434_v45 = vmul.f32 %v586_v14, %v396_v42  ;;  %v627_v46 = vpop.f32.mrb[7].mxu0  ;;  %v456_v47 = vadd.f32 %v587_v16, %v439_v40  ;;  %v440_v48 = vmul.f32 %v586_v14, %v420_v43  ;;  %v639_v49 = vpop.f32.mrb[7].mxu1 }
 0x110   : > { %v460_v50 = vmax.f32 %v450_v44, 0.0  ;;  %v451_v51 = vadd.f32 %v587_v16, %v434_v45  ;;  %v466_v52 = vmax.f32 %v456_v47, 0.0  ;;  %v457_v53 = vadd.f32 %v587_v16, %v440_v48 }
 0x112   : > { %471 = vst.msk [vmem:[%s768_s8 + $0x10] sm:$0xff] %vm468_vm1, %v460_v50  ;;  %v461_v54 = vmax.f32 %v451_v51, 0.0  ;;  %477 = vst.msk [vmem:[%s768_s8 + $0x40] sm:$0xff] %vm468_vm1, %v466_v52  ;;  %v467_v55 = vmax.f32 %v457_v53, 0.0 }
 0x113   : > { %v401_v56 = vpop.f32.mrb[8].mxu0 }
 0x114   : > { %472 = vst.msk [vmem:[%s768_s8 + $0x18] sm:$0xff] %vm468_vm1, %v461_v54  ;;  %478 = vst.msk [vmem:[%s768_s8 + $0x48] sm:$0xff] %vm468_vm1, %v467_v55  ;;  %v435_v57 = vmul.f32 %v586_v14, %v401_v56  ;;  %v630_v58 = vpop.f32.mrb[9].mxu0 }
 0x115   : > { %v404_v59 = vpop.f32.mrb[10].mxu0 }
 0x116   : > { %v452_v60 = vadd.f32 %v587_v16, %v435_v57  ;;  %v436_v61 = vmul.f32 %v586_v14, %v404_v59  ;;  %v631_v62 = vpop.f32.mrb[11].mxu0 }
 0x118   : > { %v462_v63 = vmax.f32 %v452_v60, 0.0  ;;  %v453_v0 = vadd.f32 %v587_v16, %v436_v61 }
 0x11a   : > { %473 = vst.msk [vmem:[%s768_s8 + $0x20] sm:$0xff] %vm468_vm1, %v462_v63  ;;  %v463_v1 = vmax.f32 %v453_v0, 0.0 }
 0x11c   : > { %474 = vst.msk [vmem:[%s768_s8 + $0x28] sm:$0xff] %vm468_vm1, %v463_v1 }
 0x11d PF: > { %s14_s15 = sadd.s32 1, %s687_s15  }
 0x11e   : > { %p11_p4 = scmp.ge.s32.totalorder %s14_s15, 6  }
 0x120   :  { %13 = sbr.rel (!%p11_p4) target bundleno = 1 (0x1), region = 75 }

// kernel: psp_head_forward.3
= control target key start
LH: loop header
LB: loop body
LE: loop exit
PB: predicated region body
PF: predicated region fallthrough
CT: control target
= control target key end

     0   :  { %s7460_s21 = smov 0   ;;  %s7462_s22 = smov 0   ;;  %s8843_s0 = inlined_call_operand.vmem [shape: bf16[2,342,256], index: 0, kind: input, shape index: {}]   ;;  %s8844_s1 = inlined_call_operand.vmem [shape: bf16[9,256,32], index: 1, kind: input, shape index: {}]   ;;  %s8845_s2 = inlined_call_operand.vmem [shape: f32[1,32], index: 2, kind: input, shape index: {}]   ;;  %s8846_s3 = inlined_call_operand.vmem [shape: f32[1,32], index: 3, kind: input, shape index: {}]   ;;  %s8847_s4 = inlined_call_operand.vmem [shape: bf16[32,128], index: 4, kind: input, shape index: {}]   ;;  %s8848_s5 = inlined_call_operand.vmem [shape: f32[1,128], index: 5, kind: input, shape index: {}]   ;;  %s8849_s6 = inlined_call_operand.vmem [shape: f32[2,288,128], index: 6, kind: output, shape index: {}]  }
   0x1   :  { %s7464_s23 = smov 0   ;;  %s7466_s24 = smov 0  }
   0x2   :  { %s7468_s25 = smov 0   ;;  %s7470_s26 = smov 0  }
   0x3   :  { %s7472_s27 = smov 0   ;;  %s7474_s28 = smov 0  }
   0x4   :  { %s7476_s29 = smov 0  }
   0x5 LB: > { %s25_s30 = sadd.s32 1, %s7414_s27  ;;  %s28_s7 = sadd.s32 1, %s7418_s28  ;;  %s7422_s29 = sphi %s7476_s29, %s16_s29   ;;  %s7418_s28 = sphi %s7474_s28, %s8862_s28   ;;  %s7414_s27 = sphi %s7472_s27, %s8861_s27   ;;  %s7410_s26 = sphi %s7470_s26, %s8860_s26   ;;  %s7406_s25 = sphi %s7468_s25, %s8859_s25   ;;  %s7402_s24 = sphi %s7466_s24, %s8858_s24   ;;  %s7398_s23 = sphi %s7464_s23, %s8857_s23   ;;  %s7394_s22 = sphi %s7462_s22, %s8856_s22   ;;  %s7390_s21 = sphi %s7460_s21, %s8855_s21  }
   0x6   : > { %p26_p0 = scmp.ge.s32.totalorder %s25_s30, 2  ;;  %p44_p1 = scmp.ne.s32.totalorder %s7402_s24, %s7398_s23 }
   0x7   : > { %p45_p2 = scmp.eq.s32.totalorder %s7422_s29, 0  ;;  %s63_s10 = sadd.s32 1, %s7394_s22 }
   0x8   : > { %s8864_s30 = smov (%p26_p0, %s25_s30), 0  ;;  %s8866_s7 = smov (!%p26_p0, %s28_s7), %s7418_s28 }
   0x9   : > { %s33_s8 = ssub.s32 %s7414_s27, %s8864_s30  ;;  %p7515_p3 = por %p45_p2, %p44_p1 }
   0xa   : > { %p30_p4 = scmp.ge.s32.totalorder %s8866_s7, 2  ;;  %p61_p5 = scmp.eq.s32.totalorder %s33_s8, 0 }
   0xb   : > { %p70_p6 = scmp.ne.s32.totalorder %s7394_s22, %s7390_s21  ;;  %s37_s15 = sadd.s32 1, %s7402_s24 }
   0xc   : > { %s8868_s7 = smov (%p30_p4, %s8866_s7), 0  ;;  %p5670_p9 = scmp.ge.s32.totalorder %s7422_s29, 4 }
   0xd   : > { %8852 = sst [smem:[#allocation5_spill]] %s8868_s7  ;;  %s32_s12 = ssub.s32 %s7418_s28, %s8868_s7 }
   0xe   : > { %s7525_s11 = scalar_select %p61_p5, %s7394_s22, %s63_s10  }
   0xf   : > { %p7529_p7 = por %p70_p6, %p45_p2  ;;  %s34_s14 = sor.u32 %s33_s8, %s32_s12 }
  0x10   : > { %p35_p8 = scmp.eq.s32.totalorder %s34_s14, 0  ;;  %218 = sbr.rel (%p5670_p9) target bundleno = 99 (0x63), region = 32 }
  0x12   : > { %s7535_s16 = scalar_select %p35_p8, %s7402_s24, %s37_s15  }
  0x17   : > { %221 = sbr.rel (!%p7515_p3) target bundleno = 58 (0x3a), region = 36  ;;  %s223_s17 = sand.u32 (%p7515_p3), 1, %s7402_s24  }
  0x18   : > { %s7091_s18 = smul.u32 (%p7515_p3), 86, %s7418_s28 }
  0x19   : > { %s7090_s19 = smul.u32 (%p7515_p3), 172, %s223_s17 }
  0x1a   : > { %s227_s20 = sadd.s32 (%p7515_p3), %s7414_s27, %s7091_s18 }
  0x1b   : > { %s5671_s10 = sshll.u32 (%p7515_p3), %s227_s20, 2  ;;  %s7551_s9 = scalar_lea.vmem (%p7515_p3), [#allocation3], %s7090_s19 }
  0x1c   : > { %s7546_s12 = scalar_lea.vmem (%p7515_p3), %s8843_s0, %s5671_s10 }
  0x1d   : > { %v245_v0 = vld [vmem:[%s7546_s12] sm:$0xf] (%p7515_p3)  ;;  %v247_v1 = vld [vmem:[%s7546_s12 + $0x8] sm:$0xf] (%p7515_p3)  ;;  %v249_v2 = vld [vmem:[%s7546_s12 + $0x10] sm:$0xf] (%p7515_p3) }
  0x1e   : > { %246 = vst [vmem:[%s7551_s9] sm:$0xf] %v245_v0  ;;  %248 = vst [vmem:[%s7551_s9 + $0x4] sm:$0xf] %v247_v1  ;;  %v251_v3 = vld [vmem:[%s7546_s12 + $0x18] sm:$0xf] }
  0x1f   : > { %250 = vst [vmem:[%s7551_s9 + $0x8] sm:$0xf] %v249_v2  ;;  %v253_v4 = vld [vmem:[%s7546_s12 + $0x20] sm:$0xf]  ;;  %v255_v5 = vld [vmem:[%s7546_s12 + $0x28] sm:$0xf] }
  0x20   : > { %252 = vst [vmem:[%s7551_s9 + $0xc] sm:$0xf] %v251_v3  ;;  %254 = vst [vmem:[%s7551_s9 + $0x10] sm:$0xf] %v253_v4  ;;  %v257_v6 = vld [vmem:[%s7546_s12 + $0x30] sm:$0xf] }
  0x21   : > { %256 = vst [vmem:[%s7551_s9 + $0x14] sm:$0xf] %v255_v5  ;;  %v259_v7 = vld [vmem:[%s7546_s12 + $0x38] sm:$0xf]  ;;  %v261_v8 = vld [vmem:[%s7546_s12 + $0x40] sm:$0xf] }
  0x22   : > { %258 = vst [vmem:[%s7551_s9 + $0x18] sm:$0xf] %v257_v6  ;;  %260 = vst [vmem:[%s7551_s9 + $0x1c] sm:$0xf] %v259_v7  ;;  %v263_v9 = vld [vmem:[%s7546_s12 + $0x48] sm:$0xf] }
  0x23   : > { %262 = vst [vmem:[%s7551_s9 + $0x20] sm:$0xf] %v261_v8  ;;  %v265_v10 = vld [vmem:[%s7546_s12 + $0x50] sm:$0xf]  ;;  %v267_v11 = vld [vmem:[%s7546_s12 + $0x58] sm:$0xf] }
  0x24   : > { %264 = vst [vmem:[%s7551_s9 + $0x24] sm:$0xf] %v263_v9  ;;  %266 = vst [vmem:[%s7551_s9 + $0x28] sm:$0xf] %v265_v10  ;;  %v269_v12 = vld [vmem:[%s7546_s12 + $0x60] sm:$0xf] }
  0x25   : > { %268 = vst [vmem:[%s7551_s9 + $0x2c] sm:$0xf] %v267_v11  ;;  %v271_v13 = vld [vmem:[%s7546_s12 + $0x68] sm:$0xf]  ;;  %v273_v14 = vld [vmem:[%s7546_s12 + $0x70] sm:$0xf] }
  0x26   : > { %270 = vst [vmem:[%s7551_s9 + $0x30] sm:$0xf] %v269_v12  ;;  %272 = vst [vmem:[%s7551_s9 + $0x34] sm:$0xf] %v271_v13  ;;  %v275_v15 = vld [vmem:[%s7546_s12 + $0x78] sm:$0xf] }
  0x27   : > { %274 = vst [vmem:[%s7551_s9 + $0x38] sm:$0xf] %v273_v14  ;;  %v277_v16 = vld [vmem:[%s7546_s12 + $0x80] sm:$0xf]  ;;  %v279_v17 = vld [vmem:[%s7546_s12 + $0x88] sm:$0xf] }
  0x28   : > { %276 = vst [vmem:[%s7551_s9 + $0x3c] sm:$0xf] %v275_v15  ;;  %278 = vst [vmem:[%s7551_s9 + $0x40] sm:$0xf] %v277_v16  ;;  %v281_v18 = vld [vmem:[%s7546_s12 + $0x90] sm:$0xf] }
  0x29   : > { %280 = vst [vmem:[%s7551_s9 + $0x44] sm:$0xf] %v279_v17  ;;  %v283_v19 = vld [vmem:[%s7546_s12 + $0x98] sm:$0xf]  ;;  %v285_v20 = vld [vmem:[%s7546_s12 + $0xa0] sm:$0xf] }
  0x2a   : > { %282 = vst [vmem:[%s7551_s9 + $0x48] sm:$0xf] %v281_v18  ;;  %284 = vst [vmem:[%s7551_s9 + $0x4c] sm:$0xf] %v283_v19  ;;  %v287_v21 = vld [vmem:[%s7546_s12 + $0xa8] sm:$0xf] }
  0x2b   : > { %286 = vst [vmem:[%s7551_s9 + $0x50] sm:$0xf] %v285_v20  ;;  %v289_v22 = vld [vmem:[%s7546_s12 + $0xb0] sm:$0xf]  ;;  %v291_v23 = vld [vmem:[%s7546_s12 + $0xb8] sm:$0xf] }
  0x2c   : > { %288 = vst [vmem:[%s7551_s9 + $0x54] sm:$0xf] %v287_v21  ;;  %290 = vst [vmem:[%s7551_s9 + $0x58] sm:$0xf] %v289_v22  ;;  %v293_v24 = vld [vmem:[%s7546_s12 + $0xc0] sm:$0xf] }
  0x2d   : > { %292 = vst [vmem:[%s7551_s9 + $0x5c] sm:$0xf] %v291_v23  ;;  %v295_v25 = vld [vmem:[%s7546_s12 + $0xc8] sm:$0xf]  ;;  %v297_v26 = vld [vmem:[%s7546_s12 + $0xd0] sm:$0xf] }
  0x2e   : > { %294 = vst [vmem:[%s7551_s9 + $0x60] sm:$0xf] %v293_v24  ;;  %296 = vst [vmem:[%s7551_s9 + $0x64] sm:$0xf] %v295_v25  ;;  %v299_v27 = vld [vmem:[%s7546_s12 + $0xd8] sm:$0xf] }
  0x2f   : > { %298 = vst [vmem:[%s7551_s9 + $0x68] sm:$0xf] %v297_v26  ;;  %v301_v28 = vld [vmem:[%s7546_s12 + $0xe0] sm:$0xf]  ;;  %v303_v29 = vld [vmem:[%s7546_s12 + $0xe8] sm:$0xf] }
  0x30   : > { %300 = vst [vmem:[%s7551_s9 + $0x6c] sm:$0xf] %v299_v27  ;;  %302 = vst [vmem:[%s7551_s9 + $0x70] sm:$0xf] %v301_v28  ;;  %v305_v30 = vld [vmem:[%s7546_s12 + $0xf0] sm:$0xf] }
  0x31   : > { %304 = vst [vmem:[%s7551_s9 + $0x74] sm:$0xf] %v303_v29  ;;  %v307_v31 = vld [vmem:[%s7546_s12 + $0xf8] sm:$0xf]  ;;  %v309_v32 = vld [vmem:[%s7546_s12 + $0x100] sm:$0xf] }
  0x32   : > { %306 = vst [vmem:[%s7551_s9 + $0x78] sm:$0xf] %v305_v30  ;;  %308 = vst [vmem:[%s7551_s9 + $0x7c] sm:$0xf] %v307_v31  ;;  %v311_v33 = vld [vmem:[%s7546_s12 + $0x108] sm:$0xf] }
  0x33   : > { %310 = vst [vmem:[%s7551_s9 + $0x80] sm:$0xf] %v309_v32  ;;  %v313_v34 = vld [vmem:[%s7546_s12 + $0x110] sm:$0xf]  ;;  %v315_v35 = vld [vmem:[%s7546_s12 + $0x118] sm:$0xf] }
  0x34   : > { %312 = vst [vmem:[%s7551_s9 + $0x84] sm:$0xf] %v311_v33  ;;  %314 = vst [vmem:[%s7551_s9 + $0x88] sm:$0xf] %v313_v34  ;;  %v317_v36 = vld [vmem:[%s7546_s12 + $0x120] sm:$0xf] }
  0x35   : > { %316 = vst [vmem:[%s7551_s9 + $0x8c] sm:$0xf] %v315_v35  ;;  %v319_v37 = vld [vmem:[%s7546_s12 + $0x128] sm:$0xf]  ;;  %v321_v38 = vld [vmem:[%s7546_s12 + $0x130] sm:$0xf] }
  0x36   : > { %318 = vst [vmem:[%s7551_s9 + $0x90] sm:$0xf] %v317_v36  ;;  %320 = vst [vmem:[%s7551_s9 + $0x94] sm:$0xf] %v319_v37  ;;  %v323_v39 = vld [vmem:[%s7546_s12 + $0x138] sm:$0xf] }
  0x37   : > { %322 = vst [vmem:[%s7551_s9 + $0x98] sm:$0xf] %v321_v38  ;;  %v325_v40 = vld [vmem:[%s7546_s12 + $0x140] sm:$0xf]  ;;  %v327_v41 = vld [vmem:[%s7546_s12 + $0x148] sm:$0xf] }
  0x38   : > { %324 = vst [vmem:[%s7551_s9 + $0x9c] sm:$0xf] %v323_v39  ;;  %326 = vst [vmem:[%s7551_s9 + $0xa0] sm:$0xf] %v325_v40  ;;  %v329_v42 = vld [vmem:[%s7546_s12 + $0x150] sm:$0xf] }
  0x39   : > { %328 = vst [vmem:[%s7551_s9 + $0xa4] sm:$0xf] %v327_v41  ;;  %330 = vst [vmem:[%s7551_s9 + $0xa8] sm:$0xf] %v329_v42 }
  0x3a PF: > { %439 = sbr.rel (!%p7529_p7) target bundleno = 99 (0x63), region = 77  ;;  %s441_s7 = sand.u32 (%p7529_p7), 1, %s7394_s22  }
  0x3b   : > { %s5983_s14 = sshll.u32 (%p7529_p7), %s7414_s27, 6  ;;  %s7092_s15 = smul.u32 (%p7529_p7), 576, %s441_s7 }
  0x3c   : > { %s7643_s19 = scalar_lea.vmem (%p7529_p7), %s8844_s1, %s5983_s14 }
  0x3d   : > { %v462_v43 = vld [vmem:[%s7643_s19] sm:$0xff] (%p7529_p7)   ;;  %v466_v44 = vld [vmem:[%s7643_s19 + $0x8] sm:$0xff] (%p7529_p7)   ;;  %v470_v45 = vld [vmem:[%s7643_s19 + $0x10] sm:$0xff] (%p7529_p7)   ;;  %s7651_s13 = scalar_lea.vmem (%p7529_p7), [#allocation4], %s7092_s15 }
  0x3e   : > { %v474_v46 = vld [vmem:[%s7643_s19 + $0x18] sm:$0xff] (%p7529_p7)   ;;  %v478_v47 = vld [vmem:[%s7643_s19 + $0x20] sm:$0xff] (%p7529_p7)   ;;  %v482_v48 = vld [vmem:[%s7643_s19 + $0x28] sm:$0xff] (%p7529_p7)   ;;  %463 = vst [vmem:[%s7651_s13] sm:$0xff] (%p7529_p7), %v462_v43  }
  0x3f   : > { %467 = vst [vmem:[%s7651_s13 + $0x8] sm:$0xff] (%p7529_p7), %v466_v44   ;;  %471 = vst [vmem:[%s7651_s13 + $0x10] sm:$0xff] (%p7529_p7), %v470_v45   ;;  %v486_v49 = vld [vmem:[%s7643_s19 + $0x30] sm:$0xff] (%p7529_p7)   ;;  %v490_v50 = vld [vmem:[%s7643_s19 + $0x38] sm:$0xff] (%p7529_p7)  }
  0x40   : > { %475 = vst [vmem:[%s7651_s13 + $0x18] sm:$0xff] (%p7529_p7), %v474_v46   ;;  %479 = vst [vmem:[%s7651_s13 + $0x20] sm:$0xff] (%p7529_p7), %v478_v47   ;;  %v494_v51 = vld [vmem:[%s7643_s19 + $0x80] sm:$0xff] (%p7529_p7)   ;;  %v498_v52 = vld [vmem:[%s7643_s19 + $0x88] sm:$0xff] (%p7529_p7)  }
  0x41   : > { %483 = vst [vmem:[%s7651_s13 + $0x28] sm:$0xff] %v482_v48   ;;  %487 = vst [vmem:[%s7651_s13 + $0x30] sm:$0xff] %v486_v49   ;;  %v502_v53 = vld [vmem:[%s7643_s19 + $0x90] sm:$0xff]   ;;  %v506_v54 = vld [vmem:[%s7643_s19 + $0x98] sm:$0xff]  }
  0x42   : > { %491 = vst [vmem:[%s7651_s13 + $0x38] sm:$0xff] %v490_v50   ;;  %495 = vst [vmem:[%s7651_s13 + $0x40] sm:$0xff] %v494_v51   ;;  %v510_v55 = vld [vmem:[%s7643_s19 + $0xa0] sm:$0xff]   ;;  %v514_v56 = vld [vmem:[%s7643_s19 + $0xa8] sm:$0xff]  }
  0x43   : > { %499 = vst [vmem:[%s7651_s13 + $0x48] sm:$0xff] %v498_v52   ;;  %503 = vst [vmem:[%s7651_s13 + $0x50] sm:$0xff] %v502_v53   ;;  %v518_v57 = vld [vmem:[%s7643_s19 + $0xb0] sm:$0xff]   ;;  %v522_v58 = vld [vmem:[%s7643_s19 + $0xb8] sm:$0xff]  }
  0x44   : > { %507 = vst [vmem:[%s7651_s13 + $0x58] sm:$0xff] %v506_v54   ;;  %511 = vst [vmem:[%s7651_s13 + $0x60] sm:$0xff] %v510_v55   ;;  %v526_v59 = vld [vmem:[%s7643_s19 + $0x100] sm:$0xff]   ;;  %v530_v60 = vld [vmem:[%s7643_s19 + $0x108] sm:$0xff]  }
  0x45   : > { %515 = vst [vmem:[%s7651_s13 + $0x68] sm:$0xff] %v514_v56   ;;  %519 = vst [vmem:[%s7651_s13 + $0x70] sm:$0xff] %v518_v57   ;;  %v534_v61 = vld [vmem:[%s7643_s19 + $0x110] sm:$0xff]   ;;  %v538_v62 = vld [vmem:[%s7643_s19 + $0x118] sm:$0xff]  }
  0x46   : > { %523 = vst [vmem:[%s7651_s13 + $0x78] sm:$0xff] %v522_v58   ;;  %527 = vst [vmem:[%s7651_s13 + $0x80] sm:$0xff] %v526_v59   ;;  %v542_v63 = vld [vmem:[%s7643_s19 + $0x120] sm:$0xff]   ;;  %v546_v0 = vld [vmem:[%s7643_s19 + $0x128] sm:$0xff]  }
  0x47   : > { %531 = vst [vmem:[%s7651_s13 + $0x88] sm:$0xff] %v530_v60   ;;  %535 = vst [vmem:[%s7651_s13 + $0x90] sm:$0xff] %v534_v61   ;;  %v550_v1 = vld [vmem:[%s7643_s19 + $0x130] sm:$0xff]   ;;  %v554_v2 = vld [vmem:[%s7643_s19 + $0x138] sm:$0xff]  }
  0x48   : > { %539 = vst [vmem:[%s7651_s13 + $0x98] sm:$0xff] %v538_v62   ;;  %543 = vst [vmem:[%s7651_s13 + $0xa0] sm:$0xff] %v542_v63   ;;  %v558_v3 = vld [vmem:[%s7643_s19 + $0x180] sm:$0xff]   ;;  %v562_v4 = vld [vmem:[%s7643_s19 + $0x188] sm:$0xff]  }
  0x49   : > { %547 = vst [vmem:[%s7651_s13 + $0xa8] sm:$0xff] %v546_v0   ;;  %551 = vst [vmem:[%s7651_s13 + $0xb0] sm:$0xff] %v550_v1   ;;  %v566_v5 = vld [vmem:[%s7643_s19 + $0x190] sm:$0xff]   ;;  %v570_v6 = vld [vmem:[%s7643_s19 + $0x198] sm:$0xff]  }
  0x4a   : > { %555 = vst [vmem:[%s7651_s13 + $0xb8] sm:$0xff] %v554_v2   ;;  %559 = vst [vmem:[%s7651_s13 + $0xc0] sm:$0xff] %v558_v3   ;;  %v574_v7 = vld [vmem:[%s7643_s19 + $0x1a0] sm:$0xff]   ;;  %v578_v8 = vld [vmem:[%s7643_s19 + $0x1a8] sm:$0xff]  }
  0x4b   : > { %563 = vst [vmem:[%s7651_s13 + $0xc8] sm:$0xff] %v562_v4   ;;  %567 = vst [vmem:[%s7651_s13 + $0xd0] sm:$0xff] %v566_v5   ;;  %v582_v9 = vld [vmem:[%s7643_s19 + $0x1b0] sm:$0xff]   ;;  %v586_v10 = vld [vmem:[%s7643_s19 + $0x1b8] sm:$0xff]  }
  0x4c   : > { %571 = vst [vmem:[%s7651_s13 + $0xd8] sm:$0xff] %v570_v6   ;;  %575 = vst [vmem:[%s7651_s13 + $0xe0] sm:$0xff] %v574_v7   ;;  %v590_v11 = vld [vmem:[%s7643_s19 + $0x200] sm:$0xff]   ;;  %v594_v12 = vld [vmem:[%s7643_s19 + $0x208] sm:$0xff]  }
  0x4d   : > { %579 = vst [vmem:[%s7651_s13 + $0xe8] sm:$0xff] %v578_v8   ;;  %583 = vst [vmem:[%s7651_s13 + $0xf0] sm:$0xff] %v582_v9   ;;  %v598_v13 = vld [vmem:[%s7643_s19 + $0x210] sm:$0xff]   ;;  %v602_v14 = vld [vmem:[%s7643_s19 + $0x218] sm:$0xff]  }
  0x4e   : > { %587 = vst [vmem:[%s7651_s13 + $0xf8] sm:$0xff] %v586_v10   ;;  %591 = vst [vmem:[%s7651_s13 + $0x100] sm:$0xff] %v590_v11   ;;  %v606_v15 = vld [vmem:[%s7643_s19 + $0x220] sm:$0xff]   ;;  %v610_v16 = vld [vmem:[%s7643_s19 + $0x228] sm:$0xff]  }
  0x4f   : > { %595 = vst [vmem:[%s7651_s13 + $0x108] sm:$0xff] %v594_v12   ;;  %599 = vst [vmem:[%s7651_s13 + $0x110] sm:$0xff] %v598_v13   ;;  %v614_v17 = vld [vmem:[%s7643_s19 + $0x230] sm:$0xff]   ;;  %v618_v18 = vld [vmem:[%s7643_s19 + $0x238] sm:$0xff]  }
  0x50   : > { %603 = vst [vmem:[%s7651_s13 + $0x118] sm:$0xff] %v602_v14   ;;  %607 = vst [vmem:[%s7651_s13 + $0x120] sm:$0xff] %v606_v15   ;;  %v622_v19 = vld [vmem:[%s7643_s19 + $0x280] sm:$0xff]   ;;  %v626_v20 = vld [vmem:[%s7643_s19 + $0x288] sm:$0xff]  }
  0x51   : > { %611 = vst [vmem:[%s7651_s13 + $0x128] sm:$0xff] %v610_v16   ;;  %615 = vst [vmem:[%s7651_s13 + $0x130] sm:$0xff] %v614_v17   ;;  %v630_v21 = vld [vmem:[%s7643_s19 + $0x290] sm:$0xff]   ;;  %v634_v22 = vld [vmem:[%s7643_s19 + $0x298] sm:$0xff]  }
  0x52   : > { %619 = vst [vmem:[%s7651_s13 + $0x138] sm:$0xff] %v618_v18   ;;  %623 = vst [vmem:[%s7651_s13 + $0x140] sm:$0xff] %v622_v19   ;;  %v638_v23 = vld [vmem:[%s7643_s19 + $0x2a0] sm:$0xff]   ;;  %v642_v24 = vld [vmem:[%s7643_s19 + $0x2a8] sm:$0xff]  }
  0x53   : > { %627 = vst [vmem:[%s7651_s13 + $0x148] sm:$0xff] %v626_v20   ;;  %631 = vst [vmem:[%s7651_s13 + $0x150] sm:$0xff] %v630_v21   ;;  %v646_v25 = vld [vmem:[%s7643_s19 + $0x2b0] sm:$0xff]   ;;  %v650_v26 = vld [vmem:[%s7643_s19 + $0x2b8] sm:$0xff]  }
  0x54   : > { %635 = vst [vmem:[%s7651_s13 + $0x158] sm:$0xff] %v634_v22   ;;  %639 = vst [vmem:[%s7651_s13 + $0x160] sm:$0xff] %v638_v23   ;;  %v654_v27 = vld [vmem:[%s7643_s19 + $0x300] sm:$0xff]   ;;  %v658_v28 = vld [vmem:[%s7643_s19 + $0x308] sm:$0xff]  }
  0x55   : > { %643 = vst [vmem:[%s7651_s13 + $0x168] sm:$0xff] %v642_v24   ;;  %647 = vst [vmem:[%s7651_s13 + $0x170] sm:$0xff] %v646_v25   ;;  %v662_v29 = vld [vmem:[%s7643_s19 + $0x310] sm:$0xff]   ;;  %v666_v30 = vld [vmem:[%s7643_s19 + $0x318] sm:$0xff]  }
  0x56   : > { %651 = vst [vmem:[%s7651_s13 + $0x178] sm:$0xff] %v650_v26   ;;  %655 = vst [vmem:[%s7651_s13 + $0x180] sm:$0xff] %v654_v27   ;;  %v670_v31 = vld [vmem:[%s7643_s19 + $0x320] sm:$0xff]   ;;  %v674_v32 = vld [vmem:[%s7643_s19 + $0x328] sm:$0xff]  }
  0x57   : > { %659 = vst [vmem:[%s7651_s13 + $0x188] sm:$0xff] %v658_v28   ;;  %663 = vst [vmem:[%s7651_s13 + $0x190] sm:$0xff] %v662_v29   ;;  %v678_v33 = vld [vmem:[%s7643_s19 + $0x330] sm:$0xff]   ;;  %v682_v34 = vld [vmem:[%s7643_s19 + $0x338] sm:$0xff]  }
  0x58   : > { %667 = vst [vmem:[%s7651_s13 + $0x198] sm:$0xff] %v666_v30   ;;  %671 = vst [vmem:[%s7651_s13 + $0x1a0] sm:$0xff] %v670_v31   ;;  %v686_v35 = vld [vmem:[%s7643_s19 + $0x380] sm:$0xff]   ;;  %v690_v36 = vld [vmem:[%s7643_s19 + $0x388] sm:$0xff]  }
  0x59   : > { %675 = vst [vmem:[%s7651_s13 + $0x1a8] sm:$0xff] %v674_v32   ;;  %679 = vst [vmem:[%s7651_s13 + $0x1b0] sm:$0xff] %v678_v33   ;;  %v694_v37 = vld [vmem:[%s7643_s19 + $0x390] sm:$0xff]   ;;  %v698_v38 = vld [vmem:[%s7643_s19 + $0x398] sm:$0xff]  }
  0x5a   : > { %683 = vst [vmem:[%s7651_s13 + $0x1b8] sm:$0xff] %v682_v34   ;;  %687 = vst [vmem:[%s7651_s13 + $0x1c0] sm:$0xff] %v686_v35   ;;  %v702_v39 = vld [vmem:[%s7643_s19 + $0x3a0] sm:$0xff]   ;;  %v706_v40 = vld [vmem:[%s7643_s19 + $0x3a8] sm:$0xff]  }
  0x5b   : > { %691 = vst [vmem:[%s7651_s13 + $0x1c8] sm:$0xff] %v690_v36   ;;  %695 = vst [vmem:[%s7651_s13 + $0x1d0] sm:$0xff] %v694_v37   ;;  %v710_v41 = vld [vmem:[%s7643_s19 + $0x3b0] sm:$0xff]   ;;  %v714_v42 = vld [vmem:[%s7643_s19 + $0x3b8] sm:$0xff]  }
  0x5c   : > { %699 = vst [vmem:[%s7651_s13 + $0x1d8] sm:$0xff] %v698_v38   ;;  %703 = vst [vmem:[%s7651_s13 + $0x1e0] sm:$0xff] %v702_v39   ;;  %v718_v43 = vld [vmem:[%s7643_s19 + $0x400] sm:$0xff]   ;;  %v722_v44 = vld [vmem:[%s7643_s19 + $0x408] sm:$0xff]  }
  0x5d   : > { %707 = vst [vmem:[%s7651_s13 + $0x1e8] sm:$0xff] %v706_v40   ;;  %711 = vst [vmem:[%s7651_s13 + $0x1f0] sm:$0xff] %v710_v41   ;;  %v726_v45 = vld [vmem:[%s7643_s19 + $0x410] sm:$0xff]   ;;  %v730_v46 = vld [vmem:[%s7643_s19 + $0x418] sm:$0xff]  }
  0x5e   : > { %715 = vst [vmem:[%s7651_s13 + $0x1f8] sm:$0xff] %v714_v42   ;;  %719 = vst [vmem:[%s7651_s13 + $0x200] sm:$0xff] %v718_v43   ;;  %v734_v47 = vld [vmem:[%s7643_s19 + $0x420] sm:$0xff]   ;;  %v738_v48 = vld [vmem:[%s7643_s19 + $0x428] sm:$0xff]  }
  0x5f   : > { %723 = vst [vmem:[%s7651_s13 + $0x208] sm:$0xff] %v722_v44   ;;  %727 = vst [vmem:[%s7651_s13 + $0x210] sm:$0xff] %v726_v45   ;;  %v742_v49 = vld [vmem:[%s7643_s19 + $0x430] sm:$0xff]   ;;  %v746_v50 = vld [vmem:[%s7643_s19 + $0x438] sm:$0xff]  }
  0x60   : > { %731 = vst [vmem:[%s7651_s13 + $0x218] sm:$0xff] %v730_v46   ;;  %735 = vst [vmem:[%s7651_s13 + $0x220] sm:$0xff] %v734_v47  }
  0x61   : > { %739 = vst [vmem:[%s7651_s13 + $0x228] sm:$0xff] %v738_v48   ;;  %743 = vst [vmem:[%s7651_s13 + $0x230] sm:$0xff] %v742_v49  }
  0x62   : > { %747 = vst [vmem:[%s7651_s13 + $0x238] sm:$0xff] %v746_v50  }
  0x63 PF: > { %p5674_p10 = scmp.ge.s32.totalorder %s7422_s29, 1  ;;  %p1059_p11 = scmp.lt.s32.totalorder %s7422_s29, 5 }
  0x65   : > { %p1060_p12 = pnand %p5674_p10, %p1059_p11 }
  0x66   : > { %s1066_s20 = sand.u32 (!%p1060_p12), 1, %s7398_s23   ;;  %s1073_s10 = sand.u32 (!%p1060_p12), 1, %s7390_s21  }
  0x67   : > { %1063 = sbr.rel (%p1060_p12) target bundleno = 951 (0x3b7), region = 118  ;;  %p1107_p13 = scmp.lt.s32.totalorder (!%p1060_p12), %s7410_s26, 1 }
  0x68   : > { %s7093_s8 = smul.u32 (!%p1060_p12), 172, %s1066_s20  ;;  %p5676_p0 = scmp.ne.s32.totalorder (!%p1060_p12), %s7406_s25, 0 }
  0x69   : > { %s7094_s12 = smul.u32 (!%p1060_p12), 576, %s1073_s10 }
  0x6a   : > { %s7802_s17 = scalar_lea.vmem (!%p1060_p12), [#allocation3], %s7093_s8 }
  0x6b   : > { %s7804_s18 = scalar_lea.vmem (!%p1060_p12), [#allocation4], %s7094_s12 }
  0x6e   : > { %s8870_s26 = smov (!%p1107_p13, %s7410_s26), 1  ;;  %1116 = sbr.rel (%p5676_p0) target bundleno = 130 (0x82), region = 130 }
  0x6f   : > { %s7095_s9 = smul.u32 288, %s8870_s26  ;;  %vm1117_vm0 = vcmask (!%p5676_p0), 261120   ;;  %v7424_v51 = vmov (!%p5676_p0), 0.0  }
  0x70   : > { %1118 = vst.msk [vmem:[#allocation2] sm:$0xff] (!%p5676_p0), %vm1117_vm0, %v7424_v51  ;;  %1119 = vst.msk [vmem:[#allocation2 + $0x8] sm:$0xff] (!%p5676_p0), %vm1117_vm0, %v7424_v51 }
  0x71   : > { %s7800_s15 = scalar_lea.vmem %s8849_s6, %s7095_s9  ;;  %1120 = vst.msk [vmem:[#allocation2 + $0x10] sm:$0xff] (!%p5676_p0), %vm1117_vm0, %v7424_v51  ;;  %1121 = vst.msk [vmem:[#allocation2 + $0x18] sm:$0xff] (!%p5676_p0), %vm1117_vm0, %v7424_v51 }
  0x72   : > { %1122 = vst.msk [vmem:[#allocation2 + $0x20] sm:$0xff] (!%p5676_p0), %vm1117_vm0, %v7424_v51  ;;  %1123 = vst.msk [vmem:[#allocation2 + $0x28] sm:$0xff] (!%p5676_p0), %vm1117_vm0, %v7424_v51 }
  0x73   : > { %1124 = vst.msk [vmem:[#allocation2 + $0x30] sm:$0xff] (!%p5676_p0), %vm1117_vm0, %v7424_v51  ;;  %1125 = vst.msk [vmem:[#allocation2 + $0x38] sm:$0xff] (!%p5676_p0), %vm1117_vm0, %v7424_v51 }
  0x74   : > { %1126 = vst.msk [vmem:[#allocation2 + $0x40] sm:$0xff] (!%p5676_p0), %vm1117_vm0, %v7424_v51  ;;  %1127 = vst.msk [vmem:[#allocation2 + $0x48] sm:$0xff] (!%p5676_p0), %vm1117_vm0, %v7424_v51 }
  0x75   : > { %1128 = vst.msk [vmem:[#allocation2 + $0x50] sm:$0xff] %vm1117_vm0, %v7424_v51  ;;  %1129 = vst.msk [vmem:[#allocation2 + $0x58] sm:$0xff] %vm1117_vm0, %v7424_v51 }
  0x76   : > { %1130 = vst.msk [vmem:[#allocation2 + $0x60] sm:$0xff] %vm1117_vm0, %v7424_v51  ;;  %1131 = vst.msk [vmem:[#allocation2 + $0x68] sm:$0xff] %vm1117_vm0, %v7424_v51 }
  0x77   : > { %1132 = vst.msk [vmem:[#allocation2 + $0x70] sm:$0xff] %vm1117_vm0, %v7424_v51  ;;  %1133 = vst.msk [vmem:[#allocation2 + $0x78] sm:$0xff] %vm1117_vm0, %v7424_v51 }
  0x78   : > { %1134 = vst.msk [vmem:[#allocation2 + $0x80] sm:$0xff] %vm1117_vm0, %v7424_v51  ;;  %1135 = vst.msk [vmem:[#allocation2 + $0x88] sm:$0xff] %vm1117_vm0, %v7424_v51 }
  0x79   : > { %1136 = vst.msk [vmem:[#allocation2 + $0x90] sm:$0xff] %vm1117_vm0, %v7424_v51  ;;  %1137 = vst.msk [vmem:[#allocation2 + $0x98] sm:$0xff] %vm1117_vm0, %v7424_v51 }
  0x7a   : > { %1138 = vst.msk [vmem:[#allocation2 + $0xa0] sm:$0xff] %vm1117_vm0, %v7424_v51  ;;  %1139 = vst.msk [vmem:[#allocation2 + $0xa8] sm:$0xff] %vm1117_vm0, %v7424_v51 }
  0x7b   : > { %1140 = vst.msk [vmem:[#allocation2 + $0xb0] sm:$0xff] %vm1117_vm0, %v7424_v51  ;;  %1141 = vst.msk [vmem:[#allocation2 + $0xb8] sm:$0xff] %vm1117_vm0, %v7424_v51 }
  0x7c   : > { %1142 = vst.msk [vmem:[#allocation2 + $0xc0] sm:$0xff] %vm1117_vm0, %v7424_v51  ;;  %1143 = vst.msk [vmem:[#allocation2 + $0xc8] sm:$0xff] %vm1117_vm0, %v7424_v51 }
  0x7d   : > { %1144 = vst.msk [vmem:[#allocation2 + $0xd0] sm:$0xff] %vm1117_vm0, %v7424_v51  ;;  %1145 = vst.msk [vmem:[#allocation2 + $0xd8] sm:$0xff] %vm1117_vm0, %v7424_v51 }
  0x7e   : > { %1146 = vst.msk [vmem:[#allocation2 + $0xe0] sm:$0xff] %vm1117_vm0, %v7424_v51  ;;  %1147 = vst.msk [vmem:[#allocation2 + $0xe8] sm:$0xff] %vm1117_vm0, %v7424_v51 }
  0x7f   : > { %1148 = vst.msk [vmem:[#allocation2 + $0xf0] sm:$0xff] %vm1117_vm0, %v7424_v51  ;;  %1149 = vst.msk [vmem:[#allocation2 + $0xf8] sm:$0xff] %vm1117_vm0, %v7424_v51 }
  0x80   : > { %1150 = vst.msk [vmem:[#allocation2 + $0x100] sm:$0xff] %vm1117_vm0, %v7424_v51  ;;  %1151 = vst.msk [vmem:[#allocation2 + $0x108] sm:$0xff] %vm1117_vm0, %v7424_v51 }
  0x81   : > { %1152 = vst.msk [vmem:[#allocation2 + $0x110] sm:$0xff] %vm1117_vm0, %v7424_v51  ;;  %1153 = vst.msk [vmem:[#allocation2 + $0x118] sm:$0xff] %vm1117_vm0, %v7424_v51 }
  0x82 PF: > { %v7169_v52 = vld [vmem:[%s7804_s18] sm:$0xff]   ;;  %v7171_v54 = vld [vmem:[%s7804_s18 + $0x8] sm:$0xff]   ;;  %v7173_v56 = vld [vmem:[%s7804_s18 + $0x10] sm:$0xff]   ;;  %vm3008_vm1 = vsmask.f32 6400  ;;  %vm3479_vm2 = vcmask 1045504  }
  0x83   : > { %v7170_v53 = vld [vmem:[%s7804_s18 + $0x100] sm:$0xff]   ;;  %6238 = vmatprep.subr.bf16.mxu1 %v7169_v52  ;;  %v7172_v55 = vld [vmem:[%s7804_s18 + $0x108] sm:$0xff]   ;;  %v7174_v57 = vld [vmem:[%s7804_s18 + $0x110] sm:$0xff]   ;;  %vm2207_vm3 = vcmask 1046528   ;;  %vm1758_vm4 = vsmask.f32 7424 }
  0x84   : > { %6446 = vmatprep.subr.bf16.mxu0 %v7170_v53  ;;  %6239 = vmatpush3.bf16.msra.mxu1 %v7169_v52  ;;  %v7175_v58 = vld [vmem:[%s7804_s18 + $0x18] sm:$0xff]   ;;  %v7177_v60 = vld [vmem:[%s7804_s18 + $0x20] sm:$0xff]   ;;  %v7179_v62 = vld [vmem:[%s7804_s18 + $0x28] sm:$0xff]   ;;  %vm4280_vm5 = vsmask.f32 5376  ;;  %vm4751_vm6 = vcmask 1044480  }
  0x85   : > { %6447 = vmatpush3.bf16.msra.mxu0 %v7170_v53  ;;  %6240 = vmatprep.subr.bf16.mxu1 %v7171_v54  ;;  %v7176_v59 = vld [vmem:[%s7804_s18 + $0x118] sm:$0xff]   ;;  %v7178_v61 = vld [vmem:[%s7804_s18 + $0x120] sm:$0xff]   ;;  %v7180_v63 = vld [vmem:[%s7804_s18 + $0x128] sm:$0xff]   ;;  %vm5068_vm7 = vcmask 261120   ;;  %p5957_p1 = scmp.ne.s32.totalorder %s7406_s25, 1 }
  0x86   : > { %6448 = vmatprep.subr.bf16.mxu0 %v7172_v55  ;;  %v7185_v0 = vld [vmem:[%s7802_s17] sm:$0xff]   ;;  %v2524_v1 = vld [vmem:[%s7802_s17 + $0x8] sm:$0xe]  ;;  %v7858_v2 = vld [vmem:[%s7802_s17 + $0xc] sm:$0xf] }
  0x87   : > { %v7181_v3 = vld [vmem:[%s7804_s18 + $0x30] sm:$0xff]   ;;  %6254 = vmatprep.mubr.bf16.mxu1 %v7185_v0  ;;  %v7862_v4 = vcombine.low %v2524_v1, %v7858_v2  ;;  %v7865_v5 = vld [vmem:[%s7802_s17 + $0x10] sm:$0xff]  }
  0x88   : > { %6241 = vmatpush3.bf16.msra.mxu1 %v7171_v54  ;;  %v7182_v6 = vld [vmem:[%s7804_s18 + $0x130] sm:$0xff]   ;;  %v3018_v9 = vshrl.u32 %v7865_v5, 16  ;;  %v3021_v10 = vshll.u32 %v7865_v5, 16  ;;  %v7183_v16 = vld [vmem:[%s7804_s18 + $0x38] sm:$0xff]   ;;  %v7189_v23 = vld [vmem:[%s7804_s18 + $0x40] sm:$0xff]  }
  0x89   : > { %6449 = vmatpush3.bf16.msra.mxu0 %v7172_v55  ;;  %6242 = vmatprep.subr.bf16.mxu1 %v7173_v56  ;;  %v3010_v7 = vshrl.u32 %v7862_v4, 16  ;;  %v3013_v8 = vshll.u32 %v7862_v4, 16  ;;  %v7873_v15 = vld [vmem:[%s7802_s17 + $0x18] sm:$0xff]   ;;  %v7184_v17 = vld [vmem:[%s7804_s18 + $0x138] sm:$0xff]  }
  0x8a   : > { %6450 = vmatprep.subr.bf16.mxu0 %v7174_v57  ;;  %v3020_v13 = vrot.slane %v3018_v9, 1  ;;  %v3023_v14 = vrot.slane %v3021_v10, 2  ;;  %v3027_v20 = vshrl.u32 %v7873_v15, 16  ;;  %v3030_v21 = vshll.u32 %v7873_v15, 16  ;;  %v7882_v26 = vld [vmem:[%s7802_s17 + $0x20] sm:$0xff]   ;;  %v7191_v28 = vld [vmem:[%s7804_s18 + $0x140] sm:$0xff]  }
  0x8b   : > { %v3012_v11 = vrot.slane %v3010_v7, 1  ;;  %v3015_v12 = vrot.slane %v3013_v8, 2  ;;  %v3036_v29 = vshrl.u32 %v7882_v26, 16  ;;  %v3039_v30 = vshll.u32 %v7882_v26, 16  ;;  %v7888_v31 = vld [vmem:[%s7802_s17 + $0x28] sm:$0xff]   ;;  %v7192_v36 = vld [vmem:[%s7804_s18 + $0x148] sm:$0xff]  }
  0x8c   : > { %6243 = vmatpush3.bf16.msra.mxu1 %v7173_v56  ;;  %v3024_v19 = vor.u32 %v3023_v14, %v3020_v13  ;;  %v3029_v24 = vrot.slane %v3027_v20, 1  ;;  %v3032_v25 = vrot.slane %v3030_v21, 2  ;;  %v7188_v32 = vld [vmem:[%s7802_s17 + $0x8] sm:$0xff]   ;;  %v3045_v35 = vshrl.u32 %v7888_v31, 16  ;;  %v7193_v39 = vld [vmem:[%s7802_s17 + $0x10] sm:$0xff]   ;;  %v7195_v48 = vld [vmem:[%s7802_s17 + $0x18] sm:$0xff]  }
  0x8d   : > { %6451 = vmatpush3.bf16.msra.mxu0 %v7174_v57  ;;  %6244 = vmatprep.subr.bf16.mxu1 %v7175_v58  ;;  %v3016_v18 = vor.u32 %v3015_v12, %v3012_v11  ;;  %v3038_v33 = vrot.slane %v3036_v29, 1  ;;  %v3041_v34 = vrot.slane %v3039_v30, 2  ;;  %v3048_v37 = vshll.u32 %v7888_v31, 16  ;;  %v7897_v43 = vld [vmem:[%s7802_s17 + $0x30] sm:$0xff]   ;;  %v7905_v50 = vld [vmem:[%s7802_s17 + $0x38] sm:$0xff]   ;;  %v7200_v57 = vld [vmem:[%s7802_s17 + $0x20] sm:$0xff]  }
  0x8e   : > { %6452 = vmatprep.subr.bf16.mxu0 %v7176_v59  ;;  %v3033_v27 = vor.u32 %v3032_v25, %v3029_v24  ;;  %v3047_v41 = vrot.slane %v3045_v35, 1  ;;  %v7198_v45 = vld [vmem:[%s7804_s18 + $0x48] sm:$0xff]   ;;  %v3054_v46 = vshrl.u32 %v7897_v43, 16  ;;  %v3057_v47 = vshll.u32 %v7897_v43, 16  ;;  %v7197_v51 = vld [vmem:[%s7804_s18 + $0x150] sm:$0xff]   ;;  %v7204_v9 = vld [vmem:[%s7804_s18 + $0x160] sm:$0xff]  }
  0x8f   : > { %v3025_v22 = vsel %vm3008_vm1, %v3016_v18, %v3024_v19  ;;  %v3042_v40 = vor.u32 %v3041_v34, %v3038_v33  ;;  %v3050_v42 = vrot.slane %v3048_v37, 2  ;;  %v7205_v54 = vld [vmem:[%s7804_s18 + $0x50] sm:$0xff]   ;;  %v3063_v55 = vshrl.u32 %v7905_v50, 16  ;;  %v7212_v14 = vld [vmem:[%s7804_s18 + $0x58] sm:$0xff]   ;;  %v7217_v25 = vld [vmem:[%s7804_s18 + $0x60] sm:$0xff]  }
  0x90   : > { %6245 = vmatpush3.bf16.msra.mxu1 %v7175_v58  ;;  %6462 = vmatprep.mubr.bf16.mxu0 %v3025_v22  ;;  %v3034_v38 = vsel %vm3008_vm1, %v3024_v19, %v3033_v27  ;;  %v3056_v52 = vrot.slane %v3054_v46, 1  ;;  %v3059_v53 = vrot.slane %v3057_v47, 2  ;;  %v3066_v56 = vshll.u32 %v7905_v50, 16  ;;  %v7202_v7 = vld [vmem:[%s7802_s17 + $0x28] sm:$0xff]   ;;  %v7206_v22 = vld [vmem:[%s7804_s18 + $0x168] sm:$0xff]  }
  0x91   : > { %6453 = vmatpush3.bf16.msra.mxu0 %v7176_v59  ;;  %6246 = vmatprep.subr.bf16.mxu1 %v7177_v60  ;;  %v3043_v44 = vsel %vm3008_vm1, %v3033_v27, %v3042_v40  ;;  %v3051_v49 = vor.u32 %v3050_v42, %v3047_v41  ;;  %v3458_v21 = vld [vmem:[%s7802_s17 + $0x8] sm:$0xc]  ;;  %v7209_v27 = vld [vmem:[%s7802_s17 + $0x38] sm:$0xff]   ;;  %v3481_v29 = vrot.slane %v7865_v5, 2  ;;  %v7214_v33 = vld [vmem:[%s7802_s17 + $0x40] sm:$0xff]  }
  0x92   : > { %6454 = vmatprep.subr.bf16.mxu0 %v7178_v61  ;;  %v3060_v58 = vor.u32 %v3059_v53, %v3056_v52  ;;  %v5855_v24 = vcombine.low %v3458_v21, %v7858_v2  ;;  %v7211_v30 = vld [vmem:[%s7804_s18 + $0x170] sm:$0xff]   ;;  %v7221_v2 = vld [vmem:[%s7804_s18 + $0x68] sm:$0xff]   ;;  %v7213_v35 = vld [vmem:[%s7804_s18 + $0x178] sm:$0xff]  }
  0x93   : > { %v3052_v59 = vsel %vm3008_vm1, %v3042_v40, %v3051_v49  ;;  %v7216_v37 = vld [vmem:[%s7802_s17 + $0x48] sm:$0xff]   ;;  %v7218_v41 = vld [vmem:[%s7802_s17 + $0x50] sm:$0xff]  }
  0x94   : > { %6247 = vmatpush3.bf16.msra.mxu1 %v7177_v60  ;;  %v7199_v60 = vld [vmem:[%s7804_s18 + $0x158] sm:$0xff]   ;;  %v3061_v0 = vsel %vm3008_vm1, %v3051_v49, %v3060_v58  ;;  %v7220_v40 = vld [vmem:[%s7804_s18 + $0x180] sm:$0xff]   ;;  %v7224_v46 = vld [vmem:[%s7804_s18 + $0x188] sm:$0xff]  }
  0x95   : > { %6455 = vmatpush3.bf16.msra.mxu0 %v7178_v61  ;;  %6248 = vmatprep.subr.bf16.mxu1 %v7179_v62  ;;  %v3065_v61 = vrot.slane %v3063_v55, 1  ;;  %v7230_v42 = vld [vmem:[%s7804_s18 + $0x78] sm:$0xff]   ;;  %v7228_v47 = vld [vmem:[%s7804_s18 + $0x190] sm:$0xff]   ;;  %v7963_v52 = vld [vmem:[%s7804_s18 + $0x80] sm:$0xff]  }
  0x96   : > { %6456 = vmatprep.subr.bf16.mxu0 %v7180_v63  ;;  %v7222_v49 = vld [vmem:[%s7802_s17 + $0x60] sm:$0xff]  }
  0x98   : > { %6249 = vmatpush3.bf16.msra.mxu1 %v7179_v62  ;;  %v3068_v62 = vrot.slane %v3066_v56, 2  ;;  %v1611_v56 = vld [vmem:[%s7802_s17] sm:$0xf] }
  0x99   : > { %6457 = vmatpush3.bf16.msra.mxu0 %v7180_v63  ;;  %6250 = vmatprep.subr.bf16.mxu1 %v7181_v3  ;;  %v7915_v63 = vld [vmem:[%s7802_s17 + $0x40] sm:$0xff]  }
  0x9a   : > { %6458 = vmatprep.subr.bf16.mxu0 %v7182_v6  ;;  %v3072_v1 = vshrl.u32 %v7915_v63, 16  ;;  %v3069_v8 = vor.u32 %v3068_v62, %v3065_v61  ;;  %v3493_v55 = vrot.slane %v7915_v63, 2  ;;  %v7223_v61 = vld [vmem:[%s7802_s17 + $0x68] sm:$0xff]   ;;  %v7226_v62 = vld [vmem:[%s7802_s17 + $0x70] sm:$0xff]  }
  0x9c   : > { %6251 = vmatpush3.bf16.msra.mxu1 %v7181_v3  ;;  %v3075_v3 = vshll.u32 %v7915_v63, 16  ;;  %v3074_v10 = vrot.slane %v3072_v1, 1  ;;  %v3070_v20 = vsel %vm3008_vm1, %v3060_v58, %v3069_v8  ;;  %v7978_v58 = vld [vmem:[%s7802_s17 + $0x10] sm:$0xff]  }
  0x9d   : > { %6459 = vmatpush3.bf16.msra.mxu0 %v7182_v6  ;;  %6252 = vmatprep.subr.bf16.mxu1 %v7183_v16  ;;  %v7921_v6 = vld [vmem:[%s7802_s17 + $0x48] sm:$0xff]  }
  0x9e   : > { %6460 = vmatprep.subr.bf16.mxu0 %v7184_v17  ;;  %v3077_v11 = vrot.slane %v3075_v3, 2  ;;  %v3081_v12 = vshrl.u32 %v7921_v6, 16  ;;  %v3084_v13 = vshll.u32 %v7921_v6, 16 }
  0xa0   : > { %6253 = vmatpush3.bf16.msra.mxu1 %v7183_v16  ;;  %v7207_v16 = vld [vmem:[%s7802_s17 + $0x30] sm:$0xff]   ;;  %v3083_v18 = vrot.slane %v3081_v12, 1  ;;  %v3086_v19 = vrot.slane %v3084_v13, 2  ;;  %v7229_v13 = vld [vmem:[%s7802_s17 + $0x80] sm:$0xff]  }
  0xa1   : > { %6461 = vmatpush3.bf16.msra.mxu0 %v7184_v17  ;;  %6290 = vmatprep.subr.bf16.mxu1 %v7189_v23  ;;  %v3078_v17 = vor.u32 %v3077_v11, %v3074_v10  ;;  %v7227_v11 = vld [vmem:[%s7802_s17 + $0x78] sm:$0xff]  }
  0xa2   : > { %6498 = vmatprep.subr.bf16.mxu0 %v7191_v28 }
  0xa3   : > { %6255 = vmatmul.mubr.bf16.vlgmr.msra.gmra.mrb[0].mxu1 %v7188_v32  ;;  %v3480_v32 = vrot.slane %v5855_v24, 2 }
  0xa4   : > { %6463 = vmatmul.mubr.bf16.vlgmr.msra.gmra.mrb[0].mxu0 %v3034_v38  ;;  %6291 = vmatpush3.bf16.msra.mxu1 %v7189_v23  ;;  %v3079_v23 = vsel %vm3008_vm1, %v3069_v8, %v3078_v17  ;;  %v3483_v38 = vrot.slane %v7873_v15, 2  ;;  %v3487_v15 = vrot.slane %v7888_v31, 2  ;;  %v7234_v31 = vld [vmem:[%s7804_s18 + $0x198] sm:$0xff]   ;;  %v7249_v8 = vld [vmem:[%s7804_s18 + $0x1a8] sm:$0xff]  }
  0xa5   : > { %6499 = vmatpush3.bf16.msra.mxu0 %v7191_v28  ;;  %6258 = vmatprep.mubr.bf16.mxu1 %v7193_v39  ;;  %v7936_v28 = vor.u32 %v3086_v19, %v3083_v18  ;;  %v3482_v5 = vsel %vm3479_vm2, %v3480_v32, %v3481_v29  ;;  %v3485_v39 = vrot.slane %v7882_v26, 2  ;;  %v3489_v26 = vrot.slane %v7897_v43, 2 }
  0xa6   : > { %6500 = vmatprep.subr.bf16.mxu0 %v7192_v36  ;;  %6466 = vmatprep.mubr.bf16.mxu0 %v3043_v44  ;;  %v3484_v44 = vsel %vm3479_vm2, %v3481_v29, %v3483_v38  ;;  %v3491_v43 = vrot.slane %v7905_v50, 2  ;;  %v7259_v29 = vld [vmem:[%s7804_s18 + $0x1b8] sm:$0xff]  }
  0xa7   : > { %6292 = vmatprep.subr.bf16.mxu1 %v7198_v45  ;;  %v3088_v34 = vsel %vm3008_vm1, %v3078_v17, %v7936_v28  ;;  %v3490_v53 = vsel %vm3479_vm2, %v3487_v15, %v3489_v26 }
  0xa8   : > { %6293 = vmatpush3.bf16.msra.mxu1 %v7198_v45  ;;  %v3486_v45 = vsel %vm3479_vm2, %v3483_v38, %v3485_v39  ;;  %v3494_v3 = vsel %vm3479_vm2, %v3491_v43, %v3493_v55 }
  0xa9   : > { %6501 = vmatpush3.bf16.msra.mxu0 %v7192_v36  ;;  %6294 = vmatprep.subr.bf16.mxu1 %v7205_v54  ;;  %v7225_v36 = vld [vmem:[%s7804_s18 + $0x70] sm:$0xff]  }
  0xaa   : > { %6502 = vmatprep.subr.bf16.mxu0 %v7197_v51 }
  0xab   : > { %6259 = vmatmul.mubr.bf16.gmra.mrb[4].mxu1 %v7195_v48  ;;  %v7219_v48 = vld [vmem:[%s7802_s17 + $0x58] sm:$0xff]  }
  0xac   : > { %6467 = vmatmul.mubr.bf16.gmra.mrb[4].mxu0 %v3052_v59  ;;  %6262 = vmatprep.mubr.bf16.mxu1 %v7200_v57  ;;  %v7975_v57 = vld [vmem:[%s7802_s17 + $0x4] sm:$0xf]  ;;  %v7241_v59 = vld [vmem:[%s7804_s18 + $0x1a0] sm:$0xff]  }
  0xad   : > { %6503 = vmatpush3.bf16.msra.mxu0 %v7197_v51  ;;  %6470 = vmatprep.mubr.bf16.mxu0 %v3061_v0  ;;  %v3488_v51 = vsel %vm3479_vm2, %v3485_v39, %v3487_v15  ;;  %v3492_v0 = vsel %vm3479_vm2, %v3489_v26, %v3491_v43  ;;  %v5719_v1 = vcombine.low %v1611_v56, %v7975_v57  ;;  %v8021_v39 = vld [vmem:[%s7802_s17 + $0x20] sm:$0xff]  }
  0xae   : > { %6504 = vmatprep.subr.bf16.mxu0 %v7199_v60  ;;  %6295 = vmatpush3.bf16.msra.mxu1 %v7205_v54  ;;  %v7969_v54 = vld [vmem:[%s7802_s17 + $0x8] sm:$0xff]   ;;  %v1791_v26 = vshll.u32 %v8021_v39, 16 }
  0xaf   : > { %6296 = vmatprep.subr.bf16.mxu1 %v7212_v14  ;;  %v2209_v50 = vrot.slane %v7969_v54, 1  ;;  %v1762_v10 = vshll.u32 %v5719_v1, 16  ;;  %v1767_v19 = vshll.u32 %v7969_v54, 16  ;;  %v1771_v32 = vshrl.u32 %v7969_v54, 16 }
  0xb1   : > { %6505 = vmatpush3.bf16.msra.mxu0 %v7199_v60  ;;  %v2211_v60 = vrot.slane %v7978_v58, 1  ;;  %v1764_v18 = vrot.slane %v1762_v10, 1  ;;  %v1769_v24 = vrot.slane %v1767_v19, 1  ;;  %v7252_v10 = vld [vmem:[%s7804_s18 + $0x90] sm:$0xff]  }
  0xb2   : > { %6506 = vmatprep.subr.bf16.mxu0 %v7204_v9  ;;  %6297 = vmatpush3.bf16.msra.mxu1 %v7212_v14  ;;  %v7233_v14 = vld [vmem:[%s7802_s17 + $0x58] sm:$0xff]  }
  0xb3   : > { %6263 = vmatmul.mubr.bf16.gmra.mrb[8].mxu1 %v7202_v7  ;;  %6298 = vmatprep.subr.bf16.mxu1 %v7217_v25  ;;  %v7990_v63 = vsel %vm2207_vm3, %v2209_v50, %v2211_v60  ;;  %v7231_v7 = vld [vmem:[%s7802_s17 + $0x50] sm:$0xff]   ;;  %v3499_v21 = vrot.slane %v7233_v14, 2 }
  0xb4   : > { %6471 = vmatmul.mubr.bf16.gmra.mrb[8].mxu0 %v3070_v20  ;;  %6266 = vmatprep.mubr.bf16.mxu1 %v7207_v16  ;;  %v3497_v12 = vrot.slane %v7231_v7, 2  ;;  %v1760_v16 = vshrl.u32 %v5719_v1, 16  ;;  %v7237_v20 = vld [vmem:[%s7802_s17 + $0x60] sm:$0xff]   ;;  %v8046_v7 = vld [vmem:[%s7802_s17 + $0x38] sm:$0xff]  }
  0xb5   : > { %6507 = vmatpush3.bf16.msra.mxu0 %v7204_v9  ;;  %6474 = vmatprep.mubr.bf16.mxu0 %v3079_v23  ;;  %v3495_v9 = vrot.slane %v7921_v6, 2 }
  0xb6   : > { %6508 = vmatprep.subr.bf16.mxu0 %v7206_v22  ;;  %6299 = vmatpush3.bf16.msra.mxu1 %v7217_v25  ;;  %v1765_v23 = vor.u32 %v1764_v18, %v1760_v16  ;;  %v8007_v25 = vld [vmem:[%s7802_s17 + $0x18] sm:$0xff]   ;;  %v8056_v18 = vld [vmem:[%s7802_s17 + $0x90] sm:$0xff]  }
  0xb7   : > { %6300 = vmatprep.subr.bf16.mxu1 %v7221_v2  ;;  %v3496_v17 = vsel %vm3479_vm2, %v3493_v55, %v3495_v9  ;;  %v3498_v6 = vsel %vm3479_vm2, %v3495_v9, %v3497_v12  ;;  %v1783_v38 = vshll.u32 %v8007_v25, 16  ;;  %v8035_v55 = vld [vmem:[%s7804_s18 + $0x1c0] sm:$0xff]  }
  0xb9   : > { %6509 = vmatpush3.bf16.msra.mxu0 %v7206_v22  ;;  %v7257_v22 = vld [vmem:[%s7804_s18 + $0x1b0] sm:$0xff]  }
  0xba   : > { %6510 = vmatprep.subr.bf16.mxu0 %v7211_v30  ;;  %6301 = vmatpush3.bf16.msra.mxu1 %v7221_v2  ;;  %v1775_v2 = vshll.u32 %v7978_v58, 16 }
  0xbb   : > { %6267 = vmatmul.mubr.bf16.gmra.mrb[12].mxu1 %v7209_v27  ;;  %6302 = vmatprep.subr.bf16.mxu1 %v7225_v36  ;;  %v3501_v27 = vrot.slane %v7237_v20, 2 }
  0xbc   : > { %6475 = vmatmul.mubr.bf16.gmra.mrb[12].mxu0 %v3088_v34  ;;  %6270 = vmatprep.mubr.bf16.mxu1 %v7214_v33  ;;  %v3500_v33 = vsel %vm3479_vm2, %v3497_v12, %v3499_v21  ;;  %v1770_v34 = vsel %vm1758_vm4, %v1765_v23, %v1769_v24 }
  0xbd   : > { %6511 = vmatpush3.bf16.msra.mxu0 %v7211_v30  ;;  %6514 = vmatprep.mubr.bf16.mxu0 %v3482_v5  ;;  %v7232_v30 = vld [vmem:[%s7802_s17 + $0x88] sm:$0xff]   ;;  %v1779_v5 = vshrl.u32 %v7978_v58, 16 }
  0xbe   : > { %6512 = vmatprep.subr.bf16.mxu0 %v7213_v35  ;;  %6303 = vmatpush3.bf16.msra.mxu1 %v7225_v36  ;;  %v7243_v36 = vld [vmem:[%s7802_s17 + $0x70] sm:$0xff]  }
  0xbf   : > { %6304 = vmatprep.subr.bf16.mxu1 %v7230_v42  ;;  %v3505_v15 = vrot.slane %v7243_v36, 2  ;;  %v8074_v36 = vld [vmem:[%s7802_s17 + $0x50] sm:$0xff]  }
  0xc0   : > { %v8141_v58 = vld [vmem:[%s7804_s18 + $0xc0] sm:$0xff]  }
  0xc1   : > { %6513 = vmatpush3.bf16.msra.mxu0 %v7213_v35  ;;  %v7240_v35 = vld [vmem:[%s7802_s17 + $0x68] sm:$0xff]  }
  0xc2   : > { %6550 = vmatprep.subr.bf16.mxu0 %v7220_v40  ;;  %6305 = vmatpush3.bf16.msra.mxu1 %v7230_v42  ;;  %v3503_v42 = vrot.slane %v7240_v35, 2  ;;  %v3513_v35 = vrot.slane %v8056_v18, 2 }
  0xc3   : > { %6271 = vmatmul.mubr.bf16.gmra.mrb[16].mxu1 %v7216_v37  ;;  %6342 = vmatprep.subr.bf16.mxu1 %v7963_v52  ;;  %v3502_v37 = vsel %vm3479_vm2, %v3499_v21, %v3501_v27  ;;  %v8062_v21 = vld [vmem:[%s7802_s17 + $0x40] sm:$0xff]  }
  0xc4   : > { %6515 = vmatmul.mubr.bf16.vlgmr.msra.gmra.mrb[0].mxu0 %v3484_v44  ;;  %6274 = vmatprep.mubr.bf16.mxu1 %v7218_v41  ;;  %v1777_v41 = vrot.slane %v1775_v2, 1  ;;  %v8024_v44 = vld [vmem:[%s7802_s17 + $0x28] sm:$0xff]   ;;  %v7256_v2 = vld [vmem:[%s7802_s17 + $0x98] ss:$0 sps:$4 sm:$0x33]  }
  0xc5   : > { %6518 = vmatprep.mubr.bf16.mxu0 %v3486_v45  ;;  %6551 = vmatpush3.bf16.msra.mxu0 %v7220_v40  ;;  %v1773_v40 = vor.u32 %v1771_v32, %v1769_v24  ;;  %v1799_v43 = vshll.u32 %v8024_v44, 16 }
  0xc6   : > { %6552 = vmatprep.subr.bf16.mxu0 %v7224_v46  ;;  %v1781_v45 = vor.u32 %v1779_v5, %v1777_v41  ;;  %v1823_v5 = vshll.u32 %v8062_v21, 16 }
  0xc7   : > { %v1801_v9 = vrot.slane %v1799_v43, 1 }
  0xc9   : > { %6553 = vmatpush3.bf16.msra.mxu0 %v7224_v46  ;;  %v1785_v46 = vrot.slane %v1783_v38, 1 }
  0xca   : > { %6554 = vmatprep.subr.bf16.mxu0 %v7228_v47 }
  0xcb   : > { %6275 = vmatmul.mubr.bf16.gmra.mrb[20].mxu1 %v7219_v48  ;;  %v1787_v48 = vshrl.u32 %v8007_v25, 16  ;;  %v1786_v56 = vsel %vm1758_vm4, %v1781_v45, %v1785_v46 }
  0xcc   : > { %6519 = vmatmul.mubr.bf16.gmra.mrb[4].mxu0 %v3488_v51  ;;  %6278 = vmatprep.mubr.bf16.mxu1 %v7222_v49  ;;  %v7245_v49 = vld [vmem:[%s7802_s17 + $0x78] sm:$0xff]  }
  0xcd   : > { %6522 = vmatprep.mubr.bf16.mxu0 %v3490_v53  ;;  %6555 = vmatpush3.bf16.msra.mxu0 %v7228_v47  ;;  %v1778_v47 = vsel %vm1758_vm4, %v1773_v40, %v1777_v41  ;;  %v7246_v51 = vld [vmem:[%s7804_s18 + $0x88] sm:$0xff]   ;;  %v1795_v53 = vshrl.u32 %v8021_v39, 16  ;;  %v1789_v1 = vor.u32 %v1787_v48, %v1785_v46  ;;  %v1819_v40 = vshrl.u32 %v8046_v7, 16 }
  0xce   : > { %6556 = vmatprep.subr.bf16.mxu0 %v7234_v31  ;;  %v8080_v41 = vld [vmem:[%s7802_s17 + $0x18] sm:$0xff]   ;;  %v1827_v46 = vshrl.u32 %v8062_v21, 16 }
  0xcf   : > { %v7271_v48 = vld [vmem:[%s7804_s18 + $0xa8] sm:$0xff]  }
  0xd1   : > { %6557 = vmatpush3.bf16.msra.mxu0 %v7234_v31  ;;  %v3504_v31 = vsel %vm3479_vm2, %v3501_v27, %v3503_v42 }
  0xd2   : > { %6558 = vmatprep.subr.bf16.mxu0 %v7241_v59 }
  0xd3   : > { %6279 = vmatmul.mubr.bf16.gmra.mrb[24].mxu1 %v7223_v61  ;;  %v1793_v61 = vrot.slane %v1791_v26, 1 }
  0xd4   : > { %6523 = vmatmul.mubr.bf16.gmra.mrb[8].mxu0 %v3492_v0  ;;  %6282 = vmatprep.mubr.bf16.mxu1 %v7226_v62  ;;  %v7248_v62 = vld [vmem:[%s7802_s17 + $0x80] sm:$0xff]   ;;  %v8041_v0 = vld [vmem:[%s7802_s17 + $0x30] sm:$0xff]  }
  0xd5   : > { %6526 = vmatprep.mubr.bf16.mxu0 %v3494_v3  ;;  %6559 = vmatpush3.bf16.msra.mxu0 %v7241_v59  ;;  %v3506_v59 = vsel %vm3479_vm2, %v3503_v42, %v3505_v15  ;;  %v3507_v3 = vrot.slane %v7245_v49, 2  ;;  %v1807_v12 = vshll.u32 %v8041_v0, 16  ;;  %v1794_v14 = vsel %vm1758_vm4, %v1789_v1, %v1793_v61  ;;  %v8097_v1 = vld [vmem:[%s7802_s17 + $0x58] sm:$0xff]  }
  0xd6   : > { %6560 = vmatprep.subr.bf16.mxu0 %v7249_v8  ;;  %v1811_v16 = vshrl.u32 %v8041_v0, 16  ;;  %v1825_v49 = vrot.slane %v1823_v5, 1  ;;  %v1847_v18 = vshll.u32 %v8097_v1, 16 }
  0xd7   : > { %v3508_v19 = vsel %vm3479_vm2, %v3505_v15, %v3507_v3  ;;  %v1809_v23 = vrot.slane %v1807_v12, 1 }
  0xd9   : > { %6561 = vmatpush3.bf16.msra.mxu0 %v7249_v8  ;;  %v1797_v8 = vor.u32 %v1795_v53, %v1793_v61  ;;  %v1813_v32 = vor.u32 %v1811_v16, %v1809_v23  ;;  %v1839_v53 = vshll.u32 %v8074_v36, 16  ;;  %v1829_v61 = vor.u32 %v1827_v46, %v1825_v49 }
  0xda   : > { %6562 = vmatprep.subr.bf16.mxu0 %v7257_v22  ;;  %v2221_v46 = vrot.slane %v8046_v7, 1 }
  0xdb   : > { %6283 = vmatmul.mubr.bf16.gmra.mrb[28].mxu1 %v7227_v11  ;;  %v3509_v11 = vrot.slane %v7248_v62, 2 }
  0xdc   : > { %6527 = vmatmul.mubr.bf16.gmra.mrb[12].mxu0 %v3496_v17  ;;  %6286 = vmatprep.mubr.bf16.mxu1 %v7229_v13  ;;  %v7251_v13 = vld [vmem:[%s7802_s17 + $0x88] sm:$0xff]   ;;  %v1815_v17 = vshll.u32 %v8046_v7, 16 }
  0xdd   : > { %6530 = vmatprep.mubr.bf16.mxu0 %v3498_v6  ;;  %6563 = vmatpush3.bf16.msra.mxu0 %v7257_v22  ;;  %v1802_v6 = vsel %vm1758_vm4, %v1797_v8, %v1801_v9  ;;  %v3510_v20 = vsel %vm3479_vm2, %v3507_v3, %v3509_v11  ;;  %v7258_v22 = vld [vmem:[%s7804_s18 + $0x98] sm:$0xff]   ;;  %v3511_v24 = vrot.slane %v7251_v13, 2  ;;  %v7277_v8 = vld [vmem:[%s7804_s18 + $0xb0] sm:$0xff]  }
  0xde   : > { %6564 = vmatprep.subr.bf16.mxu0 %v7259_v29 }
  0xdf   : > { %v3512_v42 = vsel %vm3479_vm2, %v3509_v11, %v3511_v24  ;;  %v3514_v26 = vsel %vm3479_vm2, %v3511_v24, %v3513_v35  ;;  %v2215_v24 = vrot.slane %v8021_v39, 1 }
  0xe1   : > { %6565 = vmatpush3.bf16.msra.mxu0 %v7259_v29  ;;  %v1817_v29 = vrot.slane %v1815_v17, 1 }
  0xe2   : > { %6602 = vmatprep.subr.bf16.mxu0 %v8035_v55 }
  0xe3   : > { %6287 = vmatmul.mubr.bf16.gmra.mrb[32].mxu1 %v7232_v30  ;;  %v8066_v30 = vld [vmem:[%s7802_s17 + $0x48] sm:$0xff]   ;;  %v1818_v45 = vsel %vm1758_vm4, %v1813_v32, %v1817_v29  ;;  %v1821_v43 = vor.u32 %v1819_v40, %v1817_v29  ;;  %v2217_v32 = vrot.slane %v8024_v44, 1 }
  0xe4   : > { %6531 = vmatmul.mubr.bf16.gmra.mrb[16].mxu0 %v3500_v33  ;;  %6306 = vmatprep.mubr.bf16.mxu1 %v1770_v34  ;;  %v3796_v33 = vld [vmem:[%s7802_s17 + $0x10] sm:$0xc]  ;;  %v3797_v34 = vld [vmem:[%s7802_s17 + $0x14] sm:$0xf]  ;;  %v1831_v15 = vshll.u32 %v8066_v30, 16  ;;  %v8125_v29 = vld [vmem:[%s7802_s17 + $0x68] sm:$0xff]  }
  0xe5   : > { %6534 = vmatprep.mubr.bf16.mxu0 %v3502_v37  ;;  %v7265_v37 = vld [vmem:[%s7804_s18 + $0xa0] sm:$0xff]   ;;  %v1826_v13 = vsel %vm1758_vm4, %v1821_v43, %v1825_v49 }
  0xe6   : > { %v1833_v62 = vrot.slane %v1831_v15, 1  ;;  %v8160_v15 = vld [vmem:[%s7802_s17 + $0x38] sm:$0xff]  }
  0xe8   : > { %v1834_v17 = vsel %vm1758_vm4, %v1829_v61, %v1833_v62  ;;  %v8177_v61 = vld [vmem:[%s7802_s17 + $0x78] sm:$0xff]  }
  0xeb   : > { %6307 = vmatmul.mubr.bf16.vlgmr.msra.gmra.mrb[0].mxu1 %v1778_v47  ;;  %v8087_v47 = vcombine.low %v3796_v33, %v3797_v34  ;;  %v8138_v33 = vld [vmem:[%s7802_s17 + $0x30] sm:$0xff]   ;;  %v2219_v34 = vrot.slane %v8041_v0, 1 }
  0xec   : > { %6535 = vmatmul.mubr.bf16.gmra.mrb[20].mxu0 %v3504_v31  ;;  %6343 = vmatpush3.bf16.msra.mxu1 %v7963_v52  ;;  %v1803_v52 = vshrl.u32 %v8024_v44, 16  ;;  %v8092_v31 = vld [vmem:[%s7802_s17 + $0x20] sm:$0xff]   ;;  %v3950_v43 = vrot.slane %v8138_v33, 2 }
  0xed   : > { %6310 = vmatprep.mubr.bf16.mxu1 %v1786_v56  ;;  %6538 = vmatprep.mubr.bf16.mxu0 %v3506_v59  ;;  %v3944_v56 = vrot.slane %v8080_v41, 2  ;;  %v1835_v59 = vshrl.u32 %v8066_v30, 16  ;;  %v3943_v3 = vrot.slane %v8087_v47, 2  ;;  %v3946_v11 = vrot.slane %v8092_v31, 2 }
  0xee   : > { %6344 = vmatprep.subr.bf16.mxu1 %v7246_v51  ;;  %v1805_v27 = vor.u32 %v1803_v52, %v1801_v9  ;;  %v2186_v9 = vld [vmem:[%s7802_s17] sm:$0xe]  ;;  %v8107_v52 = vld [vmem:[%s7802_s17 + $0x28] sm:$0xff]  }
  0xef   : > { %v5762_v12 = vcombine.low %v2186_v9, %v7975_v57  ;;  %v2213_v57 = vrot.slane %v8007_v25, 1  ;;  %v3948_v39 = vrot.slane %v8107_v52, 2  ;;  %v3947_v5 = vsel %vm3479_vm2, %v3944_v56, %v3946_v11 }
  0xf0   : > { %6345 = vmatpush3.bf16.msra.mxu1 %v7246_v51  ;;  %v1810_v38 = vsel %vm1758_vm4, %v1805_v27, %v1809_v23  ;;  %v3515_v51 = vrot.slane %v7256_v2, 2  ;;  %v1837_v27 = vor.u32 %v1835_v59, %v1833_v62  ;;  %v1849_v2 = vrot.slane %v1847_v18, 1 }
  0xf1   : > { %6346 = vmatprep.subr.bf16.mxu1 %v7252_v10  ;;  %v8130_v25 = vsel %vm2207_vm3, %v2211_v60, %v2213_v57  ;;  %v8144_v60 = vsel %vm2207_vm3, %v2215_v24, %v2217_v32  ;;  %v3949_v0 = vsel %vm3479_vm2, %v3946_v11, %v3948_v39  ;;  %v2225_v62 = vrot.slane %v8066_v30, 1 }
  0xf2   : > { %v3516_v16 = vsel %vm3479_vm2, %v3513_v35, %v3515_v51  ;;  %v8166_v51 = vld [vmem:[%s7802_s17 + $0x70] sm:$0xff]   ;;  %v2227_v30 = vrot.slane %v8074_v36, 1  ;;  %v2229_v18 = vrot.slane %v8097_v1, 1 }
  0xf3   : > { %6311 = vmatmul.mubr.bf16.gmra.mrb[4].mxu1 %v1794_v14  ;;  %v1843_v14 = vshrl.u32 %v8074_v36, 16  ;;  %v1871_v9 = vshll.u32 %v8166_v51, 16 }
  0xf4   : > { %6539 = vmatmul.mubr.bf16.gmra.mrb[24].mxu0 %v3508_v19  ;;  %6314 = vmatprep.mubr.bf16.mxu1 %v1802_v6  ;;  %v2208_v19 = vrot.slane %v5762_v12, 1  ;;  %v3945_v6 = vsel %vm3479_vm2, %v3943_v3, %v3944_v56  ;;  %v3952_v3 = vrot.slane %v8160_v15, 2  ;;  %v1867_v12 = vshrl.u32 %v8125_v29, 16 }
  0xf5   : > { %6542 = vmatprep.mubr.bf16.mxu0 %v3510_v20  ;;  %6347 = vmatpush3.bf16.msra.mxu1 %v7252_v10  ;;  %v1841_v10 = vrot.slane %v1839_v53, 1  ;;  %v7284_v20 = vld [vmem:[%s7804_s18 + $0xb8] sm:$0xff]   ;;  %v8169_v53 = vsel %vm2207_vm3, %v2219_v34, %v2221_v46  ;;  %v1873_v36 = vrot.slane %v1871_v9, 1 }
  0xf6   : > { %6348 = vmatprep.subr.bf16.mxu1 %v7258_v22  ;;  %v8121_v23 = vsel %vm2207_vm3, %v2208_v19, %v2209_v50  ;;  %v8134_v50 = vsel %vm2207_vm3, %v2213_v57, %v2215_v24  ;;  %v3953_v19 = vsel %vm3479_vm2, %v3950_v43, %v3952_v3  ;;  %v8203_v57 = vsel %vm2207_vm3, %v2225_v62, %v2227_v30  ;;  %v7280_v24 = vld [vmem:[%s7802_s17 + $0x80] sm:$0xff]  }
  0xf7   : > { %v1845_v54 = vor.u32 %v1843_v14, %v1841_v10  ;;  %v1842_v35 = vsel %vm1758_vm4, %v1837_v27, %v1841_v10  ;;  %v8207_v27 = vsel %vm2207_vm3, %v2227_v30, %v2229_v18  ;;  %v8244_v30 = vld [vmem:[%s7802_s17 + $0x60] sm:$0xff]  }
  0xf9   : > { %6349 = vmatpush3.bf16.msra.mxu1 %v7258_v22  ;;  %v8116_v22 = vld [vmem:[%s7802_s17 + $0x60] sm:$0xff]   ;;  %v1850_v40 = vsel %vm1758_vm4, %v1845_v54, %v1849_v2 }
  0xfa   : > { %6350 = vmatprep.subr.bf16.mxu1 %v7265_v37  ;;  %v1855_v44 = vshll.u32 %v8116_v22, 16  ;;  %v2231_v54 = vrot.slane %v8116_v22, 1 }
  0xfb   : > { %6315 = vmatmul.mubr.bf16.gmra.mrb[8].mxu1 %v1810_v38  ;;  %v1863_v38 = vshll.u32 %v8125_v29, 16 }
  0xfc   : > { %6543 = vmatmul.mubr.bf16.gmra.mrb[28].mxu0 %v3512_v42  ;;  %6318 = vmatprep.mubr.bf16.mxu1 %v1818_v45  ;;  %v1859_v42 = vshrl.u32 %v8116_v22, 16  ;;  %v8155_v45 = vsel %vm2207_vm3, %v2217_v32, %v2219_v34  ;;  %v1857_v49 = vrot.slane %v1855_v44, 1  ;;  %v7283_v44 = vld [vmem:[%s7802_s17 + $0x88] sm:$0xff]   ;;  %v2233_v34 = vrot.slane %v8125_v29, 1  ;;  %v8225_v29 = vld [vmem:[%s7802_s17 + $0x50] sm:$0xff]  }
  0xfd   : > { %6546 = vmatprep.mubr.bf16.mxu0 %v3514_v26  ;;  %6351 = vmatpush3.bf16.msra.mxu1 %v7265_v37  ;;  %v1851_v37 = vshrl.u32 %v8097_v1, 16  ;;  %v7276_v26 = vld [vmem:[%s7804_s18 + $0x1c8] sm:$0xff]   ;;  %v1865_v56 = vrot.slane %v1863_v38, 1  ;;  %v1887_v38 = vshll.u32 %v7280_v24, 16 }
  0xfe   : > { %6352 = vmatprep.subr.bf16.mxu1 %v7271_v48  ;;  %v8219_v22 = vsel %vm2207_vm3, %v2231_v54, %v2233_v34 }
  0xff   : > { %v1853_v7 = vor.u32 %v1851_v37, %v1849_v2  ;;  %v1869_v1 = vor.u32 %v1867_v12, %v1865_v56  ;;  %v8216_v37 = vsel %vm2207_vm3, %v2229_v18, %v2231_v54 }
 0x101   : > { %6353 = vmatpush3.bf16.msra.mxu1 %v7271_v48  ;;  %v2223_v48 = vrot.slane %v8062_v21, 1  ;;  %v1861_v21 = vor.u32 %v1859_v42, %v1857_v49  ;;  %v1858_v11 = vsel %vm1758_vm4, %v1853_v7, %v1857_v49  ;;  %v1895_v49 = vshll.u32 %v7283_v44, 16  ;;  %v8230_v7 = vld [vmem:[%s7802_s17 + $0x58] sm:$0xff]  }
 0x102   : > { %6354 = vmatprep.subr.bf16.mxu1 %v7277_v8 }
 0x103   : > { %6319 = vmatmul.mubr.bf16.gmra.mrb[12].mxu1 %v1826_v13  ;;  %v8173_v59 = vsel %vm2207_vm3, %v2221_v46, %v2223_v48  ;;  %v8184_v10 = vsel %vm2207_vm3, %v2223_v48, %v2225_v62  ;;  %v8190_v13 = vld [vmem:[%s7802_s17 + $0x40] sm:$0xff]   ;;  %v1866_v14 = vsel %vm1758_vm4, %v1861_v21, %v1865_v56  ;;  %v1883_v46 = vshrl.u32 %v8177_v61, 16 }
 0x104   : > { %6547 = vmatmul.mubr.bf16.gmra.mrb[32].mxu0 %v3516_v16  ;;  %6322 = vmatprep.mubr.bf16.mxu1 %v1834_v17  ;;  %v1875_v16 = vshrl.u32 %v8166_v51, 16  ;;  %v1879_v17 = vshll.u32 %v8177_v61, 16  ;;  %v3954_v32 = vrot.slane %v8190_v13, 2  ;;  %v1891_v48 = vshrl.u32 %v7280_v24, 16  ;;  %v7298_v21 = vld [vmem:[%s7804_s18 + $0x1e8] sm:$0xff]  }
 0x105   : > { %6566 = vmatprep.mubr.bf16.mxu0 %v3945_v6  ;;  %6355 = vmatpush3.bf16.msra.mxu1 %v7277_v8  ;;  %v7282_v8 = vld [vmem:[%s7804_s18 + $0x1d0] sm:$0xff]   ;;  %v1897_v12 = vrot.slane %v1895_v49, 1 }
 0x106   : > { %6356 = vmatprep.subr.bf16.mxu1 %v7284_v20  ;;  %v8199_v6 = vld [vmem:[%s7802_s17 + $0x48] sm:$0xff]   ;;  %v1877_v2 = vor.u32 %v1875_v16, %v1873_v36  ;;  %v3955_v42 = vsel %vm3479_vm2, %v3952_v3, %v3954_v32  ;;  %v1889_v3 = vrot.slane %v1887_v38, 1  ;;  %v3960_v16 = vrot.slane %v8230_v7, 2 }
 0x107   : > { %v7305_v38 = vld [vmem:[%s7804_s18 + $0x1f8] sm:$0xff]  }
 0x109   : > { %6357 = vmatpush3.bf16.msra.mxu1 %v7284_v20  ;;  %v7288_v20 = vld [vmem:[%s7804_s18 + $0x1d8] sm:$0xff]  }
 0x10a   : > { %6394 = vmatprep.subr.bf16.mxu1 %v8141_v58 }
 0x10b   : > { %6323 = vmatmul.mubr.bf16.gmra.mrb[16].mxu1 %v1842_v35  ;;  %v3956_v35 = vrot.slane %v8199_v6, 2 }
 0x10c   : > { %6567 = vmatmul.mubr.bf16.vlgmr.msra.gmra.mrb[0].mxu0 %v3947_v5  ;;  %6326 = vmatprep.mubr.bf16.mxu1 %v1850_v40  ;;  %v7293_v5 = vld [vmem:[%s7804_s18 + $0x1e0] sm:$0xff]   ;;  %v1874_v40 = vsel %vm1758_vm4, %v1869_v1, %v1873_v36 }
 0x10d   : > { %6570 = vmatprep.mubr.bf16.mxu0 %v3949_v0  ;;  %6603 = vmatpush3.bf16.msra.mxu0 %v8035_v55  ;;  %v3951_v55 = vsel %vm3479_vm2, %v3948_v39, %v3950_v43  ;;  %v1881_v39 = vrot.slane %v1879_v17, 1  ;;  %v2235_v0 = vrot.slane %v8166_v51, 1  ;;  %v2237_v43 = vrot.slane %v8177_v61, 1  ;;  %v7286_v51 = vld [vmem:[%s7802_s17 + $0x90] ss:$0 sps:$4 sm:$0x11]  }
 0x10e   : > { %6604 = vmatprep.subr.bf16.mxu0 %v7276_v26  ;;  %v3957_v56 = vsel %vm3479_vm2, %v3954_v32, %v3956_v35  ;;  %v3958_v61 = vrot.slane %v8225_v29, 2  ;;  %v7303_v17 = vld [vmem:[%s7804_s18 + $0x1f0] sm:$0xff]   ;;  %v2243_v1 = vrot.slane %v7286_v51, 1  ;;  %v4371_v32 = vshrl.u32 %v8244_v30, 16 }
 0x10f   : > { %v8236_v62 = vsel %vm2207_vm3, %v2233_v34, %v2235_v0  ;;  %v1885_v9 = vor.u32 %v1883_v46, %v1881_v39  ;;  %v8262_v34 = vld [vmem:[%s7802_s17 + $0x70] sm:$0xff]  }
 0x110   : > { %v3959_v54 = vsel %vm3479_vm2, %v3956_v35, %v3958_v61  ;;  %v4389_v49 = vshrl.u32 %v8262_v34, 16 }
 0x111   : > { %6605 = vmatpush3.bf16.msra.mxu0 %v7276_v26  ;;  %v1882_v26 = vsel %vm1758_vm4, %v1877_v2, %v1881_v39  ;;  %v8259_v39 = vld [vmem:[%s7802_s17 + $0x68] sm:$0xff]  }
 0x112   : > { %6606 = vmatprep.subr.bf16.mxu0 %v7282_v8  ;;  %v4380_v46 = vshrl.u32 %v8259_v39, 16 }
 0x113   : > { %6327 = vmatmul.mubr.bf16.gmra.mrb[20].mxu1 %v1858_v11  ;;  %v2239_v11 = vrot.slane %v7280_v24, 1  ;;  %v1890_v24 = vsel %vm1758_vm4, %v1885_v9, %v1889_v3  ;;  %v8280_v9 = vld [vmem:[%s7804_s18 + $0x200] sm:$0xff]  }
 0x114   : > { %6571 = vmatmul.mubr.bf16.gmra.mrb[4].mxu0 %v3951_v55  ;;  %6330 = vmatprep.mubr.bf16.mxu1 %v1866_v14  ;;  %v1893_v55 = vor.u32 %v1891_v48, %v1889_v3  ;;  %v2241_v14 = vrot.slane %v7283_v44, 1  ;;  %v4383_v48 = vshll.u32 %v8259_v39, 16  ;;  %v4392_v3 = vshll.u32 %v8262_v34, 16 }
 0x115   : > { %6574 = vmatprep.mubr.bf16.mxu0 %v3953_v19  ;;  %6607 = vmatpush3.bf16.msra.mxu0 %v7282_v8  ;;  %v8240_v8 = vsel %vm2207_vm3, %v2235_v0, %v2237_v43  ;;  %v8249_v18 = vsel %vm2207_vm3, %v2237_v43, %v2239_v11  ;;  %v1899_v19 = vshrl.u32 %v7283_v44, 16  ;;  %v4374_v44 = vshll.u32 %v8244_v30, 16 }
 0x116   : > { %6608 = vmatprep.subr.bf16.mxu0 %v7288_v20  ;;  %v8252_v36 = vsel %vm2207_vm3, %v2239_v11, %v2241_v14  ;;  %v1898_v2 = vsel %vm1758_vm4, %v1893_v55, %v1897_v12  ;;  %v4373_v0 = vrot.slane %v4371_v32, 2  ;;  %v3962_v43 = vrot.slane %v8244_v30, 2 }
 0x117   : > { %v4385_v11 = vrot.slane %v4383_v48, 3  ;;  %v4394_v55 = vrot.slane %v4392_v3, 3  ;;  %v8313_v48 = vld [vmem:[%s7802_s17 + $0x88] sm:$0xff]  }
 0x119   : > { %6609 = vmatpush3.bf16.msra.mxu0 %v7288_v20  ;;  %v1903_v20 = vshll.u32 %v7286_v51, 16  ;;  %v3964_v51 = vrot.slane %v8259_v39, 2 }
 0x11a   : > { %6610 = vmatprep.subr.bf16.mxu0 %v7293_v5 }
 0x11b   : > { %6331 = vmatmul.mubr.bf16.gmra.mrb[24].mxu1 %v1874_v40  ;;  %v8268_v40 = vsel %vm2207_vm3, %v2241_v14, %v2243_v1  ;;  %v1905_v35 = vrot.slane %v1903_v20, 1 }
 0x11c   : > { %6575 = vmatmul.mubr.bf16.gmra.mrb[8].mxu0 %v3955_v42  ;;  %6334 = vmatprep.mubr.bf16.mxu1 %v1882_v26  ;;  %v1901_v42 = vor.u32 %v1899_v19, %v1897_v12  ;;  %v4376_v26 = vrot.slane %v4374_v44, 3 }
 0x11d   : > { %6578 = vmatprep.mubr.bf16.mxu0 %v3957_v56  ;;  %6611 = vmatpush3.bf16.msra.mxu0 %v7293_v5  ;;  %v3961_v5 = vsel %vm3479_vm2, %v3958_v61, %v3960_v16  ;;  %v8275_v56 = vld [vmem:[%s7802_s17 + $0x78] sm:$0xff]   ;;  %v4391_v61 = vrot.slane %v4389_v49, 2 }
 0x11e   : > { %6612 = vmatprep.subr.bf16.mxu0 %v7298_v21  ;;  %v4398_v12 = vshrl.u32 %v8275_v56, 16  ;;  %v1906_v14 = vsel %vm1758_vm4, %v1901_v42, %v1905_v35  ;;  %v8284_v19 = vor.u32 %v4376_v26, %v4373_v0  ;;  %v3968_v42 = vrot.slane %v8275_v56, 2  ;;  %v8308_v0 = vld [vmem:[%s7802_s17 + $0x80] sm:$0xff]  }
 0x11f   : > { %v4395_v1 = vor.u32 %v4394_v55, %v4391_v61  ;;  %v3970_v49 = vrot.slane %v8308_v0, 2  ;;  %v4282_v55 = vshrl.u32 %v8087_v47, 16 }
 0x120   : > { %v4400_v32 = vrot.slane %v4398_v12, 2  ;;  %v4285_v12 = vshll.u32 %v8087_v47, 16 }
 0x121   : > { %6613 = vmatpush3.bf16.msra.mxu0 %v7298_v21  ;;  %v4382_v21 = vrot.slane %v4380_v46, 2  ;;  %v3971_v3 = vsel %vm3479_vm2, %v3968_v42, %v3970_v49 }
 0x122   : > { %6614 = vmatprep.subr.bf16.mxu0 %v7303_v17 }
 0x123   : > { %6335 = vmatmul.mubr.bf16.gmra.mrb[28].mxu1 %v1890_v24  ;;  %v4386_v20 = vor.u32 %v4385_v11, %v4382_v21  ;;  %v3963_v24 = vsel %vm3479_vm2, %v3960_v16, %v3962_v43  ;;  %v3972_v21 = vrot.slane %v8313_v48, 2  ;;  %v7304_v11 = vld [vmem:[%s7804_s18 + $0xd8] sm:$0xff]  }
 0x124   : > { %6579 = vmatmul.mubr.bf16.gmra.mrb[12].mxu0 %v3959_v54  ;;  %6338 = vmatprep.mubr.bf16.mxu1 %v1898_v2  ;;  %v3965_v54 = vsel %vm3479_vm2, %v3962_v43, %v3964_v51  ;;  %v7300_v43 = vld [vmem:[%s7804_s18 + $0xd0] sm:$0xff]  }
 0x125   : > { %6582 = vmatprep.mubr.bf16.mxu0 %v3961_v5  ;;  %6615 = vmatpush3.bf16.msra.mxu0 %v7303_v17  ;;  %v4401_v17 = vshll.u32 %v8275_v56, 16  ;;  %v8292_v2 = vsel %vm4280_vm5, %v8284_v19, %v4386_v20  ;;  %v8295_v5 = vsel %vm4280_vm5, %v4386_v20, %v4395_v1  ;;  %v4293_v20 = vshll.u32 %v8080_v41, 16 }
 0x126   : > { %6616 = vmatprep.subr.bf16.mxu0 %v7305_v38 }
 0x127   : > { %v4403_v44 = vrot.slane %v4401_v17, 3  ;;  %v4773_v17 = vrot.slane %v8259_v39, 3  ;;  %v7308_v39 = vld [vmem:[%s7804_s18 + $0xe8] sm:$0xff]  }
 0x129   : > { %6617 = vmatpush3.bf16.msra.mxu0 %v7305_v38  ;;  %v8298_v16 = vor.u32 %v4403_v44, %v4400_v32  ;;  %v3966_v38 = vrot.slane %v8262_v34, 2  ;;  %v7302_v32 = vld [vmem:[%s7802_s17 + $0xa0] ss:$0 sps:$4 sm:$0x33]   ;;  %v4287_v44 = vrot.slane %v4285_v12, 3 }
 0x12a   : > { %6654 = vmatprep.subr.bf16.mxu0 %v8280_v9 }
 0x12b   : > { %6339 = vmatmul.mubr.bf16.gmra.mrb[32].mxu1 %v1906_v14  ;;  %v8304_v35 = vsel %vm4280_vm5, %v4395_v1, %v8298_v16  ;;  %v3967_v46 = vsel %vm3479_vm2, %v3964_v51, %v3966_v38  ;;  %v3969_v26 = vsel %vm3479_vm2, %v3966_v38, %v3968_v42  ;;  %v8323_v51 = vld [vmem:[%s7802_s17 + $0x90] sm:$0xff]   ;;  %v4290_v14 = vshrl.u32 %v8080_v41, 16 }
 0x12c   : > { %6583 = vmatmul.mubr.bf16.gmra.mrb[16].mxu0 %v3963_v24  ;;  %6358 = vmatprep.mubr.bf16.mxu1 %v8121_v23  ;;  %v7296_v23 = vld [vmem:[%s7804_s18 + $0xc8] sm:$0xff]   ;;  %v4775_v41 = vrot.slane %v8262_v34, 3  ;;  %v4295_v42 = vrot.slane %v4293_v20, 3  ;;  %v4302_v34 = vshll.u32 %v8092_v31, 16  ;;  %v7312_v20 = vld [vmem:[%s7804_s18 + $0xf8] sm:$0xff]  }
 0x12d   : > { %6586 = vmatprep.mubr.bf16.mxu0 %v3965_v54  ;;  %v4284_v54 = vrot.slane %v4282_v55, 2  ;;  %v4292_v38 = vrot.slane %v4290_v14, 2 }
 0x133   : > { %6359 = vmatmul.mubr.bf16.vlgmr.msra.gmra.mrb[0].mxu1 %v7990_v63  ;;  %v8326_v63 = vld [vmem:[%s7802_s17 + $0x98] sm:$0xff]  }
 0x134   : > { %6587 = vmatmul.mubr.bf16.gmra.mrb[20].mxu0 %v3967_v46  ;;  %6395 = vmatpush3.bf16.msra.mxu1 %v8141_v58  ;;  %v3973_v58 = vsel %vm3479_vm2, %v3970_v49, %v3972_v21  ;;  %v3976_v61 = vrot.slane %v8326_v63, 2  ;;  %v8353_v46 = vsel %vm4751_vm6, %v4773_v17, %v4775_v41  ;;  %v4777_v49 = vrot.slane %v8275_v56, 3 }
 0x135   : > { %6362 = vmatprep.mubr.bf16.mxu1 %v8130_v25  ;;  %6590 = vmatprep.mubr.bf16.mxu0 %v3969_v26  ;;  %v3974_v25 = vrot.slane %v8323_v51, 2  ;;  %v3978_v26 = vrot.slane %v7302_v32, 2  ;;  %v4329_v32 = vshll.u32 %v8160_v15, 16 }
 0x136   : > { %6396 = vmatprep.subr.bf16.mxu1 %v7296_v23 }
 0x137   : > { %v3975_v24 = vsel %vm3479_vm2, %v3972_v21, %v3974_v25  ;;  %v3977_v1 = vsel %vm3479_vm2, %v3974_v25, %v3976_v61  ;;  %v4296_v21 = vor.u32 %v4295_v42, %v4292_v38  ;;  %v4304_v25 = vrot.slane %v4302_v34, 3  ;;  %v7309_v42 = vld [vmem:[%s7804_s18 + $0x208] sm:$0xff]  }
 0x138   : > { %6397 = vmatpush3.bf16.msra.mxu1 %v7296_v23  ;;  %v4299_v23 = vshrl.u32 %v8092_v31, 16  ;;  %v4331_v38 = vrot.slane %v4329_v32, 3  ;;  %v4338_v34 = vshll.u32 %v8190_v13, 16  ;;  %v7314_v32 = vld [vmem:[%s7804_s18 + $0x220] sm:$0xff]  }
 0x139   : > { %6398 = vmatprep.subr.bf16.mxu1 %v7300_v43 }
 0x13a   : > { %v4301_v31 = vrot.slane %v4299_v23, 2  ;;  %v4335_v23 = vshrl.u32 %v8190_v13, 16 }
 0x13b   : > { %6363 = vmatmul.mubr.bf16.gmra.mrb[4].mxu1 %v8134_v50  ;;  %v7306_v50 = vld [vmem:[%s7804_s18 + $0xe0] sm:$0xff]  }
 0x13c   : > { %6591 = vmatmul.mubr.bf16.gmra.mrb[24].mxu0 %v3971_v3  ;;  %6366 = vmatprep.mubr.bf16.mxu1 %v8144_v60  ;;  %v4771_v60 = vrot.slane %v8244_v30, 3  ;;  %v4311_v3 = vshll.u32 %v8107_v52, 16 }
 0x13d   : > { %6594 = vmatprep.mubr.bf16.mxu0 %v3973_v58  ;;  %6399 = vmatpush3.bf16.msra.mxu1 %v7300_v43  ;;  %v4288_v43 = vor.u32 %v4287_v44, %v4284_v54  ;;  %v7310_v58 = vld [vmem:[%s7804_s18 + $0xf0] sm:$0xff]  }
 0x13e   : > { %6400 = vmatprep.subr.bf16.mxu1 %v7304_v11  ;;  %v8347_v47 = vsel %vm4751_vm6, %v4771_v60, %v4773_v17  ;;  %v4313_v14 = vrot.slane %v4311_v3, 3  ;;  %v4320_v17 = vshll.u32 %v8138_v33, 16  ;;  %v7311_v3 = vld [vmem:[%s7804_s18 + $0x210] sm:$0xff]  }
 0x13f   : > { %v4297_v55 = vsel %vm4280_vm5, %v4288_v43, %v4296_v21 }
 0x140   : > { %v4322_v54 = vrot.slane %v4320_v17, 3  ;;  %v4356_v17 = vshll.u32 %v8225_v29, 16 }
 0x141   : > { %6401 = vmatpush3.bf16.msra.mxu1 %v7304_v11  ;;  %v3979_v11 = vsel %vm3479_vm2, %v3976_v61, %v3978_v26  ;;  %v4317_v61 = vshrl.u32 %v8138_v33, 16 }
 0x142   : > { %6402 = vmatprep.subr.bf16.mxu1 %v7306_v50 }
 0x143   : > { %6367 = vmatmul.mubr.bf16.gmra.mrb[8].mxu1 %v8155_v45  ;;  %v4308_v45 = vshrl.u32 %v8107_v52, 16 }
 0x144   : > { %6595 = vmatmul.mubr.bf16.gmra.mrb[28].mxu0 %v3975_v24  ;;  %6370 = vmatprep.mubr.bf16.mxu1 %v8169_v53  ;;  %v8365_v53 = vsel %vm4751_vm6, %v4775_v41, %v4777_v49  ;;  %v4319_v41 = vrot.slane %v4317_v61, 2  ;;  %v4353_v61 = vshrl.u32 %v8225_v29, 16 }
 0x145   : > { %6598 = vmatprep.mubr.bf16.mxu0 %v3977_v1  ;;  %6403 = vmatpush3.bf16.msra.mxu1 %v7306_v50  ;;  %v4310_v12 = vrot.slane %v4308_v45, 2  ;;  %v4305_v50 = vor.u32 %v4304_v25, %v4301_v31  ;;  %v4326_v1 = vshrl.u32 %v8160_v15, 16  ;;  %v4347_v45 = vshll.u32 %v8199_v6, 16 }
 0x146   : > { %6404 = vmatprep.subr.bf16.mxu1 %v7308_v39  ;;  %v4323_v26 = vor.u32 %v4322_v54, %v4319_v41  ;;  %v4355_v41 = vrot.slane %v4353_v61, 2  ;;  %v7325_v61 = vld [vmem:[%s7802_s17 + $0x28] sm:$0xff]  }
 0x147   : > { %v4314_v24 = vor.u32 %v4313_v14, %v4310_v12  ;;  %v4328_v44 = vrot.slane %v4326_v1, 2  ;;  %v4349_v12 = vrot.slane %v4347_v45, 3  ;;  %v7313_v14 = vld [vmem:[%s7804_s18 + $0x218] sm:$0xff]   ;;  %v4362_v1 = vshrl.u32 %v8230_v7, 16 }
 0x149   : > { %6405 = vmatpush3.bf16.msra.mxu1 %v7308_v39  ;;  %v8380_v39 = vld [vmem:[%s7804_s18 + $0x100] sm:$0xff]   ;;  %v4332_v43 = vor.u32 %v4331_v38, %v4328_v44  ;;  %v7315_v38 = vld [vmem:[%s7804_s18 + $0x228] sm:$0xff]  }
 0x14a   : > { %6406 = vmatprep.subr.bf16.mxu1 %v7310_v58 }
 0x14b   : > { %6371 = vmatmul.mubr.bf16.gmra.mrb[12].mxu1 %v8173_v59  ;;  %v4306_v59 = vsel %vm4280_vm5, %v4296_v21, %v4305_v50  ;;  %v4344_v21 = vshrl.u32 %v8199_v6, 16  ;;  %v4333_v25 = vsel %vm4280_vm5, %v4323_v26, %v4332_v43 }
 0x14c   : > { %6599 = vmatmul.mubr.bf16.gmra.mrb[32].mxu0 %v3979_v11  ;;  %6374 = vmatprep.mubr.bf16.mxu1 %v8184_v10  ;;  %v4315_v10 = vsel %vm4280_vm5, %v4305_v50, %v4314_v24  ;;  %v4337_v11 = vrot.slane %v4335_v23, 2  ;;  %v7317_v23 = vld [vmem:[%s7804_s18 + $0x230] sm:$0xff]  }
 0x14d   : > { %6618 = vmatprep.mubr.bf16.mxu0 %v4297_v55  ;;  %6407 = vmatpush3.bf16.msra.mxu1 %v7310_v58  ;;  %v4324_v58 = vsel %vm4280_vm5, %v4314_v24, %v4323_v26  ;;  %v4346_v55 = vrot.slane %v4344_v21, 2  ;;  %v7318_v21 = vld [vmem:[%s7804_s18 + $0x238] sm:$0xff]  }
 0x14e   : > { %6408 = vmatprep.subr.bf16.mxu1 %v7312_v20 }
 0x14f   : > { %v4350_v24 = vor.u32 %v4349_v12, %v4346_v55 }
 0x151   : > { %6409 = vmatpush3.bf16.msra.mxu1 %v7312_v20 }
 0x152   : > { %6746 = vmatprep.subr.bf16.mxu1 %v8380_v39 }
 0x153   : > { %6375 = vmatmul.mubr.bf16.gmra.mrb[16].mxu1 %v8203_v57  ;;  %v8392_v57 = vld [vmem:[%s7802_s17 + $0xa0] ss:$0 sps:$4 sm:$0x77]  }
 0x154   : > { %6619 = vmatmul.mubr.bf16.vlgmr.msra.gmra.mrb[0].mxu0 %v4306_v59  ;;  %6378 = vmatprep.mubr.bf16.mxu1 %v8207_v27  ;;  %v4785_v27 = vrot.slane %v8326_v63, 3  ;;  %v4787_v31 = vrot.slane %v8392_v57, 3 }
 0x155   : > { %6622 = vmatprep.mubr.bf16.mxu0 %v4315_v10  ;;  %6655 = vmatpush3.bf16.msra.mxu0 %v8280_v9  ;;  %v4340_v9 = vrot.slane %v4338_v34, 3  ;;  %v4364_v10 = vrot.slane %v4362_v1, 2  ;;  %v7326_v1 = vld [vmem:[%s7802_s17 + $0x30] sm:$0xff]  }
 0x156   : > { %6656 = vmatprep.subr.bf16.mxu0 %v7309_v42  ;;  %v8403_v20 = vsel %vm4751_vm6, %v4785_v27, %v4787_v31 }
 0x157   : > { %v4341_v50 = vor.u32 %v4340_v9, %v4337_v11  ;;  %v4410_v11 = vshll.u32 %v8308_v0, 16  ;;  %v7324_v9 = vld [vmem:[%s7802_s17 + $0x20] sm:$0xff]  }
 0x158   : > { %v2676_v31 = vrot.slane %v7324_v9, 1 }
 0x159   : > { %6657 = vmatpush3.bf16.msra.mxu0 %v7309_v42  ;;  %v4342_v59 = vsel %vm4280_vm5, %v4332_v43, %v4341_v50  ;;  %v4351_v54 = vsel %vm4280_vm5, %v4341_v50, %v4350_v24  ;;  %v4412_v12 = vrot.slane %v4410_v11, 3 }
 0x15a   : > { %6658 = vmatprep.subr.bf16.mxu0 %v7311_v3 }
 0x15b   : > { %6379 = vmatmul.mubr.bf16.gmra.mrb[20].mxu1 %v8216_v37  ;;  %v4365_v37 = vshll.u32 %v8230_v7, 16 }
 0x15c   : > { %6623 = vmatmul.mubr.bf16.gmra.mrb[4].mxu0 %v4324_v58  ;;  %6382 = vmatprep.mubr.bf16.mxu1 %v8219_v22  ;;  %v4358_v22 = vrot.slane %v4356_v17, 3  ;;  %v2678_v17 = vrot.slane %v7325_v61, 1 }
 0x15d   : > { %6626 = vmatprep.mubr.bf16.mxu0 %v4333_v25  ;;  %6659 = vmatpush3.bf16.msra.mxu0 %v7311_v3  ;;  %v4367_v44 = vrot.slane %v4365_v37, 3  ;;  %v4419_v25 = vshll.u32 %v8313_v48, 16  ;;  %v2680_v37 = vrot.slane %v7326_v1, 1 }
 0x15e   : > { %6660 = vmatprep.subr.bf16.mxu0 %v7313_v14  ;;  %v4359_v42 = vor.u32 %v4358_v22, %v4355_v41  ;;  %v7327_v41 = vld [vmem:[%s7804_s18 + $0x108] sm:$0xff]  }
 0x15f   : > { %v4368_v26 = vor.u32 %v4367_v44, %v4364_v10  ;;  %v4421_v50 = vrot.slane %v4419_v25, 3  ;;  %v2681_v10 = vsel %vm2207_vm3, %v2678_v17, %v2680_v37 }
 0x160   : > { %v4360_v34 = vsel %vm4280_vm5, %v4350_v24, %v4359_v42 }
 0x161   : > { %6661 = vmatpush3.bf16.msra.mxu0 %v7313_v14  ;;  %v4369_v43 = vsel %vm4280_vm5, %v4359_v42, %v4368_v26  ;;  %v4378_v3 = vsel %vm4280_vm5, %v4368_v26, %v8284_v19  ;;  %v4416_v19 = vshrl.u32 %v8313_v48, 16  ;;  %v7328_v42 = vld [vmem:[%s7804_s18 + $0x110] sm:$0xff]  }
 0x162   : > { %6662 = vmatprep.subr.bf16.mxu0 %v7314_v32 }
 0x163   : > { %6383 = vmatmul.mubr.bf16.gmra.mrb[24].mxu1 %v8236_v62  ;;  %v2671_v62 = vrot.slane %v7862_v4, 1  ;;  %v4407_v4 = vshrl.u32 %v8308_v0, 16 }
 0x164   : > { %6627 = vmatmul.mubr.bf16.gmra.mrb[8].mxu0 %v4342_v59  ;;  %6386 = vmatprep.mubr.bf16.mxu1 %v8240_v8  ;;  %v7322_v8 = vld [vmem:[%s7802_s17 + $0x10] sm:$0xff]   ;;  %v4428_v59 = vshll.u32 %v8323_v51, 16 }
 0x165   : > { %6630 = vmatprep.mubr.bf16.mxu0 %v4351_v54  ;;  %6663 = vmatpush3.bf16.msra.mxu0 %v7314_v32  ;;  %v2672_v45 = vrot.slane %v7322_v8, 1  ;;  %v4409_v55 = vrot.slane %v4407_v4, 2  ;;  %v4425_v32 = vshrl.u32 %v8323_v51, 16  ;;  %v2679_v54 = vsel %vm2207_vm3, %v2676_v31, %v2678_v17 }
 0x166   : > { %6664 = vmatprep.subr.bf16.mxu0 %v7315_v38 }
 0x167   : > { %v2673_v58 = vsel %vm2207_vm3, %v2671_v62, %v2672_v45  ;;  %v4413_v24 = vor.u32 %v4412_v12, %v4409_v55  ;;  %v4427_v44 = vrot.slane %v4425_v32, 2  ;;  %v7330_v62 = vld [vmem:[%s7802_s17 + $0x40] sm:$0xff]   ;;  %v7333_v55 = vld [vmem:[%s7804_s18 + $0x120] sm:$0xff]  }
 0x168   : > { %v2684_v8 = vrot.slane %v7330_v62, 1  ;;  %v7334_v12 = vld [vmem:[%s7802_s17 + $0x48] sm:$0xff]  }
 0x169   : > { %6665 = vmatpush3.bf16.msra.mxu0 %v7315_v38  ;;  %v4430_v38 = vrot.slane %v4428_v59, 3 }
 0x16a   : > { %6666 = vmatprep.subr.bf16.mxu0 %v7317_v23 }
 0x16b   : > { %6387 = vmatmul.mubr.bf16.gmra.mrb[28].mxu1 %v8249_v18  ;;  %v7323_v18 = vld [vmem:[%s7802_s17 + $0x18] sm:$0xff]  }
 0x16c   : > { %6631 = vmatmul.mubr.bf16.gmra.mrb[12].mxu0 %v4360_v34  ;;  %6390 = vmatprep.mubr.bf16.mxu1 %v8252_v36  ;;  %v2674_v36 = vrot.slane %v7323_v18, 1  ;;  %v7331_v18 = vld [vmem:[%s7804_s18 + $0x118] sm:$0xff]  }
 0x16d   : > { %6634 = vmatprep.mubr.bf16.mxu0 %v4369_v43  ;;  %6667 = vmatpush3.bf16.msra.mxu0 %v7317_v23  ;;  %v7329_v43 = vld [vmem:[%s7802_s17 + $0x38] sm:$0xff]  }
 0x16e   : > { %6668 = vmatprep.subr.bf16.mxu0 %v7318_v21  ;;  %v2677_v14 = vsel %vm2207_vm3, %v2674_v36, %v2676_v31 }
 0x171   : > { %6669 = vmatpush3.bf16.msra.mxu0 %v7318_v21  ;;  %v2682_v21 = vrot.slane %v7329_v43, 1 }
 0x173   : > { %6391 = vmatmul.mubr.bf16.gmra.mrb[32].mxu1 %v8268_v40  ;;  %v2675_v40 = vsel %vm2207_vm3, %v2672_v45, %v2674_v36  ;;  %v4443_v45 = vshrl.u32 %v8392_v57, 16  ;;  %v4730_v36 = vld [vmem:[%s7802_s17 + $0x10] sm:$0x8]  ;;  %v2683_v4 = vsel %vm2207_vm3, %v2680_v37, %v2682_v21  ;;  %v2685_v9 = vsel %vm2207_vm3, %v2682_v21, %v2684_v8  ;;  %v7337_v37 = vld [vmem:[%s7804_s18 + $0x128] sm:$0xff]  }
 0x174   : > { %6635 = vmatmul.mubr.bf16.gmra.mrb[16].mxu0 %v4378_v3  ;;  %6410 = vmatprep.mubr.bf16.mxu1 %v2673_v58  ;;  %v4446_v3 = vshll.u32 %v8392_v57, 16 }
 0x175   : > { %6638 = vmatprep.mubr.bf16.mxu0 %v8292_v2  ;;  %v4418_v2 = vrot.slane %v4416_v19, 2  ;;  %v4445_v31 = vrot.slane %v4443_v45, 2 }
 0x176   : > { %v4448_v19 = vrot.slane %v4446_v3, 3  ;;  %v4761_v3 = vrot.slane %v8160_v15, 3  ;;  %v4763_v15 = vrot.slane %v8190_v13, 3 }
 0x177   : > { %v4422_v22 = vor.u32 %v4421_v50, %v4418_v2  ;;  %v8467_v50 = vld [vmem:[%s7802_s17 + $0x50] sm:$0xff]  }
 0x178   : > { %v4449_v2 = vor.u32 %v4448_v19, %v4445_v31  ;;  %v2688_v61 = vrot.slane %v8467_v50, 1  ;;  %v4765_v19 = vrot.slane %v8199_v6, 3  ;;  %v8526_v6 = vld [vmem:[%s7802_s17 + $0x90] sm:$0xff]  }
 0x179   : > { %v4423_v26 = vsel %vm4280_vm5, %v4413_v24, %v4422_v22 }
 0x17b   : > { %6411 = vmatmul.mubr.bf16.vlgmr.msra.gmra.mrb[0].mxu1 %v2675_v40  ;;  %v7332_v40 = vld [vmem:[%s7802_s17 + $0x14] sm:$0xf] }
 0x17c   : > { %6639 = vmatmul.mubr.bf16.gmra.mrb[20].mxu0 %v8295_v5  ;;  %6754 = vmatpush3.bf16.msra.mxu1 %v8380_v39  ;;  %v4434_v5 = vshrl.u32 %v8326_v63, 16  ;;  %v4437_v39 = vshll.u32 %v8326_v63, 16  ;;  %v5948_v57 = vcombine.low %v4730_v36, %v7332_v40  ;;  %v4764_v40 = vsel %vm4751_vm6, %v4761_v3, %v4763_v15 }
 0x17d   : > { %6414 = vmatprep.mubr.bf16.mxu1 %v2677_v14  ;;  %6642 = vmatprep.mubr.bf16.mxu0 %v8304_v35  ;;  %v4414_v35 = vsel %vm4280_vm5, %v8298_v16, %v4413_v24  ;;  %v4431_v16 = vor.u32 %v4430_v38, %v4427_v44  ;;  %v2686_v14 = vrot.slane %v7334_v12, 1  ;;  %v7336_v24 = vld [vmem:[%s7802_s17 + $0x18] sm:$0xff]   ;;  %v8483_v44 = vld [vmem:[%s7802_s17 + $0x60] sm:$0xff]   ;;  %v8521_v12 = vld [vmem:[%s7802_s17 + $0x88] sm:$0xff]  }
 0x17e   : > { %6747 = vmatprep.subr.bf16.mxu1 %v7327_v41  ;;  %v4436_v23 = vrot.slane %v4434_v5, 2  ;;  %v4439_v34 = vrot.slane %v4437_v39, 3  ;;  %v4752_v17 = vrot.slane %v5948_v57, 3  ;;  %v4753_v1 = vrot.slane %v7336_v24, 3  ;;  %v7338_v5 = vld [vmem:[%s7804_s18 + $0x130] sm:$0xff]  }
 0x17f   : > { %v4432_v11 = vsel %vm4280_vm5, %v4422_v22, %v4431_v16  ;;  %v2687_v32 = vsel %vm2207_vm3, %v2684_v8, %v2686_v14  ;;  %v8478_v39 = vld [vmem:[%s7802_s17 + $0x58] sm:$0xff]   ;;  %v2692_v38 = vrot.slane %v8483_v44, 1  ;;  %v8498_v8 = vld [vmem:[%s7802_s17 + $0x70] sm:$0xff]   ;;  %v2702_v13 = vrot.slane %v8521_v12, 1 }
 0x180   : > { %6755 = vmatpush3.bf16.msra.mxu1 %v7327_v41  ;;  %v4440_v58 = vor.u32 %v4439_v34, %v4436_v23  ;;  %v2689_v41 = vsel %vm2207_vm3, %v2686_v14, %v2688_v61  ;;  %v4754_v22 = vsel %vm4751_vm6, %v4752_v17, %v4753_v1  ;;  %v2696_v45 = vrot.slane %v8498_v8, 1 }
 0x181   : > { %6748 = vmatprep.subr.bf16.mxu1 %v7328_v42  ;;  %v4767_v14 = vrot.slane %v8225_v29, 3  ;;  %v3093_v17 = vshll.u32 %v8467_v50, 16  ;;  %v4769_v24 = vrot.slane %v8230_v7, 3  ;;  %v3126_v30 = vshrl.u32 %v8498_v8, 16 }
 0x182   : > { %v4441_v25 = vsel %vm4280_vm5, %v4431_v16, %v4440_v58  ;;  %v4450_v59 = vsel %vm4280_vm5, %v4440_v58, %v4449_v2  ;;  %v8493_v16 = vld [vmem:[%s7802_s17 + $0x68] sm:$0xff]   ;;  %v2704_v2 = vrot.slane %v8526_v6, 1 }
 0x183   : > { %6415 = vmatmul.mubr.bf16.gmra.mrb[4].mxu1 %v2679_v54  ;;  %v2690_v54 = vrot.slane %v8478_v39, 1  ;;  %v2694_v62 = vrot.slane %v8493_v16, 1  ;;  %v4770_v29 = vsel %vm4751_vm6, %v4767_v14, %v4769_v24 }
 0x184   : > { %6643 = vmatmul.mubr.bf16.gmra.mrb[24].mxu0 %v4414_v35  ;;  %6418 = vmatprep.mubr.bf16.mxu1 %v2681_v10  ;;  %v7340_v35 = vld [vmem:[%s7802_s17 + $0x20] sm:$0xff]  }
 0x185   : > { %6646 = vmatprep.mubr.bf16.mxu0 %v4423_v26  ;;  %6756 = vmatpush3.bf16.msra.mxu1 %v7328_v42  ;;  %v4755_v10 = vrot.slane %v7340_v35, 3  ;;  %v4757_v42 = vrot.slane %v8107_v52, 3  ;;  %v7342_v26 = vld [vmem:[%s7804_s18 + $0x138] sm:$0xff]   ;;  %v2691_v23 = vsel %vm2207_vm3, %v2688_v61, %v2690_v54  ;;  %v2693_v43 = vsel %vm2207_vm3, %v2690_v54, %v2692_v38 }
 0x186   : > { %6749 = vmatprep.subr.bf16.mxu1 %v7331_v18  ;;  %v4759_v52 = vrot.slane %v8138_v33, 3  ;;  %v2695_v58 = vsel %vm2207_vm3, %v2692_v38, %v2694_v62  ;;  %v2697_v36 = vsel %vm2207_vm3, %v2694_v62, %v2696_v45  ;;  %v3090_v61 = vshrl.u32 %v8467_v50, 16 }
 0x187   : > { %v4756_v34 = vsel %vm4751_vm6, %v4753_v1, %v4755_v10  ;;  %v4758_v21 = vsel %vm4751_vm6, %v4755_v10, %v4757_v42  ;;  %v3099_v54 = vshrl.u32 %v8478_v39, 16  ;;  %v3102_v50 = vshll.u32 %v8478_v39, 16 }
 0x188   : > { %v3108_v35 = vshrl.u32 %v8483_v44, 16  ;;  %v3111_v10 = vshll.u32 %v8483_v44, 16  ;;  %v3117_v62 = vshrl.u32 %v8493_v16, 16  ;;  %v3120_v44 = vshll.u32 %v8493_v16, 16 }
 0x189   : > { %6757 = vmatpush3.bf16.msra.mxu1 %v7331_v18  ;;  %v4760_v18 = vsel %vm4751_vm6, %v4757_v42, %v4759_v52  ;;  %v3101_v42 = vrot.slane %v3099_v54, 1 }
 0x18a   : > { %6750 = vmatprep.subr.bf16.mxu1 %v7333_v55 }
 0x18b   : > { %6419 = vmatmul.mubr.bf16.gmra.mrb[8].mxu1 %v2683_v4  ;;  %v4762_v4 = vsel %vm4751_vm6, %v4759_v52, %v4761_v3  ;;  %v3122_v3 = vrot.slane %v3120_v44, 2 }
 0x18c   : > { %6647 = vmatmul.mubr.bf16.gmra.mrb[28].mxu0 %v4432_v11  ;;  %6422 = vmatprep.mubr.bf16.mxu1 %v2685_v9  ;;  %v8507_v11 = vld [vmem:[%s7802_s17 + $0x78] sm:$0xff]   ;;  %v8512_v9 = vld [vmem:[%s7802_s17 + $0x80] sm:$0xff]  }
 0x18d   : > { %6650 = vmatprep.mubr.bf16.mxu0 %v4441_v25  ;;  %6758 = vmatpush3.bf16.msra.mxu1 %v7333_v55  ;;  %v2698_v33 = vrot.slane %v8507_v11, 1  ;;  %v2700_v31 = vrot.slane %v8512_v9, 1  ;;  %v4766_v55 = vsel %vm4751_vm6, %v4763_v15, %v4765_v19  ;;  %v3144_v15 = vshrl.u32 %v8512_v9, 16 }
 0x18e   : > { %6751 = vmatprep.subr.bf16.mxu1 %v7337_v37 }
 0x18f   : > { %v2699_v25 = vsel %vm2207_vm3, %v2696_v45, %v2698_v33  ;;  %v2701_v57 = vsel %vm2207_vm3, %v2698_v33, %v2700_v31  ;;  %v2703_v1 = vsel %vm2207_vm3, %v2700_v31, %v2702_v13  ;;  %v3147_v31 = vshll.u32 %v8512_v9, 16 }
 0x191   : > { %6759 = vmatpush3.bf16.msra.mxu1 %v7337_v37  ;;  %v7320_v37 = vld [vmem:[%s7802_s17 + $0x98] ss:$0 sps:$4 sm:$0x11]  }
 0x192   : > { %6752 = vmatprep.subr.bf16.mxu1 %v7338_v5 }
 0x193   : > { %6423 = vmatmul.mubr.bf16.gmra.mrb[12].mxu1 %v2687_v32  ;;  %v4768_v32 = vsel %vm4751_vm6, %v4765_v19, %v4767_v14  ;;  %v4781_v19 = vrot.slane %v8313_v48, 3  ;;  %v3153_v48 = vshrl.u32 %v8521_v12, 16  ;;  %v4783_v14 = vrot.slane %v8323_v51, 3 }
 0x194   : > { %6651 = vmatmul.mubr.bf16.gmra.mrb[32].mxu0 %v4450_v59  ;;  %6426 = vmatprep.mubr.bf16.mxu1 %v2689_v41  ;;  %v2705_v59 = vsel %vm2207_vm3, %v2702_v13, %v2704_v2  ;;  %v3092_v41 = vrot.slane %v3090_v61, 1  ;;  %v3156_v13 = vshll.u32 %v8521_v12, 16 }
 0x195   : > { %6670 = vmatprep.mubr.bf16.mxu0 %v4754_v22  ;;  %6760 = vmatpush3.bf16.msra.mxu1 %v7338_v5  ;;  %v3095_v22 = vrot.slane %v3093_v17, 2  ;;  %v2706_v5 = vrot.slane %v7320_v37, 1  ;;  %v3155_v17 = vrot.slane %v3153_v48, 1  ;;  %v4786_v51 = vsel %vm4751_vm6, %v4783_v14, %v4785_v27 }
 0x196   : > { %6753 = vmatprep.subr.bf16.mxu1 %v7342_v26 }
 0x197   : > { %v3096_v7 = vor.u32 %v3095_v22, %v3092_v41  ;;  %v2707_v38 = vsel %vm2207_vm3, %v2704_v2, %v2706_v5  ;;  %v3165_v2 = vshll.u32 %v8526_v6, 16  ;;  %v7349_v41 = vld [vmem:[%s7802_s17 + $0x98] ss:$0 sps:$4 sm:$0x33]  }
 0x198   : > { %v3174_v22 = vshll.u32 %v7349_v41, 16 }
 0x199   : > { %6761 = vmatpush3.bf16.msra.mxu1 %v7342_v26  ;;  %v3104_v26 = vrot.slane %v3102_v50, 2 }
 0x19a   : > { %v3176_v50 = vrot.slane %v3174_v22, 2 }
 0x19b   : > { %6427 = vmatmul.mubr.bf16.gmra.mrb[16].mxu1 %v2691_v23  ;;  %v4772_v23 = vsel %vm4751_vm6, %v4769_v24, %v4771_v60  ;;  %v3105_v39 = vor.u32 %v3104_v26, %v3101_v42  ;;  %v3129_v60 = vshll.u32 %v8498_v8, 16  ;;  %v4779_v8 = vrot.slane %v8308_v0, 3 }
 0x19c   : > { %6671 = vmatmul.mubr.bf16.vlgmr.msra.gmra.mrb[0].mxu0 %v4756_v34  ;;  %6430 = vmatprep.mubr.bf16.mxu1 %v2693_v43  ;;  %v3097_v34 = vsel %vm3008_vm1, %v7936_v28, %v3096_v7  ;;  %v3110_v43 = vrot.slane %v3108_v35, 1  ;;  %v3119_v28 = vrot.slane %v3117_v62, 1  ;;  %v3158_v24 = vrot.slane %v3156_v13, 2 }
 0x19d   : > { %6674 = vmatprep.mubr.bf16.mxu0 %v4758_v21  ;;  %v3113_v21 = vrot.slane %v3111_v10, 2  ;;  %v3106_v45 = vsel %vm3008_vm1, %v3096_v7, %v3105_v39  ;;  %v4782_v0 = vsel %vm4751_vm6, %v4779_v8, %v4781_v19 }
 0x19e   : > { %v3123_v16 = vor.u32 %v3122_v3, %v3119_v28  ;;  %v3159_v12 = vor.u32 %v3158_v24, %v3155_v17  ;;  %v1154_v28 = vld [vmem:[#allocation2] sm:$0xff]  ;;  %v1157_v3 = vld [vmem:[#allocation2 + $0x18] sm:$0xff]  ;;  %v1164_v24 = vld [vmem:[#allocation2 + $0x50] sm:$0xff] }
 0x19f   : > { %v3114_v52 = vor.u32 %v3113_v21, %v3110_v43 }
 0x1a3   : > { %6431 = vmatmul.mubr.bf16.gmra.mrb[20].mxu1 %v2695_v58  ;;  %v3115_v58 = vsel %vm3008_vm1, %v3105_v39, %v3114_v52 }
 0x1a4   : > { %6675 = vmatmul.mubr.bf16.gmra.mrb[4].mxu0 %v4760_v18  ;;  %6434 = vmatprep.mubr.bf16.mxu1 %v2697_v36  ;;  %v3128_v18 = vrot.slane %v3126_v30, 1  ;;  %v3131_v36 = vrot.slane %v3129_v60, 2 }
 0x1a5   : > { %6678 = vmatprep.mubr.bf16.mxu0 %v4762_v4  ;;  %v3138_v4 = vshll.u32 %v8507_v11, 16 }
 0x1a6   : > { %v3132_v33 = vor.u32 %v3131_v36, %v3128_v18  ;;  %v1155_v18 = vld [vmem:[#allocation2 + $0x8] sm:$0xff] }
 0x1ab   : > { %6435 = vmatmul.mubr.bf16.gmra.mrb[24].mxu1 %v2699_v25  ;;  %v3124_v25 = vsel %vm3008_vm1, %v3114_v52, %v3123_v16 }
 0x1ac   : > { %6679 = vmatmul.mubr.bf16.gmra.mrb[8].mxu0 %v4764_v40  ;;  %6438 = vmatprep.mubr.bf16.mxu1 %v2701_v57  ;;  %v3140_v40 = vrot.slane %v3138_v4, 2  ;;  %v4780_v57 = vsel %vm4751_vm6, %v4777_v49, %v4779_v8  ;;  %v3162_v49 = vshrl.u32 %v8526_v6, 16  ;;  %v3171_v6 = vshrl.u32 %v7349_v41, 16 }
 0x1ad   : > { %6682 = vmatprep.mubr.bf16.mxu0 %v4766_v55  ;;  %v3149_v55 = vrot.slane %v3147_v31, 2 }
 0x1ae   : > { %v3173_v54 = vrot.slane %v3171_v6, 1 }
 0x1b0   : > { %v3177_v63 = vor.u32 %v3176_v50, %v3173_v54 }
 0x1b3   : > { %6439 = vmatmul.mubr.bf16.gmra.mrb[28].mxu1 %v2703_v1  ;;  %v4784_v1 = vsel %vm4751_vm6, %v4781_v19, %v4783_v14 }
 0x1b4   : > { %6683 = vmatmul.mubr.bf16.gmra.mrb[12].mxu0 %v4768_v32  ;;  %6442 = vmatprep.mubr.bf16.mxu1 %v2705_v59  ;;  %v3164_v32 = vrot.slane %v3162_v49, 1  ;;  %v3167_v59 = vrot.slane %v3165_v2, 2 }
 0x1b5   : > { %6686 = vmatprep.mubr.bf16.mxu0 %v4770_v29 }
 0x1b6   : > { %v3168_v29 = vor.u32 %v3167_v59, %v3164_v32  ;;  %v1165_v32 = vld [vmem:[#allocation2 + $0x58] sm:$0xff] }
 0x1b8   : > { %v3169_v7 = vsel %vm3008_vm1, %v3159_v12, %v3168_v29  ;;  %v3178_v27 = vsel %vm3008_vm1, %v3168_v29, %v3177_v63 }
 0x1bb   : > { %6443 = vmatmul.mubr.bf16.gmra.mrb[32].mxu1 %v2707_v38 }
 0x1bc   : > { %6687 = vmatmul.mubr.bf16.gmra.mrb[16].mxu0 %v4772_v23  ;;  %6478 = vmatprep.mubr.bf16.mxu1 %v3097_v34 }
 0x1bd   : > { %6690 = vmatprep.mubr.bf16.mxu0 %v8347_v47  ;;  %v3135_v47 = vshrl.u32 %v8507_v11, 16  ;;  %v3133_v11 = vsel %vm3008_vm1, %v3123_v16, %v3132_v33 }
 0x1c3   : > { %6479 = vmatmul.mubr.bf16.vlgmr.msra.gmra.mrb[16].mxu1 %v3106_v45  ;;  %v1156_v45 = vld [vmem:[#allocation2 + $0x10] sm:$0xff] }
 0x1c4   : > { %6691 = vmatmul.mubr.bf16.gmra.mrb[20].mxu0 %v8353_v46  ;;  %6482 = vmatprep.mubr.bf16.mxu1 %v3115_v58  ;;  %v3137_v46 = vrot.slane %v3135_v47, 1 }
 0x1c5   : > { %6694 = vmatprep.mubr.bf16.mxu0 %v8365_v53  ;;  %v3146_v53 = vrot.slane %v3144_v15, 1 }
 0x1c6   : > { %v3141_v9 = vor.u32 %v3140_v40, %v3137_v46  ;;  %v1160_v46 = vld [vmem:[#allocation2 + $0x30] sm:$0xff] }
 0x1c7   : > { %v3150_v56 = vor.u32 %v3149_v55, %v3146_v53  ;;  %v1159_v55 = vld [vmem:[#allocation2 + $0x28] sm:$0xff] }
 0x1c8   : > { %v3142_v61 = vsel %vm3008_vm1, %v3132_v33, %v3141_v9 }
 0x1c9   : > { %v3151_v37 = vsel %vm3008_vm1, %v3141_v9, %v3150_v56  ;;  %v3160_v5 = vsel %vm3008_vm1, %v3150_v56, %v3159_v12 }
 0x1cb   : > { %6483 = vmatmul.mubr.bf16.gmra.mrb[20].mxu1 %v3124_v25 }
 0x1cc   : > { %6695 = vmatmul.mubr.bf16.gmra.mrb[24].mxu0 %v4780_v57  ;;  %6486 = vmatprep.mubr.bf16.mxu1 %v3133_v11  ;;  %v1158_v57 = vld [vmem:[#allocation2 + $0x20] sm:$0xff]  ;;  %v1161_v11 = vld [vmem:[#allocation2 + $0x38] sm:$0xff] }
 0x1cd   : > { %6698 = vmatprep.mubr.bf16.mxu0 %v4782_v0 }
 0x1d3   : > { %6487 = vmatmul.mubr.bf16.gmra.mrb[24].mxu1 %v3142_v61 }
 0x1d4   : > { %6699 = vmatmul.mubr.bf16.gmra.mrb[28].mxu0 %v4784_v1  ;;  %6490 = vmatprep.mubr.bf16.mxu1 %v3151_v37  ;;  %v1162_v37 = vld [vmem:[#allocation2 + $0x40] sm:$0xff] }
 0x1d5   : > { %6702 = vmatprep.mubr.bf16.mxu0 %v4786_v51  ;;  %v1163_v51 = vld [vmem:[#allocation2 + $0x48] sm:$0xff] }
 0x1db   : > { %6491 = vmatmul.mubr.bf16.gmra.mrb[28].mxu1 %v3160_v5 }
 0x1dc   : > { %6703 = vmatmul.mubr.bf16.gmra.mrb[32].mxu0 %v8403_v20  ;;  %6494 = vmatprep.mubr.bf16.mxu1 %v3169_v7 }
 0x1e3   : > { %6495 = vmatmul.mubr.bf16.gmra.mrb[32].mxu1 %v3178_v27  ;;  %v1168_v27 = vld [vmem:[#allocation2 + $0x70] sm:$0xff] }
 0x24e   : > { %v6412_v35 = vpop.f32.mrb[0].mxu1 }
 0x24f   : > { %v2808_v10 = vpop.f32.mrb[1].mxu1  ;;  %v6762_v58 = vadd.f32 %v6412_v35, %v1156_v45 }
 0x250   : > { %v6413_v38 = vpop.f32.mrb[2].mxu1  ;;  %v6764_v36 = vadd.f32 %v2808_v10, %v1154_v28  ;;  %v1166_v10 = vld [vmem:[#allocation2 + $0x60] sm:$0xff] }
 0x251   : > { %v2811_v42 = vpop.f32.mrb[3].mxu1  ;;  %v6766_v47 = vadd.f32 %v6413_v38, %v1157_v3  ;;  %v1169_v38 = vld [vmem:[#allocation2 + $0x78] sm:$0xff] }
 0x252   : > { %v6768_v33 = vadd.f32 %v2811_v42, %v1155_v18 }
 0x256   : > { %v6416_v26 = vpop.f32.mrb[4].mxu1 }
 0x257   : > { %v2824_v23 = vpop.f32.mrb[5].mxu1  ;;  %v6770_v53 = vadd.f32 %v6416_v26, %v1160_v46  ;;  %v1167_v26 = vld [vmem:[#allocation2 + $0x68] sm:$0xff] }
 0x258   : > { %v6417_v34 = vpop.f32.mrb[6].mxu1  ;;  %v6772_v0 = vadd.f32 %v2824_v23, %v1158_v57 }
 0x259   : > { %v2827_v43 = vpop.f32.mrb[7].mxu1  ;;  %v6774_v48 = vadd.f32 %v6417_v34, %v1161_v11 }
 0x25a   : > { %v6776_v56 = vadd.f32 %v2827_v43, %v1159_v55 }
 0x25e   : > { %v6420_v21 = vpop.f32.mrb[8].mxu1 }
 0x25f   : > { %v2840_v39 = vpop.f32.mrb[9].mxu1  ;;  %v6778_v59 = vadd.f32 %v6420_v21, %v1164_v24  ;;  %v1175_v24 = vld [vmem:[#allocation2 + $0xa8] sm:$0xff] }
 0x260   : > { %v6421_v62 = vpop.f32.mrb[10].mxu1  ;;  %v6780_v12 = vadd.f32 %v2840_v39, %v1162_v37 }
 0x261   : > { %v2843_v44 = vpop.f32.mrb[11].mxu1  ;;  %v6782_v6 = vadd.f32 %v6421_v62, %v1165_v32 }
 0x262   : > { %v6784_v5 = vadd.f32 %v2843_v44, %v1163_v51 }
 0x266   : > { %v8584_v52 = vpop.f32.mrb[12].mxu1 }
 0x267   : > { %v8586_v20 = vpop.f32.mrb[13].mxu1  ;;  %v6786_v42 = vadd.f32 %v8584_v52, %v1168_v27  ;;  %v1181_v27 = vld [vmem:[#allocation2 + $0xd8] sm:$0xff] }
 0x268   : > { %v8588_v30 = vpop.f32.mrb[14].mxu1  ;;  %v6788_v23 = vadd.f32 %v8586_v20, %v1166_v10 }
 0x269   : > { %v8590_v60 = vpop.f32.mrb[15].mxu1  ;;  %v6790_v43 = vadd.f32 %v8588_v30, %v1169_v38 }
 0x26a   : > { %v6792_v62 = vadd.f32 %v8590_v60, %v1167_v26 }
 0x26f   : > { %v6672_v16 = vpop.f32.mrb[0].mxu0 }
 0x270   : > { %v6763_v4 = vadd.f32 %v6762_v58, %v6672_v16  ;;  %v4889_v8 = vpop.f32.mrb[1].mxu0  ;;  %v1170_v16 = vld [vmem:[#allocation2 + $0x80] sm:$0xff] }
 0x271   : > { %v6765_v15 = vadd.f32 %v6764_v36, %v4889_v8  ;;  %v6673_v31 = vpop.f32.mrb[2].mxu0  ;;  %v1172_v36 = vld [vmem:[#allocation2 + $0x90] sm:$0xff] }
 0x272   : > { %5071 = vst.msk [vmem:[#allocation2 + $0x10] sm:$0xff] %vm5068_vm7, %v6763_v4  ;;  %v6767_v19 = vadd.f32 %v6766_v47, %v6673_v31  ;;  %v4892_v25 = vpop.f32.mrb[3].mxu0  ;;  %v1173_v47 = vld [vmem:[#allocation2 + $0x98] sm:$0xff] }
 0x273   : > { %5069 = vst.msk [vmem:[#allocation2] sm:$0xff] %vm5068_vm7, %v6765_v15  ;;  %v6769_v40 = vadd.f32 %v6768_v33, %v4892_v25  ;;  %v1171_v15 = vld [vmem:[#allocation2 + $0x88] sm:$0xff] }
 0x274   : > { %5072 = vst.msk [vmem:[#allocation2 + $0x18] sm:$0xff] %vm5068_vm7, %v6767_v19 }
 0x275   : > { %5070 = vst.msk [vmem:[#allocation2 + $0x8] sm:$0xff] %vm5068_vm7, %v6769_v40 }
 0x277   : > { %v6676_v9 = vpop.f32.mrb[4].mxu0 }
 0x278   : > { %v6771_v13 = vadd.f32 %v6770_v53, %v6676_v9  ;;  %v4905_v14 = vpop.f32.mrb[5].mxu0 }
 0x279   : > { %v6773_v49 = vadd.f32 %v6772_v0, %v4905_v14  ;;  %v6677_v2 = vpop.f32.mrb[6].mxu0  ;;  %v1174_v14 = vld [vmem:[#allocation2 + $0xa0] sm:$0xff] }
 0x27a   : > { %5075 = vst.msk [vmem:[#allocation2 + $0x30] sm:$0xff] %vm5068_vm7, %v6771_v13  ;;  %v6775_v61 = vadd.f32 %v6774_v48, %v6677_v2  ;;  %v4908_v17 = vpop.f32.mrb[7].mxu0  ;;  %v1176_v13 = vld [vmem:[#allocation2 + $0xb0] sm:$0xff] }
 0x27b   : > { %5073 = vst.msk [vmem:[#allocation2 + $0x20] sm:$0xff] %vm5068_vm7, %v6773_v49  ;;  %v6777_v1 = vadd.f32 %v6776_v56, %v4908_v17  ;;  %v1177_v49 = vld [vmem:[#allocation2 + $0xb8] sm:$0xff] }
 0x27c   : > { %5076 = vst.msk [vmem:[#allocation2 + $0x38] sm:$0xff] %vm5068_vm7, %v6775_v61 }
 0x27d   : > { %5074 = vst.msk [vmem:[#allocation2 + $0x28] sm:$0xff] %vm5068_vm7, %v6777_v1 }
 0x27f   : > { %v6680_v41 = vpop.f32.mrb[8].mxu0 }
 0x280   : > { %v6779_v22 = vadd.f32 %v6778_v59, %v6680_v41  ;;  %v4921_v29 = vpop.f32.mrb[9].mxu0 }
 0x281   : > { %v6781_v54 = vadd.f32 %v6780_v12, %v4921_v29  ;;  %v6681_v50 = vpop.f32.mrb[10].mxu0 }
 0x282   : > { %5079 = vst.msk [vmem:[#allocation2 + $0x50] sm:$0xff] %vm5068_vm7, %v6779_v22  ;;  %v6783_v7 = vadd.f32 %v6782_v6, %v6681_v50  ;;  %v4924_v63 = vpop.f32.mrb[11].mxu0  ;;  %v1180_v50 = vld [vmem:[#allocation2 + $0xd0] sm:$0xff] }
 0x283   : > { %5077 = vst.msk [vmem:[#allocation2 + $0x40] sm:$0xff] %vm5068_vm7, %v6781_v54  ;;  %v6785_v35 = vadd.f32 %v6784_v5, %v4924_v63 }
 0x284   : > { %5080 = vst.msk [vmem:[#allocation2 + $0x58] sm:$0xff] %vm5068_vm7, %v6783_v7  ;;  %v1178_v7 = vld [vmem:[#allocation2 + $0xc0] sm:$0xff] }
 0x285   : > { %5078 = vst.msk [vmem:[#allocation2 + $0x48] sm:$0xff] %vm5068_vm7, %v6785_v35 }
 0x287   : > { %v6684_v34 = vpop.f32.mrb[12].mxu0 }
 0x288   : > { %v6787_v21 = vadd.f32 %v6786_v42, %v6684_v34  ;;  %v4937_v39 = vpop.f32.mrb[13].mxu0  ;;  %v1179_v42 = vld [vmem:[#allocation2 + $0xc8] sm:$0xff] }
 0x289   : > { %v6789_v44 = vadd.f32 %v6788_v23, %v4937_v39  ;;  %v6685_v45 = vpop.f32.mrb[14].mxu0 }
 0x28a   : > { %5083 = vst.msk [vmem:[#allocation2 + $0x70] sm:$0xff] %vm5068_vm7, %v6787_v21  ;;  %v6791_v28 = vadd.f32 %v6790_v43, %v6685_v45  ;;  %v4940_v3 = vpop.f32.mrb[15].mxu0 }
 0x28b   : > { %5081 = vst.msk [vmem:[#allocation2 + $0x60] sm:$0xff] %vm5068_vm7, %v6789_v44  ;;  %v6793_v58 = vadd.f32 %v6792_v62, %v4940_v3 }
 0x28c   : > { %5084 = vst.msk [vmem:[#allocation2 + $0x78] sm:$0xff] %vm5068_vm7, %v6791_v28 }
 0x28d   : > { %5082 = vst.msk [vmem:[#allocation2 + $0x68] sm:$0xff] %vm5068_vm7, %v6793_v58 }
 0x28f   : > { %v6688_v52 = vpop.f32.mrb[16].mxu0 }
 0x290   : > { %v4953_v20 = vpop.f32.mrb[17].mxu0 }
 0x291   : > { %v6689_v30 = vpop.f32.mrb[18].mxu0 }
 0x292   : > { %v4956_v18 = vpop.f32.mrb[19].mxu0 }
 0x296   : > { %v6480_v60 = vpop.f32.mrb[16].mxu1 }
 0x297   : > { %v6794_v4 = vadd.f32 %v6480_v60, %v1172_v36  ;;  %v6692_v8 = vpop.f32.mrb[20].mxu0  ;;  %v3343_v33 = vpop.f32.mrb[17].mxu1 }
 0x298   : > { %v6796_v31 = vadd.f32 %v3343_v33, %v1170_v16  ;;  %v4969_v19 = vpop.f32.mrb[21].mxu0  ;;  %v6481_v25 = vpop.f32.mrb[18].mxu1 }
 0x299   : > { %v6795_v46 = vadd.f32 %v6794_v4, %v6688_v52  ;;  %v6798_v40 = vadd.f32 %v6481_v25, %v1173_v47  ;;  %v6693_v57 = vpop.f32.mrb[22].mxu0  ;;  %v3346_v11 = vpop.f32.mrb[19].mxu1  ;;  %v1184_v52 = vld [vmem:[#allocation2 + $0xf0] sm:$0xff]  ;;  %v1183_v47 = vld [vmem:[#allocation2 + $0xe8] sm:$0xff] }
 0x29a   : > { %v6797_v53 = vadd.f32 %v6796_v31, %v4953_v20  ;;  %v6800_v55 = vadd.f32 %v3346_v11, %v1171_v15  ;;  %v4972_v0 = vpop.f32.mrb[23].mxu0  ;;  %v1182_v20 = vld [vmem:[#allocation2 + $0xe0] sm:$0xff] }
 0x29b   : > { %5087 = vst.msk [vmem:[#allocation2 + $0x90] sm:$0xff] %vm5068_vm7, %v6795_v46  ;;  %v6799_v9 = vadd.f32 %v6798_v40, %v6689_v30 }
 0x29c   : > { %5085 = vst.msk [vmem:[#allocation2 + $0x80] sm:$0xff] %vm5068_vm7, %v6797_v53  ;;  %v6801_v48 = vadd.f32 %v6800_v55, %v4956_v18  ;;  %v1185_v18 = vld [vmem:[#allocation2 + $0xf8] sm:$0xff]  ;;  %v1188_v55 = vld [vmem:[#allocation2 + $0x110] sm:$0xff] }
 0x29d   : > { %5088 = vst.msk [vmem:[#allocation2 + $0x98] sm:$0xff] %vm5068_vm7, %v6799_v9 }
 0x29e   : > { %5086 = vst.msk [vmem:[#allocation2 + $0x88] sm:$0xff] %vm5068_vm7, %v6801_v48  ;;  %v6484_v56 = vpop.f32.mrb[20].mxu1  ;;  %v1189_v48 = vld [vmem:[#allocation2 + $0x118] sm:$0xff] }
 0x29f   : > { %v6802_v2 = vadd.f32 %v6484_v56, %v1176_v13  ;;  %v6696_v61 = vpop.f32.mrb[24].mxu0  ;;  %v3359_v17 = vpop.f32.mrb[21].mxu1  ;;  %v1187_v56 = vld [vmem:[#allocation2 + $0x108] sm:$0xff] }
 0x2a0   : > { %v6804_v1 = vadd.f32 %v3359_v17, %v1174_v14  ;;  %v4985_v37 = vpop.f32.mrb[25].mxu0  ;;  %v6485_v32 = vpop.f32.mrb[22].mxu1 }
 0x2a1   : > { %v6803_v59 = vadd.f32 %v6802_v2, %v6692_v8  ;;  %v6806_v51 = vadd.f32 %v6485_v32, %v1177_v49  ;;  %v6697_v12 = vpop.f32.mrb[26].mxu0  ;;  %v3362_v41 = vpop.f32.mrb[23].mxu1 }
 0x2a2   : > { %v6805_v6 = vadd.f32 %v6804_v1, %v4969_v19  ;;  %v6808_v22 = vadd.f32 %v3362_v41, %v1175_v24  ;;  %v4988_v29 = vpop.f32.mrb[27].mxu0  ;;  %v5109_v41 = vld [vmem:[#allocation2] sm:$0xff] (!%p5957_p1) }
 0x2a3   : > { %5091 = vst.msk [vmem:[#allocation2 + $0xb0] sm:$0xff] %vm5068_vm7, %v6803_v59  ;;  %v6807_v5 = vadd.f32 %v6806_v51, %v6693_v57  ;;  %v7350_v51 = vld [vmem:[%s8847_s4] sm:$0xff] (!%p5957_p1)  }
 0x2a4   : > { %5089 = vst.msk [vmem:[#allocation2 + $0xa0] sm:$0xff] %vm5068_vm7, %v6805_v6  ;;  %v6809_v54 = vadd.f32 %v6808_v22, %v4972_v0  ;;  %v1186_v0 = vld [vmem:[#allocation2 + $0x100] sm:$0xff]  ;;  %6706 = vmatprep.subr.bf16.mxu0 (!%p5957_p1), %v7350_v51  ;;  %7086 = vmatprep.subr.bf16.mxu1 (!%p5957_p1), %v7350_v51  ;;  %v5110_v6 = vld [vmem:[#allocation2 + $0x8] sm:$0xff] (!%p5957_p1) }
 0x2a5   : > { %5092 = vst.msk [vmem:[#allocation2 + $0xb8] sm:$0xff] %vm5068_vm7, %v6807_v5  ;;  %v8642_v22 = vld [vmem:[%s8845_s2] ss:$0 sm:$0xff] (!%p5957_p1)  ;;  %6707 = vmatpush3.bf16.msra.mxu0 (!%p5957_p1), %v7350_v51  ;;  %7088 = vmatpush3.bf16.msra.mxu1 (!%p5957_p1), %v7350_v51 }
 0x2a6   : > { %5090 = vst.msk [vmem:[#allocation2 + $0xa8] sm:$0xff] %vm5068_vm7, %v6809_v54  ;;  %v6488_v63 = vpop.f32.mrb[24].mxu1  ;;  %v5153_v5 = vmul.f32 (!%p5957_p1), %v8642_v22, %v5110_v6  ;;  %v8649_v54 = vld [vmem:[%s8846_s3] ss:$0 sm:$0xff] (!%p5957_p1) }
 0x2a7   : > { %v6810_v35 = vadd.f32 %v6488_v63, %v1180_v50  ;;  %v6700_v10 = vpop.f32.mrb[28].mxu0  ;;  %v3375_v38 = vpop.f32.mrb[25].mxu1  ;;  %v5111_v50 = vld [vmem:[#allocation2 + $0x10] sm:$0xff] (!%p5957_p1) }
 0x2a8   : > { %v6812_v26 = vadd.f32 %v3375_v38, %v1178_v7  ;;  %v5001_v23 = vpop.f32.mrb[29].mxu0  ;;  %v6489_v34 = vpop.f32.mrb[26].mxu1  ;;  %v5112_v7 = vld [vmem:[#allocation2 + $0x18] sm:$0xff] (!%p5957_p1)  ;;  %v5154_v63 = vmul.f32 (!%p5957_p1), %v8642_v22, %v5111_v50  ;;  %v5119_v50 = vld [vmem:[#allocation2 + $0x50] sm:$0xff] (!%p5957_p1) }
 0x2a9   : > { %v6811_v43 = vadd.f32 %v6810_v35, %v6696_v61  ;;  %v6814_v21 = vadd.f32 %v6489_v34, %v1181_v27  ;;  %v6701_v39 = vpop.f32.mrb[30].mxu0  ;;  %v3378_v62 = vpop.f32.mrb[27].mxu1  ;;  %v5155_v27 = vmul.f32 (!%p5957_p1), %v8642_v22, %v5112_v7  ;;  %v5120_v7 = vld [vmem:[#allocation2 + $0x58] sm:$0xff] (!%p5957_p1) }
 0x2aa   : > { %v6813_v44 = vadd.f32 %v6812_v26, %v4985_v37  ;;  %v6816_v45 = vadd.f32 %v3378_v62, %v1179_v42  ;;  %v5004_v28 = vpop.f32.mrb[31].mxu0  ;;  %v5131_v38 = vld [vmem:[#allocation2 + $0xb0] sm:$0xff] (!%p5957_p1)  ;;  %v5196_v26 = vadd.f32 (!%p5957_p1), %v8649_v54, %v5153_v5 }
 0x2ab   : > { %5095 = vst.msk [vmem:[#allocation2 + $0xd0] sm:$0xff] %vm5068_vm7, %v6811_v43  ;;  %v6815_v3 = vadd.f32 %v6814_v21, %v6697_v12  ;;  %v7351_v12 = vld [vmem:[%s8847_s4 + $0x8] sm:$0xff] (!%p5957_p1)   ;;  %v5129_v35 = vld [vmem:[#allocation2 + $0xa0] sm:$0xff] (!%p5957_p1)  ;;  %v5197_v21 = vadd.f32 (!%p5957_p1), %v8649_v54, %v5154_v63  ;;  %v5174_v62 = vmul.f32 (!%p5957_p1), %v8642_v22, %v5131_v38 }
 0x2ac   : > { %5093 = vst.msk [vmem:[#allocation2 + $0xc0] sm:$0xff] %vm5068_vm7, %v6813_v44  ;;  %v6817_v58 = vadd.f32 %v6816_v45, %v4988_v29  ;;  %v5152_v29 = vmul.f32 (!%p5957_p1), %v8642_v22, %v5109_v41  ;;  %6708 = vmatprep.subr.bf16.mxu0 (!%p5957_p1), %v7351_v12  ;;  %7087 = vmatprep.subr.bf16.mxu1 (!%p5957_p1), %v7351_v12  ;;  %v5132_v43 = vld [vmem:[#allocation2 + $0xb8] sm:$0xff] (!%p5957_p1)  ;;  %v5113_v45 = vld [vmem:[#allocation2 + $0x20] sm:$0xff] (!%p5957_p1) }
 0x2ad   : > { %5096 = vst.msk [vmem:[#allocation2 + $0xd8] sm:$0xff] %vm5068_vm7, %v6815_v3  ;;  %v5175_v44 = vmul.f32 (!%p5957_p1), %v8642_v22, %v5132_v43  ;;  %6709 = vmatpush3.bf16.msra.mxu0 (!%p5957_p1), %v7351_v12  ;;  %v5232_v3 = vmax.f32 (!%p5957_p1), %v5196_v26, 0.0  ;;  %7089 = vmatpush3.bf16.msra.mxu1 (!%p5957_p1), %v7351_v12  ;;  %v5118_v12 = vld [vmem:[#allocation2 + $0x48] sm:$0xff] (!%p5957_p1) }
 0x2ae   : > { %5094 = vst.msk [vmem:[#allocation2 + $0xc8] sm:$0xff] %vm5068_vm7, %v6817_v58  ;;  %v6492_v30 = vpop.f32.mrb[28].mxu1  ;;  %v5195_v42 = vadd.f32 (!%p5957_p1), %v8649_v54, %v5152_v29 }
 0x2af   : > { %v6818_v36 = vadd.f32 %v6492_v30, %v1184_v52  ;;  %v6704_v16 = vpop.f32.mrb[32].mxu0  ;;  %v3391_v60 = vpop.f32.mrb[29].mxu1  ;;  %v5233_v30 = vmax.f32 (!%p5957_p1), %v5197_v21, 0.0 }
 0x2b0   : > { %v6820_v4 = vadd.f32 %v3391_v60, %v1182_v20  ;;  %v5017_v8 = vpop.f32.mrb[33].mxu0  ;;  %v6493_v33 = vpop.f32.mrb[30].mxu1  ;;  %v5114_v20 = vld [vmem:[#allocation2 + $0x28] sm:$0xff] (!%p5957_p1)  ;;  %v5115_v60 = vld [vmem:[#allocation2 + $0x30] sm:$0xff] (!%p5957_p1) }
 0x2b1   : > { %v6819_v15 = vadd.f32 %v6818_v36, %v6700_v10  ;;  %v6822_v31 = vadd.f32 %v6493_v33, %v1185_v18  ;;  %v6705_v19 = vpop.f32.mrb[34].mxu0  ;;  %v3394_v25 = vpop.f32.mrb[31].mxu1  ;;  %v5130_v10 = vld [vmem:[#allocation2 + $0xa8] sm:$0xff] (!%p5957_p1)  ;;  %v5217_v36 = vadd.f32 (!%p5957_p1), %v8649_v54, %v5174_v62  ;;  %v5162_v62 = vmul.f32 (!%p5957_p1), %v8642_v22, %v5119_v50 }
 0x2b2   : > { %v6821_v46 = vadd.f32 %v6820_v4, %v5001_v23  ;;  %v6824_v40 = vadd.f32 %v3394_v25, %v1183_v47  ;;  %v5020_v57 = vpop.f32.mrb[35].mxu0  ;;  %v5172_v23 = vmul.f32 (!%p5957_p1), %v8642_v22, %v5129_v35  ;;  %v5173_v34 = vmul.f32 (!%p5957_p1), %v8642_v22, %v5130_v10  ;;  %v5116_v47 = vld [vmem:[#allocation2 + $0x38] sm:$0xff] (!%p5957_p1) }
 0x2b3   : > { %5099 = vst.msk [vmem:[#allocation2 + $0xf0] sm:$0xff] %vm5068_vm7, %v6819_v15  ;;  %v6823_v11 = vadd.f32 %v6822_v31, %v6701_v39  ;;  %v5198_v39 = vadd.f32 (!%p5957_p1), %v8649_v54, %v5155_v27  ;;  %v5156_v15 = vmul.f32 (!%p5957_p1), %v8642_v22, %v5113_v45  ;;  %v5133_v31 = vld [vmem:[#allocation2 + $0xc0] sm:$0xff] (!%p5957_p1) }
 0x2b4   : > { %5097 = vst.msk [vmem:[#allocation2 + $0xe0] sm:$0xff] %vm5068_vm7, %v6821_v46  ;;  %v6825_v53 = vadd.f32 %v6824_v40, %v5004_v28  ;;  %v5231_v28 = vmax.f32 (!%p5957_p1), %v5195_v42, 0.0  ;;  %v5215_v58 = vadd.f32 (!%p5957_p1), %v8649_v54, %v5172_v23  ;;  %v5216_v52 = vadd.f32 (!%p5957_p1), %v8649_v54, %v5173_v34 }
 0x2b5   : > { %5100 = vst.msk [vmem:[#allocation2 + $0xf8] sm:$0xff] %vm5068_vm7, %v6823_v11  ;;  %v5234_v18 = vmax.f32 (!%p5957_p1), %v5198_v39, 0.0  ;;  %v5253_v46 = vmax.f32 (!%p5957_p1), %v5217_v36, 0.0  ;;  %v5135_v11 = vld [vmem:[#allocation2 + $0xd0] sm:$0xff] (!%p5957_p1)  ;;  %v5161_v34 = vmul.f32 (!%p5957_p1), %v8642_v22, %v5118_v12  ;;  %v5205_v36 = vadd.f32 (!%p5957_p1), %v8649_v54, %v5162_v62 }
 0x2b6   : > { %5098 = vst.msk [vmem:[#allocation2 + $0xe8] sm:$0xff] %vm5068_vm7, %v6825_v53  ;;  %v6496_v9 = vpop.f32.mrb[32].mxu1  ;;  %v5267_v4 = vpack.c.bf16 (!%p5957_p1), %v5232_v3, %v5231_v28  ;;  %v5252_v33 = vmax.f32 (!%p5957_p1), %v5216_v52, 0.0 }
 0x2b7   : > { %v6826_v13 = vadd.f32 %v6496_v9, %v1188_v55  ;;  %v3407_v14 = vpop.f32.mrb[33].mxu1  ;;  %v5268_v25 = vpack.c.bf16 (!%p5957_p1), %v5234_v18, %v5233_v30  ;;  %v5199_v55 = vadd.f32 (!%p5957_p1), %v8649_v54, %v5156_v15  ;;  %v5159_v9 = vmul.f32 (!%p5957_p1), %v8642_v22, %v5116_v47  ;;  %v5121_v30 = vld [vmem:[#allocation2 + $0x60] sm:$0xff] (!%p5957_p1) }
 0x2b8   : > { %v6828_v49 = vadd.f32 %v3407_v14, %v1186_v0  ;;  %v6497_v2 = vpop.f32.mrb[34].mxu1  ;;  %5108 = sbr.rel (%p5957_p1) target bundleno = 951 (0x3b7), region = 134  ;;  %6710 = vmatprep.mubr.msk.bf16.mxu0 (!%p5957_p1), %vm5068_vm7, %v5267_v4  ;;  %v5158_v0 = vmul.f32 (!%p5957_p1), %v8642_v22, %v5115_v60  ;;  %v5204_v28 = vadd.f32 (!%p5957_p1), %v8649_v54, %v5161_v34  ;;  %v5241_v15 = vmax.f32 (!%p5957_p1), %v5205_v36, 0.0  ;;  %v5128_v34 = vld [vmem:[#allocation2 + $0x98] sm:$0xff] (!%p5957_p1) }
 0x2b9   : > { %v6827_v61 = vadd.f32 %v6826_v13, %v6704_v16  ;;  %v6830_v17 = vadd.f32 %v6497_v2, %v1189_v48  ;;  %v3410_v24 = vpop.f32.mrb[35].mxu1  ;;  %v5218_v16 = vadd.f32 (!%p5957_p1), %v8649_v54, %v5175_v44  ;;  %v5136_v48 = vld [vmem:[#allocation2 + $0xd8] sm:$0xff] (!%p5957_p1)  ;;  %6711 = vmatmul.mubr.msk.bf16.vlgmr.msra.gmra.mrb[0].mxu0 (!%p5957_p1), %vm5068_vm7, %v5268_v25  ;;  %v5117_v2 = vld [vmem:[#allocation2 + $0x40] sm:$0xff] (!%p5957_p1)  ;;  %v5163_v44 = vmul.f32 (!%p5957_p1), %v8642_v22, %v5120_v7 }
 0x2ba   : > { %v6829_v1 = vadd.f32 %v6828_v49, %v5017_v8  ;;  %v6832_v37 = vadd.f32 %v3410_v24, %v1187_v56  ;;  %v5251_v8 = vmax.f32 (!%p5957_p1), %v5215_v58, 0.0  ;;  %v5176_v56 = vmul.f32 (!%p5957_p1), %v8642_v22, %v5133_v31  ;;  %v5139_v45 = vld [vmem:[#allocation2 + $0xf0] sm:$0xff] (!%p5957_p1) }
 0x2bb   : > { %5103 = vst.msk [vmem:[#allocation2 + $0x110] sm:$0xff] %vm5068_vm7, %v6827_v61  ;;  %v6831_v32 = vadd.f32 %v6830_v17, %v6705_v19  ;;  %v5134_v19 = vld [vmem:[#allocation2 + $0xc8] sm:$0xff] (!%p5957_p1)  ;;  %v5254_v40 = vmax.f32 (!%p5957_p1), %v5218_v16, 0.0  ;;  %v5235_v61 = vmax.f32 (!%p5957_p1), %v5199_v55, 0.0  ;;  %v5201_v17 = vadd.f32 (!%p5957_p1), %v8649_v54, %v5158_v0  ;;  %v5137_v38 = vld [vmem:[#allocation2 + $0xe0] sm:$0xff] (!%p5957_p1) }
 0x2bc   : > { %5101 = vst.msk [vmem:[#allocation2 + $0x100] sm:$0xff] %vm5068_vm7, %v6829_v1  ;;  %v6833_v59 = vadd.f32 %v6832_v37, %v5020_v57  ;;  %v5157_v57 = vmul.f32 (!%p5957_p1), %v8642_v22, %v5114_v20  ;;  %v5277_v53 = vpack.c.bf16 (!%p5957_p1), %v5252_v33, %v5251_v8  ;;  %v5177_v49 = vmul.f32 (!%p5957_p1), %v8642_v22, %v5134_v19  ;;  %v5140_v20 = vld [vmem:[#allocation2 + $0xf8] sm:$0xff] (!%p5957_p1)  ;;  %v5122_v33 = vld [vmem:[#allocation2 + $0x68] sm:$0xff] (!%p5957_p1) }
 0x2bd   : > { %5104 = vst.msk [vmem:[#allocation2 + $0x118] sm:$0xff] %vm5068_vm7, %v6831_v32  ;;  %v5278_v13 = vpack.c.bf16 (!%p5957_p1), %v5254_v40, %v5253_v46  ;;  %v5202_v24 = vadd.f32 (!%p5957_p1), %v8649_v54, %v5159_v9  ;;  %v5178_v1 = vmul.f32 (!%p5957_p1), %v8642_v22, %v5135_v11  ;;  %v5219_v32 = vadd.f32 (!%p5957_p1), %v8649_v54, %v5176_v56  ;;  %v5138_v42 = vld [vmem:[#allocation2 + $0xe8] sm:$0xff] (!%p5957_p1)  ;;  %v5123_v46 = vld [vmem:[#allocation2 + $0x70] sm:$0xff] (!%p5957_p1)  ;;  %v5124_v40 = vld [vmem:[#allocation2 + $0x78] sm:$0xff] (!%p5957_p1) }
 0x2be   : > { %5102 = vst.msk [vmem:[#allocation2 + $0x108] sm:$0xff] %vm5068_vm7, %v6833_v59  ;;  %v5200_v14 = vadd.f32 (!%p5957_p1), %v8649_v54, %v5157_v57  ;;  %6730 = vmatprep.mubr.msk.bf16.mxu1 (!%p5957_p1), %vm5068_vm7, %v5277_v53  ;;  %v5220_v59 = vadd.f32 (!%p5957_p1), %v8649_v54, %v5177_v49  ;;  %v5179_v51 = vmul.f32 (!%p5957_p1), %v8642_v22, %v5136_v48  ;;  %v5237_v41 = vmax.f32 (!%p5957_p1), %v5201_v17, 0.0 }
 0x2bf   : > { %6731 = vmatmul.mubr.msk.bf16.vlgmr.msra.gmra.mrb[0].mxu1 %vm5068_vm7, %v5278_v13  ;;  %v5238_v6 = vmax.f32 %v5202_v24, 0.0  ;;  %v5221_v29 = vadd.f32 %v8649_v54, %v5178_v1  ;;  %v5160_v5 = vmul.f32 %v8642_v22, %v5117_v2  ;;  %v5255_v27 = vmax.f32 %v5219_v32, 0.0 }
 0x2c0   : > { %v5236_v37 = vmax.f32 %v5200_v14, 0.0  ;;  %v5256_v35 = vmax.f32 %v5220_v59, 0.0  ;;  %v5222_v10 = vadd.f32 %v8649_v54, %v5179_v51  ;;  %v5180_v58 = vmul.f32 %v8642_v22, %v5137_v38 }
 0x2c1   : > { %v5270_v26 = vpack.c.bf16 %v5238_v6, %v5237_v41  ;;  %v5257_v23 = vmax.f32 %v5221_v29, 0.0  ;;  %v5203_v43 = vadd.f32 %v8649_v54, %v5160_v5  ;;  %v5181_v52 = vmul.f32 %v8642_v22, %v5138_v42  ;;  %v5125_v5 = vld [vmem:[#allocation2 + $0x80] sm:$0xff] }
 0x2c2   : > { %v5269_v63 = vpack.c.bf16 %v5236_v37, %v5235_v61  ;;  %v5279_v21 = vpack.c.bf16 %v5256_v35, %v5255_v27  ;;  %v5258_v39 = vmax.f32 %v5222_v10, 0.0  ;;  %v5206_v16 = vadd.f32 %v8649_v54, %v5163_v44  ;;  %v5143_v49 = vld [vmem:[#allocation2 + $0x110] sm:$0xff]  ;;  %v5126_v35 = vld [vmem:[#allocation2 + $0x88] sm:$0xff] }
 0x2c3   : > { %v5239_v3 = vmax.f32 %v5203_v43, 0.0  ;;  %v5240_v60 = vmax.f32 %v5204_v28, 0.0  ;;  %v5223_v47 = vadd.f32 %v8649_v54, %v5180_v58  ;;  %v5224_v4 = vadd.f32 %v8649_v54, %v5181_v52  ;;  %v5141_v0 = vld [vmem:[#allocation2 + $0x100] sm:$0xff] }
 0x2c4   : > { %6714 = vmatprep.mubr.msk.bf16.mxu0 %vm5068_vm7, %v5269_v63  ;;  %6734 = vmatprep.mubr.msk.bf16.mxu1 %vm5068_vm7, %v5279_v21  ;;  %v5280_v18 = vpack.c.bf16 %v5258_v39, %v5257_v23  ;;  %v5182_v8 = vmul.f32 %v8642_v22, %v5139_v45  ;;  %v5242_v31 = vmax.f32 %v5206_v16, 0.0  ;;  %v5183_v19 = vmul.f32 %v8642_v22, %v5140_v20  ;;  %v5144_v1 = vld [vmem:[#allocation2 + $0x118] sm:$0xff]  ;;  %v5127_v23 = vld [vmem:[#allocation2 + $0x90] sm:$0xff] }
 0x2c5   : > { %6715 = vmatmul.mubr.msk.bf16.gmra.mrb[4].mxu0 %vm5068_vm7, %v5270_v26  ;;  %v5164_v25 = vmul.f32 %v8642_v22, %v5121_v30  ;;  %v5271_v57 = vpack.c.bf16 %v5240_v60, %v5239_v3  ;;  %v5259_v11 = vmax.f32 %v5223_v47, 0.0  ;;  %v5260_v53 = vmax.f32 %v5224_v4, 0.0  ;;  %v5142_v56 = vld [vmem:[#allocation2 + $0x108] sm:$0xff] }
 0x2c6   : > { %v5225_v55 = vadd.f32 %v8649_v54, %v5182_v8  ;;  %v5272_v9 = vpack.c.bf16 %v5242_v31, %v5241_v15  ;;  %v5226_v48 = vadd.f32 %v8649_v54, %v5183_v19  ;;  %v5165_v13 = vmul.f32 %v8642_v22, %v5122_v33 }
 0x2c7   : > { %6735 = vmatmul.mubr.msk.bf16.gmra.mrb[4].mxu1 %vm5068_vm7, %v5280_v18  ;;  %v5207_v14 = vadd.f32 %v8649_v54, %v5164_v25  ;;  %6718 = vmatprep.mubr.msk.bf16.mxu0 %vm5068_vm7, %v5271_v57  ;;  %v5281_v2 = vpack.c.bf16 %v5260_v53, %v5259_v11  ;;  %v5166_v17 = vmul.f32 %v8642_v22, %v5123_v46 }
 0x2c8   : > { %v5261_v61 = vmax.f32 %v5225_v55, 0.0  ;;  %v5167_v24 = vmul.f32 %v8642_v22, %v5124_v40  ;;  %v5262_v37 = vmax.f32 %v5226_v48, 0.0  ;;  %v5208_v32 = vadd.f32 %v8649_v54, %v5165_v13 }
 0x2c9   : > { %v5243_v59 = vmax.f32 %v5207_v14, 0.0  ;;  %v5184_v51 = vmul.f32 %v8642_v22, %v5141_v0  ;;  %6738 = vmatprep.mubr.msk.bf16.mxu1 %vm5068_vm7, %v5281_v2  ;;  %v5209_v12 = vadd.f32 %v8649_v54, %v5166_v17  ;;  %v5185_v6 = vmul.f32 %v8642_v22, %v5142_v56 }
 0x2ca   : > { %v5210_v41 = vadd.f32 %v8649_v54, %v5167_v24  ;;  %v5186_v29 = vmul.f32 %v8642_v22, %v5143_v49  ;;  %v5282_v50 = vpack.c.bf16 %v5262_v37, %v5261_v61  ;;  %v5244_v7 = vmax.f32 %v5208_v32, 0.0 }
 0x2cb   : > { %v5227_v63 = vadd.f32 %v8649_v54, %v5184_v51  ;;  %v5187_v27 = vmul.f32 %v8642_v22, %v5144_v1  ;;  %v5245_v10 = vmax.f32 %v5209_v12, 0.0  ;;  %v5228_v42 = vadd.f32 %v8649_v54, %v5185_v6 }
 0x2cc   : > { %v5246_v38 = vmax.f32 %v5210_v41, 0.0  ;;  %v5229_v26 = vadd.f32 %v8649_v54, %v5186_v29  ;;  %v5273_v43 = vpack.c.bf16 %v5244_v7, %v5243_v59  ;;  %v5168_v62 = vmul.f32 %v8642_v22, %v5125_v5 }
 0x2cd   : > { %6719 = vmatmul.mubr.msk.bf16.gmra.mrb[8].mxu0 %vm5068_vm7, %v5272_v9  ;;  %v5263_v21 = vmax.f32 %v5227_v63, 0.0  ;;  %v5230_v39 = vadd.f32 %v8649_v54, %v5187_v27  ;;  %v5264_v45 = vmax.f32 %v5228_v42, 0.0  ;;  %v5169_v3 = vmul.f32 %v8642_v22, %v5126_v35 }
 0x2ce   : > { %v5274_v44 = vpack.c.bf16 %v5246_v38, %v5245_v10  ;;  %v5265_v28 = vmax.f32 %v5229_v26, 0.0  ;;  %6722 = vmatprep.mubr.msk.bf16.mxu0 %vm5068_vm7, %v5273_v43  ;;  %v5211_v52 = vadd.f32 %v8649_v54, %v5168_v62  ;;  %v5170_v20 = vmul.f32 %v8642_v22, %v5127_v23 }
 0x2cf   : > { %6739 = vmatmul.mubr.msk.bf16.gmra.mrb[8].mxu1 %vm5068_vm7, %v5282_v50  ;;  %v5266_v58 = vmax.f32 %v5230_v39, 0.0  ;;  %v5171_v30 = vmul.f32 %v8642_v22, %v5128_v34  ;;  %v5283_v18 = vpack.c.bf16 %v5264_v45, %v5263_v21  ;;  %v5212_v36 = vadd.f32 %v8649_v54, %v5169_v3 }
 0x2d0   : > { %v5247_v60 = vmax.f32 %v5211_v52, 0.0  ;;  %v5213_v47 = vadd.f32 %v8649_v54, %v5170_v20 }
 0x2d1   : > { %v5284_v16 = vpack.c.bf16 %v5266_v58, %v5265_v28  ;;  %v5214_v4 = vadd.f32 %v8649_v54, %v5171_v30  ;;  %6742 = vmatprep.mubr.msk.bf16.mxu1 %vm5068_vm7, %v5283_v18  ;;  %v5248_v8 = vmax.f32 %v5212_v36, 0.0  ;;  %v8742_v54 = vld [vmem:[%s8848_s5] ss:$0 sm:$0xff] }
 0x2d2   : > { %v5249_v33 = vmax.f32 %v5213_v47, 0.0 }
 0x2d3   : > { %v5250_v15 = vmax.f32 %v5214_v4, 0.0  ;;  %v5275_v31 = vpack.c.bf16 %v5248_v8, %v5247_v60 }
 0x2d5   : > { %6723 = vmatmul.mubr.msk.bf16.gmra.mrb[12].mxu0 %vm5068_vm7, %v5274_v44  ;;  %v5276_v22 = vpack.c.bf16 %v5250_v15, %v5249_v33 }
 0x2d6   : > { %6726 = vmatprep.mubr.msk.bf16.mxu0 %vm5068_vm7, %v5275_v31 }
 0x2d7   : > { %6743 = vmatmul.mubr.msk.bf16.gmra.mrb[12].mxu1 %vm5068_vm7, %v5284_v16 }
 0x2dd   : > { %6727 = vmatmul.mubr.msk.bf16.gmra.mrb[16].mxu0 %vm5068_vm7, %v5276_v22 }
 0x38c   : > { %v6712_v19 = vpop.f32.mrb[0].mxu0 }
 0x38d   : > { %v5405_v25 = vadd.f32 %v6712_v19, %v8742_v54  ;;  %v5396_v46 = vpop.f32.mrb[1].mxu0 }
 0x38e   : > { %v5397_v40 = vadd.f32 %v8742_v54, %v5396_v46  ;;  %v6713_v57 = vpop.f32.mrb[2].mxu0 }
 0x38f   : > { %5541 = vst [vmem:[%s7800_s15 + $0x10] sm:$0xff] %v5405_v25  ;;  %v5408_v53 = vadd.f32 %v6713_v57, %v8742_v54  ;;  %v5399_v55 = vpop.f32.mrb[3].mxu0 }
 0x390   : > { %5539 = vst [vmem:[%s7800_s15] sm:$0xff] %v5397_v40  ;;  %v5400_v48 = vadd.f32 %v8742_v54, %v5399_v55 }
 0x391   : > { %5542 = vst [vmem:[%s7800_s15 + $0x18] sm:$0xff] %v5408_v53 }
 0x392   : > { %v6732_v11 = vpop.f32.mrb[0].mxu1  ;;  %5540 = vst [vmem:[%s7800_s15 + $0x8] sm:$0xff] %v5400_v48 }
 0x393   : > { %v5485_v0 = vadd.f32 %v6732_v11, %v8742_v54  ;;  %v5476_v9 = vpop.f32.mrb[1].mxu1 }
 0x394   : > { %v5477_v13 = vadd.f32 %v8742_v54, %v5476_v9  ;;  %v6733_v14 = vpop.f32.mrb[2].mxu1 }
 0x395   : > { %5561 = vst [vmem:[%s7800_s15 + $0xb0] sm:$0xff] %v5485_v0  ;;  %v5488_v56 = vadd.f32 %v6733_v14, %v8742_v54  ;;  %v5479_v49 = vpop.f32.mrb[3].mxu1 }
 0x396   : > { %5559 = vst [vmem:[%s7800_s15 + $0xa0] sm:$0xff] %v5477_v13  ;;  %v5480_v2 = vadd.f32 %v8742_v54, %v5479_v49 }
 0x397   : > { %5562 = vst [vmem:[%s7800_s15 + $0xb8] sm:$0xff] %v5488_v56 }
 0x398   : > { %v6716_v61 = vpop.f32.mrb[4].mxu0  ;;  %5560 = vst [vmem:[%s7800_s15 + $0xa8] sm:$0xff] %v5480_v2 }
 0x399   : > { %v5421_v17 = vadd.f32 %v6716_v61, %v8742_v54  ;;  %v5412_v24 = vpop.f32.mrb[5].mxu0 }
 0x39a   : > { %v5413_v1 = vadd.f32 %v8742_v54, %v5412_v24  ;;  %v6717_v37 = vpop.f32.mrb[6].mxu0  ;;  %v6736_v32 = vpop.f32.mrb[4].mxu1 }
 0x39b   : > { %5545 = vst [vmem:[%s7800_s15 + $0x30] sm:$0xff] %v5421_v17  ;;  %v5424_v59 = vadd.f32 %v6717_v37, %v8742_v54  ;;  %v5415_v51 = vpop.f32.mrb[7].mxu0  ;;  %v5501_v12 = vadd.f32 %v6736_v32, %v8742_v54  ;;  %v5492_v41 = vpop.f32.mrb[5].mxu1 }
 0x39c   : > { %5543 = vst [vmem:[%s7800_s15 + $0x20] sm:$0xff] %v5413_v1  ;;  %v5416_v6 = vadd.f32 %v8742_v54, %v5415_v51  ;;  %v5493_v29 = vadd.f32 %v8742_v54, %v5492_v41  ;;  %v6737_v5 = vpop.f32.mrb[6].mxu1 }
 0x39d   : > { %5546 = vst [vmem:[%s7800_s15 + $0x38] sm:$0xff] %v5424_v59  ;;  %5565 = vst [vmem:[%s7800_s15 + $0xd0] sm:$0xff] %v5501_v12  ;;  %v5504_v50 = vadd.f32 %v6737_v5, %v8742_v54  ;;  %v5495_v7 = vpop.f32.mrb[7].mxu1 }
 0x39e   : > { %5544 = vst [vmem:[%s7800_s15 + $0x28] sm:$0xff] %v5416_v6  ;;  %5563 = vst [vmem:[%s7800_s15 + $0xc0] sm:$0xff] %v5493_v29  ;;  %v5496_v63 = vadd.f32 %v8742_v54, %v5495_v7 }
 0x39f   : > { %5566 = vst [vmem:[%s7800_s15 + $0xd8] sm:$0xff] %v5504_v50 }
 0x3a0   : > { %v6720_v27 = vpop.f32.mrb[8].mxu0  ;;  %5564 = vst [vmem:[%s7800_s15 + $0xc8] sm:$0xff] %v5496_v63 }
 0x3a1   : > { %v5437_v35 = vadd.f32 %v6720_v27, %v8742_v54  ;;  %v5428_v10 = vpop.f32.mrb[9].mxu0 }
 0x3a2   : > { %v5429_v38 = vadd.f32 %v8742_v54, %v5428_v10  ;;  %v6721_v42 = vpop.f32.mrb[10].mxu0  ;;  %v6740_v26 = vpop.f32.mrb[8].mxu1 }
 0x3a3   : > { %5549 = vst [vmem:[%s7800_s15 + $0x50] sm:$0xff] %v5437_v35  ;;  %v5440_v23 = vadd.f32 %v6721_v42, %v8742_v54  ;;  %v5431_v34 = vpop.f32.mrb[11].mxu0  ;;  %v5517_v43 = vadd.f32 %v6740_v26, %v8742_v54  ;;  %v5508_v21 = vpop.f32.mrb[9].mxu1 }
 0x3a4   : > { %5547 = vst [vmem:[%s7800_s15 + $0x40] sm:$0xff] %v5429_v38  ;;  %v5432_v39 = vadd.f32 %v8742_v54, %v5431_v34  ;;  %v5509_v62 = vadd.f32 %v8742_v54, %v5508_v21  ;;  %v6741_v44 = vpop.f32.mrb[10].mxu1 }
 0x3a5   : > { %5550 = vst [vmem:[%s7800_s15 + $0x58] sm:$0xff] %v5440_v23  ;;  %5569 = vst [vmem:[%s7800_s15 + $0xf0] sm:$0xff] %v5517_v43  ;;  %v5520_v45 = vadd.f32 %v6741_v44, %v8742_v54  ;;  %v5511_v28 = vpop.f32.mrb[11].mxu1 }
 0x3a6   : > { %5548 = vst [vmem:[%s7800_s15 + $0x48] sm:$0xff] %v5432_v39  ;;  %5567 = vst [vmem:[%s7800_s15 + $0xe0] sm:$0xff] %v5509_v62  ;;  %v5512_v3 = vadd.f32 %v8742_v54, %v5511_v28 }
 0x3a7   : > { %5570 = vst [vmem:[%s7800_s15 + $0xf8] sm:$0xff] %v5520_v45 }
 0x3a8   : > { %v6724_v58 = vpop.f32.mrb[12].mxu0  ;;  %5568 = vst [vmem:[%s7800_s15 + $0xe8] sm:$0xff] %v5512_v3 }
 0x3a9   : > { %v5453_v52 = vadd.f32 %v6724_v58, %v8742_v54  ;;  %v5444_v20 = vpop.f32.mrb[13].mxu0 }
 0x3aa   : > { %v5445_v30 = vadd.f32 %v8742_v54, %v5444_v20  ;;  %v6725_v18 = vpop.f32.mrb[14].mxu0  ;;  %v6744_v36 = vpop.f32.mrb[12].mxu1 }
 0x3ab   : > { %5553 = vst [vmem:[%s7800_s15 + $0x70] sm:$0xff] %v5453_v52  ;;  %v5456_v16 = vadd.f32 %v6725_v18, %v8742_v54  ;;  %v5447_v60 = vpop.f32.mrb[15].mxu0  ;;  %v5533_v47 = vadd.f32 %v6744_v36, %v8742_v54  ;;  %v5524_v4 = vpop.f32.mrb[13].mxu1 }
 0x3ac   : > { %5551 = vst [vmem:[%s7800_s15 + $0x60] sm:$0xff] %v5445_v30  ;;  %v5448_v8 = vadd.f32 %v8742_v54, %v5447_v60  ;;  %v5525_v33 = vadd.f32 %v8742_v54, %v5524_v4  ;;  %v6745_v15 = vpop.f32.mrb[14].mxu1 }
 0x3ad   : > { %5554 = vst [vmem:[%s7800_s15 + $0x78] sm:$0xff] %v5456_v16  ;;  %5573 = vst [vmem:[%s7800_s15 + $0x110] sm:$0xff] %v5533_v47  ;;  %v5536_v31 = vadd.f32 %v6745_v15, %v8742_v54  ;;  %v5527_v22 = vpop.f32.mrb[15].mxu1 }
 0x3ae   : > { %5552 = vst [vmem:[%s7800_s15 + $0x68] sm:$0xff] %v5448_v8  ;;  %5571 = vst [vmem:[%s7800_s15 + $0x100] sm:$0xff] %v5525_v33  ;;  %v5528_v19 = vadd.f32 %v8742_v54, %v5527_v22 }
 0x3af   : > { %5574 = vst [vmem:[%s7800_s15 + $0x118] sm:$0xff] %v5536_v31 }
 0x3b0   : > { %v6728_v25 = vpop.f32.mrb[16].mxu0  ;;  %5572 = vst [vmem:[%s7800_s15 + $0x108] sm:$0xff] %v5528_v19 }
 0x3b1   : > { %v5469_v46 = vadd.f32 %v6728_v25, %v8742_v54  ;;  %v5460_v40 = vpop.f32.mrb[17].mxu0 }
 0x3b2   : > { %v5461_v57 = vadd.f32 %v8742_v54, %v5460_v40  ;;  %v6729_v11 = vpop.f32.mrb[18].mxu0 }
 0x3b3   : > { %5557 = vst [vmem:[%s7800_s15 + $0x90] sm:$0xff] %v5469_v46  ;;  %v5472_v53 = vadd.f32 %v6729_v11, %v8742_v54  ;;  %v5463_v55 = vpop.f32.mrb[19].mxu0 }
 0x3b4   : > { %5555 = vst [vmem:[%s7800_s15 + $0x80] sm:$0xff] %v5461_v57  ;;  %v5464_v0 = vadd.f32 %v8742_v54, %v5463_v55 }
 0x3b5   : > { %5558 = vst [vmem:[%s7800_s15 + $0x98] sm:$0xff] %v5472_v53 }
 0x3b6   : > { %5556 = vst [vmem:[%s7800_s15 + $0x88] sm:$0xff] %v5464_v0 }
 0x3b7 PF: > { %s16_s29 = sadd.s32 1, %s7422_s29   ;;  %s8854_s9 = sld [smem:[#allocation5_spill]] }
 0x3b8   : > { %p13_p2 = scmp.ge.s32.totalorder %s16_s29, 6   ;;  %s8855_s21 = smov %s7394_s22 }
 0x3b9   : > { %s8856_s22 = smov %s7525_s11  ;;  %s8857_s23 = smov %s7402_s24 }
 0x3ba   : > { %s8858_s24 = smov %s7535_s16  ;;  %s8859_s25 = smov %s7414_s27 }
 0x3bb   : > { %s8860_s26 = smov %s7418_s28  ;;  %s8861_s27 = smov %s8864_s30 }
 0x3bc   :  { %15 = sbr.rel (!%p13_p2) target bundleno = 5 (0x5), region = 185 }
 0x3bd   : > { %s8862_s28 = smov %s8854_s9 }

</bundles_post_ra>
